<compile_context>
chip_gen: v6e
topology: v6e:2x2x1
jax: 0.10.0
libtpu: 0.0.40
codegen_flags: <defaults>
</compile_context>

<pallas_src>
import functools

import jax
import jax.numpy as jnp
from jax.experimental import pallas as pl
from jax.experimental.pallas import tpu as pltpu

EPS = 1e-5                    # torch.nn.InstanceNorm2d default eps
MXU_DTYPE = jnp.bfloat16      # matmul operand / inter-stage activation dtype

# Per-stage residency at production shapes (C=256, H*W=4096) is ~13 MiB (halo input +
# f32 accumulator + bf16 output + extras), double-buffered well under v7x's 64 MiB VMEM.
_CPARAMS = pltpu.CompilerParams(dimension_semantics=("parallel",),
                                vmem_limit_bytes=64 * 1024 * 1024)


# --------------------------- fused shift-conv + IN + ReLU ----------------------------

def _shift_conv_in_relu_kernel(w_ref, x_ref, m_ref, *rest, offsets, mask_j, pad0,
                               n_extras, stat_groups, inv_count):
    """Shifted-tap Conv2d (stride 1, zero pad) + InstanceNorm2d(affine=False) + ReLU
    (+ fused residual adds) for one batch element, fully resident in VMEM.

    w_ref : (T, Cout, Cin) bf16  per-tap weight matrices
    x_ref : (1, Cin, P)          input (any float dtype), flat row-major spatial
    m_ref : (kw, P) f32          per-lane validity masks for the horizontal taps
    rest  : (*extra_refs, o_ref, xp_ref, acc_ref)
            extras  : (1, Cout, P) residual tensors added after the ReLU
            o_ref   : (1, Cout, P) output
            xp_ref  : (Cin, Pp) bf16 scratch -- zero-padded halo copy of the input
            acc_ref : (Cout, P) f32 scratch  -- raw conv accumulator
    """
    extras = rest[:n_extras]
    o_ref = rest[n_extras]
    xp_ref = rest[n_extras + 1]
    acc_ref = rest[n_extras + 2]
    P = o_ref.shape[-1]

    # Zero-padded halo copy of the input (replaces the XLA-side im2col / pad copies).
    xp_ref[...] = jnp.zeros(xp_ref.shape, xp_ref.dtype)
    xp_ref[:, pad0:pad0 + P] = x_ref[0].astype(xp_ref.dtype)

    # Shifted-tap matmuls: tap (i, j) is a static lane-offset window of the padded input.
    for t, off in enumerate(offsets):
        xt = xp_ref[:, off:off + P]                                       # (Cin, P) bf16
        yt = jnp.dot(w_ref[t], xt, preferred_element_type=jnp.float32)    # (Cout, P) f32
        if mask_j[t] is not None:
            # Zero lanes whose horizontal tap wrapped across a row boundary (equivalent
            # to zeroing the out-of-row input column for every Cin at that lane).
            yt = yt * m_ref[mask_j[t]]
        if t == 0:
            acc_ref[...] = yt
        else:
            acc_ref[...] += yt

    # InstanceNorm2d(affine=False) + ReLU.  Exact two-pass statistics on the resident
    # accumulator; for the sub-pixel transposed conv the stats are pooled across the
    # `stat_groups` phase row-blocks (they are the same output channel).
    acc = acc_ref[...]
    cout = acc.shape[0]
    gc = cout // stat_groups

    def _pool(v):                                  # (Cout, 1) -> (gc, 1)
        if stat_groups == 1:
            return v
        r = v[0:gc]
        for g in range(1, stat_groups):
            r = r + v[g * gc:(g + 1) * gc]
        return r

    def _unpool(v):                                # (gc, 1) -> (Cout, 1)
        if stat_groups == 1:
            return v
        return jnp.concatenate([v] * stat_groups, axis=0)

    mean = _unpool(_pool(jnp.sum(acc, axis=1, keepdims=True)) * inv_count)
    d = acc - mean
    var = _unpool(_pool(jnp.sum(d * d, axis=1, keepdims=True)) * inv_count)
    out = jnp.maximum(d * jax.lax.rsqrt(var + EPS), 0.0)
    for e in extras:
        out = out + e[0].astype(jnp.float32)
    o_ref[0] = out.astype(o_ref.dtype)


def shift_conv_in_relu(x, w_taps, kh, kw, ptop, pleft, *, extras=(), stat_groups=1,
                       out_dtype=MXU_DTYPE):
    """Fused Conv2d(kh x kw, stride 1, zero pads (ptop, kh-1-ptop)/(pleft, kw-1-pleft))
    + InstanceNorm2d(affine=False) + ReLU (+ residual adds).  One pallas_call, grid=(N,).

    x: (N, Cin, H, W);  w_taps: (kh*kw, Cout, Cin) tap matrices (tap order i*kw + j);
    extras: tensors (N, Cout, H*W) added elementwise after the ReLU.
    Returns (N, Cout, H*W) in `out_dtype`.
    Conv biases are omitted: they are exactly cancelled by the affine-free InstanceNorm.
    # TODO(synk): for very large H*W (per-image residency > VMEM) add a spatially tiled
    # variant (grid=(N, nP), "arbitrary" spatial axis, scratch-accumulated stats).
    """
    N, Cin, H, W = x.shape
    T, Cout, _ = w_taps.shape
    P = H * W
    Pp = (H + kh - 1) * W + (kw - 1)              # zero-padded halo length
    pad0 = ptop * W + pleft                       # offset of the un-padded data

    # Per-lane validity masks for the horizontal taps (zero the row-boundary wrap).
    cols = jnp.arange(P, dtype=jnp.int32) % W
    masks = jnp.stack(
        [((cols + (j - pleft) >= 0) & (cols + (j - pleft) < W)) for j in range(kw)],
        axis=0).astype(jnp.float32)               # (kw, P)

    offsets = tuple(i * W + j for i in range(kh) for j in range(kw))
    mask_j = tuple((j if j != pleft else None) for i in range(kh) for j in range(kw))

    kern = functools.partial(
        _shift_conv_in_relu_kernel, offsets=offsets, mask_j=mask_j, pad0=pad0,
        n_extras=len(extras), stat_groups=stat_groups,
        inv_count=1.0 / float(stat_groups * P))

    in_specs = [pl.BlockSpec((T, Cout, Cin), lambda n: (0, 0, 0)),
                pl.BlockSpec((1, Cin, P), lambda n: (n, 0, 0)),
                pl.BlockSpec((kw, P), lambda n: (0, 0))]
    operands = [w_taps.astype(MXU_DTYPE), x.reshape(N, Cin, P), masks]
    for e in extras:
        in_specs.append(pl.BlockSpec((1, Cout, P), lambda n: (n, 0, 0)))
        operands.append(e)

    return pl.pallas_call(
        kern,
        out_shape=jax.ShapeDtypeStruct((N, Cout, P), out_dtype),
        grid=(N,),
        in_specs=in_specs,
        out_specs=pl.BlockSpec((1, Cout, P), lambda n: (n, 0, 0)),
        scratch_shapes=[pltpu.VMEM((Cin, Pp), MXU_DTYPE),
                        pltpu.VMEM((Cout, P), jnp.float32)],
        compiler_params=_CPARAMS,
    )(*operands)


# --------------------- fused bilinear x2 upsample * low_level ------------------------

def _upsample_mul_kernel(ah_ref, awt_ref, x_ref, low_ref, o_ref):
    """out[c] = (Ah @ x[c] @ Aw^T) * low[c], batched over channels, resident in VMEM."""
    x = x_ref[0]                                                          # (C, h, w) bf16
    u = jax.lax.dot_general(x, awt_ref[...], (((2,), (0,)), ((), ())),
                            preferred_element_type=jnp.float32)           # (C, h, W)
    ut = jnp.swapaxes(u, 1, 2).astype(x.dtype)                            # (C, W, h) bf16
    C = x.shape[0]
    H, h = ah_ref.shape
    ah_b = jnp.broadcast_to(ah_ref[...][None], (C, H, h))                 # (C, H, h) bf16
    up = jax.lax.dot_general(ah_b, ut, (((2,), (2,)), ((0,), (0,))),
                             preferred_element_type=jnp.float32)          # (C, H, W) f32
    o_ref[0] = (up * low_ref[0].astype(jnp.float32)).astype(o_ref.dtype)


def upsample_mul(seb, low, ah, awt):
    """seb: (N, C, h, w) bf16; low: (N, C, H, W) f32; ah: (H, h); awt: (w, W)."""
    N, C, h, w = seb.shape
    H, W = low.shape[2], low.shape[3]
    return pl.pallas_call(
        _upsample_mul_kernel,
        out_shape=jax.ShapeDtypeStruct((N, C, H, W), MXU_DTYPE),
        grid=(N,),
        in_specs=[pl.BlockSpec((H, h), lambda n: (0, 0)),
                  pl.BlockSpec((w, W), lambda n: (0, 0)),
                  pl.BlockSpec((1, C, h, w), lambda n: (n, 0, 0, 0)),
                  pl.BlockSpec((1, C, H, W), lambda n: (n, 0, 0, 0))],
        out_specs=pl.BlockSpec((1, C, H, W), lambda n: (n, 0, 0, 0)),
        compiler_params=_CPARAMS,
    )(ah, awt, seb, low)


# ------------------------------------ glue -------------------------------------------

def conv_taps(wt):
    """PyTorch Conv2d weight (Cout, Cin, kh, kw) -> per-tap matrices (kh*kw, Cout, Cin)."""
    cout, cin, kh, kw = wt.shape
    return jnp.transpose(wt, (2, 3, 0, 1)).reshape(kh * kw, cout, cin)


def bilinear_matrix(inp, out):
    """align_corners=True bilinear interpolation matrix (out, inp), as UpsamplingBilinear2d."""
    o = jnp.arange(out, dtype=jnp.float32)
    src = o * (inp - 1) / max(out - 1, 1)
    lo = jnp.floor(src).astype(jnp.int32)
    hi = jnp.minimum(lo + 1, inp - 1)
    frac = src - lo.astype(jnp.float32)
    M = jnp.zeros((out, inp), jnp.float32)
    M = M.at[jnp.arange(out), lo].add(1.0 - frac)
    M = M.at[jnp.arange(out), hi].add(frac)
    return M


def upconv_phase_weight(wt):
    """ConvTranspose2d(3x3, stride 2, pad 1, output_padding 1) lowered to a 2x2 stride-1
    conv producing four sub-pixel output phases: phase ph = 2*r + s occupies rows
    ph*Cout:(ph+1)*Cout, tap t = 2*dy + dx occupies cols t*Cin:(t+1)*Cin of the
    bottom/right zero-padded input.  wt: (Cin, Cout, 3, 3) -> (4*Cout, 4*Cin).
    # TODO(synk): numerically cross-check against torch.nn.ConvTranspose2d."""
    cin, co, _, _ = wt.shape
    W4 = jnp.zeros((4 * co, 4 * cin), jnp.float32)
    for r in (0, 1):
        for s in (0, 1):
            ph = 2 * r + s
            for dy in (0, 1):
                for dx in (0, 1):
                    if (r == 0 and dy == 1) or (s == 0 and dx == 1):
                        continue
                    kh = 1 if r == 0 else (0 if dy == 1 else 2)
                    kw = 1 if s == 0 else (0 if dx == 1 else 2)
                    t = 2 * dy + dx
                    blk = jnp.transpose(wt[:, :, kh, kw], (1, 0))        # (Cout, Cin)
                    W4 = W4.at[ph * co:(ph + 1) * co, t * cin:(t + 1) * cin].set(blk)
    return W4


def unet_exfuse_level(low, high, prev, params):
    """low: (N, C, H, W), high: (N, 2C, H/2, W/2), prev: (N, C, H, W) -> (N, out_c, 2H, 2W)."""
    low = low.astype(jnp.float32)
    high = high.astype(jnp.float32)
    prev = prev.astype(jnp.float32)
    N, C, H, W = low.shape
    h, w = high.shape[2], high.shape[3]

    # ---- SEB: fused CNA(2C -> C, 3x3, pad 1) on high_level ----
    seb = shift_conv_in_relu(high, conv_taps(params['seb_w']), 3, 3, 1, 1)   # (N, C, h*w) bf16

    # ---- fused separable bilinear x2 upsample (align_corners=True) * low_level ----
    ah = bilinear_matrix(h, H).astype(MXU_DTYPE)                             # (H, h)
    awt = jnp.transpose(bilinear_matrix(w, W)).astype(MXU_DTYPE)             # (w, W)
    level = upsample_mul(seb.reshape(N, C, h, w), low, ah, awt)              # (N, C, H, W) bf16

    # ---- GCN (7x1 / 1x7 separable CNA branches); last conv fuses x_l + prev adds ----
    # TODO(synk): co-schedule l1 (7x1) and r1 (1x7) in one kernel reading `level` once
    # (stacked 2C-row output) to double MXU row utilization on v6e/v7x.
    xl1 = shift_conv_in_relu(level, conv_taps(params['l1_w']), 7, 1, 3, 0)
    xl2 = shift_conv_in_relu(xl1.reshape(N, C, H, W), conv_taps(params['l2_w']), 1, 7, 0, 3)
    xr1 = shift_conv_in_relu(level, conv_taps(params['r1_w']), 1, 7, 0, 3)
    g = shift_conv_in_relu(xr1.reshape(N, C, H, W), conv_taps(params['r2_w']), 7, 1, 3, 0,
                           extras=(xl2, prev.reshape(N, C, H * W)))          # x_l + x_r + prev

    # ---- upconv: ConvTranspose2d(C, out_c, 3, 2, 1, output_padding=1) + IN + ReLU ----
    # 4-phase sub-pixel conv with phase-pooled InstanceNorm stats computed in-kernel;
    # only the final pixel shuffle is an XLA copy of the final activation.
    out_c = params['up_w'].shape[1]
    w4 = upconv_phase_weight(params['up_w'])                                 # (4*oc, 4*C)
    w_taps_up = jnp.stack([w4[:, t * C:(t + 1) * C] for t in range(4)], axis=0)
    y4 = shift_conv_in_relu(g.reshape(N, C, H, W), w_taps_up, 2, 2, 0, 0,
                            stat_groups=4, out_dtype=jnp.float32)            # (N, 4oc, HW)
    y4 = y4.reshape(N, 2, 2, out_c, H, W)
    out = jnp.transpose(y4, (0, 3, 4, 1, 5, 2)).reshape(N, out_c, 2 * H, 2 * W)
    return out


def init_params(key, in_c, out_c):
    ks = jax.random.split(key, 12)

    def w(k, shape, scale=0.1):
        return scale * jax.random.normal(k, shape, jnp.float32)

    C = in_c
    # NOTE: all conv/convT biases are exactly cancelled by the affine-free InstanceNorm2d
    # following each conv; kept only for parameter-structure parity (unused).
    return {
        'seb_w': w(ks[0], (C, 2 * C, 3, 3)), 'seb_b': w(ks[1], (C,)),
        'l1_w': w(ks[2], (C, C, 7, 1)),      'l1_b': w(ks[3], (C,)),
        'l2_w': w(ks[4], (C, C, 1, 7)),      'l2_b': w(ks[5], (C,)),
        'r1_w': w(ks[6], (C, C, 1, 7)),      'r1_b': w(ks[7], (C,)),
        'r2_w': w(ks[8], (C, C, 7, 1)),      'r2_b': w(ks[9], (C,)),
        'up_w': w(ks[10], (C, out_c, 3, 3)), 'up_b': w(ks[11], (out_c,)),
    }


if __name__ == "__main__":
    key = jax.random.PRNGKey(0)
    k1, k2, k3, kp = jax.random.split(key, 4)
    in_c, out_c = 4, 21
    N, H, W = 2, 16, 16

    low_level = jax.random.normal(k1, (N, in_c, H, W), jnp.float32)            # NCHW
    high_level = jax.random.normal(k2, (N, 2 * in_c, H // 2, W // 2), jnp.float32)
    prev_feature = jax.random.normal(k3, (N, in_c, H, W), jnp.float32)
    params = init_params(kp, in_c, out_c)

    fwd = jax.jit(unet_exfuse_level)
    out = fwd(low_level, high_level, prev_feature, params)
    out = jax.block_until_ready(out)

    assert out.shape == (N, out_c, 2 * H, 2 * W), out.shape
    assert bool(jnp.all(jnp.isfinite(out)))
    print("KERNEL_OK")
</pallas_src>

<mosaic_0001>
module attributes {stable_mosaic.version = 11 : i64} {
  func.func private @main(%arg0: i32) attributes {dimension_semantics = [#tpu.dimension_semantics<core_parallel>], iteration_bounds = array<i64: 2>, tpu.core_type = #tpu.core_type<sc_scalar_subcore>, window_params = []} {
    return
  }
}

module attributes {stable_mosaic.version = 11 : i64} {
  func.func private @main(%arg0: i32) attributes {dimension_semantics = [#tpu.dimension_semantics<core_parallel>], iteration_bounds = array<i64: 2>, tpu.core_type = #tpu.core_type<sc_scalar_subcore>, window_params = []} {
    return
  }
}

module attributes {stable_mosaic.version = 11 : i64} {
  func.func @_shift_conv_in_relu_kernel(%arg0: i32, %arg1: memref<9x4x8xbf16, #tpu.memory_space<vmem>>, %arg2: memref<1x8x64xf32, #tpu.memory_space<vmem>>, %arg3: memref<3x64xf32, #tpu.memory_space<vmem>>, %arg4: memref<1x4x64xbf16, #tpu.memory_space<vmem>>, %arg5: memref<8x82xbf16, #tpu.memory_space<vmem>>, %arg6: memref<4x64xf32, #tpu.memory_space<vmem>>) attributes {dimension_semantics = [#tpu.dimension_semantics<parallel>], iteration_bounds = array<i64: 2>, scalar_prefetch = 0 : i64, scratch_operands = 2 : i64, tpu.core_type = #tpu.core_type<tc>, window_params = [{pipeline_mode = #tpu.pipeline_mode<synchronous>, transform_indices = @transform_0, window_bounds = array<i64: 9, 4, 8>}, {transform_indices = @transform_1, window_bounds = array<i64: 1, 8, 64>}, {pipeline_mode = #tpu.pipeline_mode<synchronous>, transform_indices = @transform_2, window_bounds = array<i64: 3, 64>}, {transform_indices = @transform_3, window_bounds = array<i64: 1, 4, 64>}]} {
    %cst = arith.constant 0.000000e+00 : bf16
    %0 = vector.broadcast %cst : bf16 to vector<8x82xbf16>
    %c0 = arith.constant 0 : index
    %c0_0 = arith.constant 0 : index
    %1 = vector.load %arg5[%c0, %c0_0] : memref<8x82xbf16, #tpu.memory_space<vmem>>, vector<8x82xbf16>
    tpu.vector_store %arg5[%c0, %c0_0], %0 {strides = array<i32>} : memref<8x82xbf16, #tpu.memory_space<vmem>>, vector<8x82xbf16>,
    %c0_1 = arith.constant 0 : index
    %c0_2 = arith.constant 0 : index
    %c0_3 = arith.constant 0 : index
    %2 = vector.load %arg2[%c0_1, %c0_2, %c0_3] : memref<1x8x64xf32, #tpu.memory_space<vmem>>, vector<1x8x64xf32>
    %3 = vector.shape_cast %2 : vector<1x8x64xf32> to vector<8x64xf32>
    %4 = arith.truncf %3 : vector<8x64xf32> to vector<8x64xbf16>
    %c0_4 = arith.constant 0 : index
    %c9 = arith.constant 9 : index
    %5 = vector.load %arg5[%c0_4, %c9] : memref<8x82xbf16, #tpu.memory_space<vmem>>, vector<8x64xbf16>
    tpu.vector_store %arg5[%c0_4, %c9], %4 {strides = array<i32>} : memref<8x82xbf16, #tpu.memory_space<vmem>>, vector<8x64xbf16>,
    %c0_5 = arith.constant 0 : index
    %c0_6 = arith.constant 0 : index
    %6 = vector.load %arg5[%c0_5, %c0_6] : memref<8x82xbf16, #tpu.memory_space<vmem>>, vector<8x64xbf16>
    %c0_7 = arith.constant 0 : index
    %c0_8 = arith.constant 0 : index
    %c0_9 = arith.constant 0 : index
    %7 = vector.load %arg1[%c0_7, %c0_8, %c0_9] : memref<9x4x8xbf16, #tpu.memory_space<vmem>>, vector<1x4x8xbf16>
    %8 = vector.shape_cast %7 : vector<1x4x8xbf16> to vector<4x8xbf16>
    %cst_10 = arith.constant dense<0.000000e+00> : vector<4x64xf32>
    %9 = tpu.matmul %8, %6, %cst_10 {dimension_numbers = #tpu.dot_dimension_numbers<[1], [0], [0], [1], [0, 0, 1, 1], [], []>} : vector<4x8xbf16>, vector<8x64xbf16>, vector<4x64xf32> -> vector<4x64xf32>
    %c0_11 = arith.constant 0 : index
    %c0_12 = arith.constant 0 : index
    %10 = vector.load %arg3[%c0_11, %c0_12] : memref<3x64xf32, #tpu.memory_space<vmem>>, vector<1x64xf32>
    %11 = vector.shape_cast %10 : vector<1x64xf32> to vector<64xf32>
    %12 = vector.shape_cast %11 : vector<64xf32> to vector<1x64xf32>
    %13 = vector.broadcast %12 : vector<1x64xf32> to vector<4x64xf32>
    %14 = arith.mulf %9, %13 : vector<4x64xf32>
    %c0_13 = arith.constant 0 : index
    %c0_14 = arith.constant 0 : index
    %15 = vector.load %arg6[%c0_13, %c0_14] : memref<4x64xf32, #tpu.memory_space<vmem>>, vector<4x64xf32>
    tpu.vector_store %arg6[%c0_13, %c0_14], %14 {strides = array<i32>} : memref<4x64xf32, #tpu.memory_space<vmem>>, vector<4x64xf32>,
    %c0_15 = arith.constant 0 : index
    %c1 = arith.constant 1 : index
    %16 = vector.load %arg5[%c0_15, %c1] : memref<8x82xbf16, #tpu.memory_space<vmem>>, vector<8x64xbf16>
    %c1_16 = arith.constant 1 : index
    %c0_17 = arith.constant 0 : index
    %c0_18 = arith.constant 0 : index
    %17 = vector.load %arg1[%c1_16, %c0_17, %c0_18] : memref<9x4x8xbf16, #tpu.memory_space<vmem>>, vector<1x4x8xbf16>
    %18 = vector.shape_cast %17 : vector<1x4x8xbf16> to vector<4x8xbf16>
    %cst_19 = arith.constant dense<0.000000e+00> : vector<4x64xf32>
    %19 = tpu.matmul %18, %16, %cst_19 {dimension_numbers = #tpu.dot_dimension_numbers<[1], [0], [0], [1], [0, 0, 1, 1], [], []>} : vector<4x8xbf16>, vector<8x64xbf16>, vector<4x64xf32> -> vector<4x64xf32>
    %c0_20 = arith.constant 0 : index
    %c0_21 = arith.constant 0 : index
    %20 = vector.load %arg6[%c0_20, %c0_21] : memref<4x64xf32, #tpu.memory_space<vmem>>, vector<4x64xf32>
    %21 = arith.addf %20, %19 : vector<4x64xf32>
    %c0_22 = arith.constant 0 : index
    %c0_23 = arith.constant 0 : index
    %22 = vector.load %arg6[%c0_22, %c0_23] : memref<4x64xf32, #tpu.memory_space<vmem>>, vector<4x64xf32>
    tpu.vector_store %arg6[%c0_22, %c0_23], %21 {strides = array<i32>} : memref<4x64xf32, #tpu.memory_space<vmem>>, vector<4x64xf32>,
    %c0_24 = arith.constant 0 : index
    %c2 = arith.constant 2 : index
    %23 = vector.load %arg5[%c0_24, %c2] : memref<8x82xbf16, #tpu.memory_space<vmem>>, vector<8x64xbf16>
    %c2_25 = arith.constant 2 : index
    %c0_26 = arith.constant 0 : index
    %c0_27 = arith.constant 0 : index
    %24 = vector.load %arg1[%c2_25, %c0_26, %c0_27] : memref<9x4x8xbf16, #tpu.memory_space<vmem>>, vector<1x4x8xbf16>
    %25 = vector.shape_cast %24 : vector<1x4x8xbf16> to vector<4x8xbf16>
    %cst_28 = arith.constant dense<0.000000e+00> : vector<4x64xf32>
    %26 = tpu.matmul %25, %23, %cst_28 {dimension_numbers = #tpu.dot_dimension_numbers<[1], [0], [0], [1], [0, 0, 1, 1], [], []>} : vector<4x8xbf16>, vector<8x64xbf16>, vector<4x64xf32> -> vector<4x64xf32>
    %c2_29 = arith.constant 2 : index
    %c0_30 = arith.constant 0 : index
    %27 = vector.load %arg3[%c2_29, %c0_30] : memref<3x64xf32, #tpu.memory_space<vmem>>, vector<1x64xf32>
    %28 = vector.shape_cast %27 : vector<1x64xf32> to vector<64xf32>
    %29 = vector.shape_cast %28 : vector<64xf32> to vector<1x64xf32>
    %30 = vector.broadcast %29 : vector<1x64xf32> to vector<4x64xf32>
    %31 = arith.mulf %26, %30 : vector<4x64xf32>
    %c0_31 = arith.constant 0 : index
    %c0_32 = arith.constant 0 : index
    %32 = vector.load %arg6[%c0_31, %c0_32] : memref<4x64xf32, #tpu.memory_space<vmem>>, vector<4x64xf32>
    %33 = arith.addf %32, %31 : vector<4x64xf32>
    %c0_33 = arith.constant 0 : index
    %c0_34 = arith.constant 0 : index
    %34 = vector.load %arg6[%c0_33, %c0_34] : memref<4x64xf32, #tpu.memory_space<vmem>>, vector<4x64xf32>
    tpu.vector_store %arg6[%c0_33, %c0_34], %33 {strides = array<i32>} : memref<4x64xf32, #tpu.memory_space<vmem>>, vector<4x64xf32>,
    %c0_35 = arith.constant 0 : index
    %c8 = arith.constant 8 : index
    %35 = vector.load %arg5[%c0_35, %c8] : memref<8x82xbf16, #tpu.memory_space<vmem>>, vector<8x64xbf16>
    %c3 = arith.constant 3 : index
    %c0_36 = arith.constant 0 : index
    %c0_37 = arith.constant 0 : index
    %36 = vector.load %arg1[%c3, %c0_36, %c0_37] : memref<9x4x8xbf16, #tpu.memory_space<vmem>>, vector<1x4x8xbf16>
    %37 = vector.shape_cast %36 : vector<1x4x8xbf16> to vector<4x8xbf16>
    %cst_38 = arith.constant dense<0.000000e+00> : vector<4x64xf32>
    %38 = tpu.matmul %37, %35, %cst_38 {dimension_numbers = #tpu.dot_dimension_numbers<[1], [0], [0], [1], [0, 0, 1, 1], [], []>} : vector<4x8xbf16>, vector<8x64xbf16>, vector<4x64xf32> -> vector<4x64xf32>
    %c0_39 = arith.constant 0 : index
    %c0_40 = arith.constant 0 : index
    %39 = vector.load %arg3[%c0_39, %c0_40] : memref<3x64xf32, #tpu.memory_space<vmem>>, vector<1x64xf32>
    %40 = vector.shape_cast %39 : vector<1x64xf32> to vector<64xf32>
    %41 = vector.shape_cast %40 : vector<64xf32> to vector<1x64xf32>
    %42 = vector.broadcast %41 : vector<1x64xf32> to vector<4x64xf32>
    %43 = arith.mulf %38, %42 : vector<4x64xf32>
    %c0_41 = arith.constant 0 : index
    %c0_42 = arith.constant 0 : index
    %44 = vector.load %arg6[%c0_41, %c0_42] : memref<4x64xf32, #tpu.memory_space<vmem>>, vector<4x64xf32>
    %45 = arith.addf %44, %43 : vector<4x64xf32>
    %c0_43 = arith.constant 0 : index
    %c0_44 = arith.constant 0 : index
    %46 = vector.load %arg6[%c0_43, %c0_44] : memref<4x64xf32, #tpu.memory_space<vmem>>, vector<4x64xf32>
    tpu.vector_store %arg6[%c0_43, %c0_44], %45 {strides = array<i32>} : memref<4x64xf32, #tpu.memory_space<vmem>>, vector<4x64xf32>,
    %c0_45 = arith.constant 0 : index
    %c9_46 = arith.constant 9 : index
    %47 = vector.load %arg5[%c0_45, %c9_46] : memref<8x82xbf16, #tpu.memory_space<vmem>>, vector<8x64xbf16>
    %c4 = arith.constant 4 : index
    %c0_47 = arith.constant 0 : index
    %c0_48 = arith.constant 0 : index
    %48 = vector.load %arg1[%c4, %c0_47, %c0_48] : memref<9x4x8xbf16, #tpu.memory_space<vmem>>, vector<1x4x8xbf16>
    %49 = vector.shape_cast %48 : vector<1x4x8xbf16> to vector<4x8xbf16>
    %cst_49 = arith.constant dense<0.000000e+00> : vector<4x64xf32>
    %50 = tpu.matmul %49, %47, %cst_49 {dimension_numbers = #tpu.dot_dimension_numbers<[1], [0], [0], [1], [0, 0, 1, 1], [], []>} : vector<4x8xbf16>, vector<8x64xbf16>, vector<4x64xf32> -> vector<4x64xf32>
    %c0_50 = arith.constant 0 : index
    %c0_51 = arith.constant 0 : index
    %51 = vector.load %arg6[%c0_50, %c0_51] : memref<4x64xf32, #tpu.memory_space<vmem>>, vector<4x64xf32>
    %52 = arith.addf %51, %50 : vector<4x64xf32>
    %c0_52 = arith.constant 0 : index
    %c0_53 = arith.constant 0 : index
    %53 = vector.load %arg6[%c0_52, %c0_53] : memref<4x64xf32, #tpu.memory_space<vmem>>, vector<4x64xf32>
    tpu.vector_store %arg6[%c0_52, %c0_53], %52 {strides = array<i32>} : memref<4x64xf32, #tpu.memory_space<vmem>>, vector<4x64xf32>,
    %c0_54 = arith.constant 0 : index
    %c10 = arith.constant 10 : index
    %54 = vector.load %arg5[%c0_54, %c10] : memref<8x82xbf16, #tpu.memory_space<vmem>>, vector<8x64xbf16>
    %c5 = arith.constant 5 : index
    %c0_55 = arith.constant 0 : index
    %c0_56 = arith.constant 0 : index
    %55 = vector.load %arg1[%c5, %c0_55, %c0_56] : memref<9x4x8xbf16, #tpu.memory_space<vmem>>, vector<1x4x8xbf16>
    %56 = vector.shape_cast %55 : vector<1x4x8xbf16> to vector<4x8xbf16>
    %cst_57 = arith.constant dense<0.000000e+00> : vector<4x64xf32>
    %57 = tpu.matmul %56, %54, %cst_57 {dimension_numbers = #tpu.dot_dimension_numbers<[1], [0], [0], [1], [0, 0, 1, 1], [], []>} : vector<4x8xbf16>, vector<8x64xbf16>, vector<4x64xf32> -> vector<4x64xf32>
    %c2_58 = arith.constant 2 : index
    %c0_59 = arith.constant 0 : index
    %58 = vector.load %arg3[%c2_58, %c0_59] : memref<3x64xf32, #tpu.memory_space<vmem>>, vector<1x64xf32>
    %59 = vector.shape_cast %58 : vector<1x64xf32> to vector<64xf32>
    %60 = vector.shape_cast %59 : vector<64xf32> to vector<1x64xf32>
    %61 = vector.broadcast %60 : vector<1x64xf32> to vector<4x64xf32>
    %62 = arith.mulf %57, %61 : vector<4x64xf32>
    %c0_60 = arith.constant 0 : index
    %c0_61 = arith.constant 0 : index
    %63 = vector.load %arg6[%c0_60, %c0_61] : memref<4x64xf32, #tpu.memory_space<vmem>>, vector<4x64xf32>
    %64 = arith.addf %63, %62 : vector<4x64xf32>
    %c0_62 = arith.constant 0 : index
    %c0_63 = arith.constant 0 : index
    %65 = vector.load %arg6[%c0_62, %c0_63] : memref<4x64xf32, #tpu.memory_space<vmem>>, vector<4x64xf32>
    tpu.vector_store %arg6[%c0_62, %c0_63], %64 {strides = array<i32>} : memref<4x64xf32, #tpu.memory_space<vmem>>, vector<4x64xf32>,
    %c0_64 = arith.constant 0 : index
    %c16 = arith.constant 16 : index
    %66 = vector.load %arg5[%c0_64, %c16] : memref<8x82xbf16, #tpu.memory_space<vmem>>, vector<8x64xbf16>
    %c6 = arith.constant 6 : index
    %c0_65 = arith.constant 0 : index
    %c0_66 = arith.constant 0 : index
    %67 = vector.load %arg1[%c6, %c0_65, %c0_66] : memref<9x4x8xbf16, #tpu.memory_space<vmem>>, vector<1x4x8xbf16>
    %68 = vector.shape_cast %67 : vector<1x4x8xbf16> to vector<4x8xbf16>
    %cst_67 = arith.constant dense<0.000000e+00> : vector<4x64xf32>
    %69 = tpu.matmul %68, %66, %cst_67 {dimension_numbers = #tpu.dot_dimension_numbers<[1], [0], [0], [1], [0, 0, 1, 1], [], []>} : vector<4x8xbf16>, vector<8x64xbf16>, vector<4x64xf32> -> vector<4x64xf32>
    %c0_68 = arith.constant 0 : index
    %c0_69 = arith.constant 0 : index
    %70 = vector.load %arg3[%c0_68, %c0_69] : memref<3x64xf32, #tpu.memory_space<vmem>>, vector<1x64xf32>
    %71 = vector.shape_cast %70 : vector<1x64xf32> to vector<64xf32>
    %72 = vector.shape_cast %71 : vector<64xf32> to vector<1x64xf32>
    %73 = vector.broadcast %72 : vector<1x64xf32> to vector<4x64xf32>
    %74 = arith.mulf %69, %73 : vector<4x64xf32>
    %c0_70 = arith.constant 0 : index
    %c0_71 = arith.constant 0 : index
    %75 = vector.load %arg6[%c0_70, %c0_71] : memref<4x64xf32, #tpu.memory_space<vmem>>, vector<4x64xf32>
    %76 = arith.addf %75, %74 : vector<4x64xf32>
    %c0_72 = arith.constant 0 : index
    %c0_73 = arith.constant 0 : index
    %77 = vector.load %arg6[%c0_72, %c0_73] : memref<4x64xf32, #tpu.memory_space<vmem>>, vector<4x64xf32>
    tpu.vector_store %arg6[%c0_72, %c0_73], %76 {strides = array<i32>} : memref<4x64xf32, #tpu.memory_space<vmem>>, vector<4x64xf32>,
    %c0_74 = arith.constant 0 : index
    %c17 = arith.constant 17 : index
    %78 = vector.load %arg5[%c0_74, %c17] : memref<8x82xbf16, #tpu.memory_space<vmem>>, vector<8x64xbf16>
    %c7 = arith.constant 7 : index
    %c0_75 = arith.constant 0 : index
    %c0_76 = arith.constant 0 : index
    %79 = vector.load %arg1[%c7, %c0_75, %c0_76] : memref<9x4x8xbf16, #tpu.memory_space<vmem>>, vector<1x4x8xbf16>
    %80 = vector.shape_cast %79 : vector<1x4x8xbf16> to vector<4x8xbf16>
    %cst_77 = arith.constant dense<0.000000e+00> : vector<4x64xf32>
    %81 = tpu.matmul %80, %78, %cst_77 {dimension_numbers = #tpu.dot_dimension_numbers<[1], [0], [0], [1], [0, 0, 1, 1], [], []>} : vector<4x8xbf16>, vector<8x64xbf16>, vector<4x64xf32> -> vector<4x64xf32>
    %c0_78 = arith.constant 0 : index
    %c0_79 = arith.constant 0 : index
    %82 = vector.load %arg6[%c0_78, %c0_79] : memref<4x64xf32, #tpu.memory_space<vmem>>, vector<4x64xf32>
    %83 = arith.addf %82, %81 : vector<4x64xf32>
    %c0_80 = arith.constant 0 : index
    %c0_81 = arith.constant 0 : index
    %84 = vector.load %arg6[%c0_80, %c0_81] : memref<4x64xf32, #tpu.memory_space<vmem>>, vector<4x64xf32>
    tpu.vector_store %arg6[%c0_80, %c0_81], %83 {strides = array<i32>} : memref<4x64xf32, #tpu.memory_space<vmem>>, vector<4x64xf32>,
    %c0_82 = arith.constant 0 : index
    %c18 = arith.constant 18 : index
    %85 = vector.load %arg5[%c0_82, %c18] : memref<8x82xbf16, #tpu.memory_space<vmem>>, vector<8x64xbf16>
    %c8_83 = arith.constant 8 : index
    %c0_84 = arith.constant 0 : index
    %c0_85 = arith.constant 0 : index
    %86 = vector.load %arg1[%c8_83, %c0_84, %c0_85] : memref<9x4x8xbf16, #tpu.memory_space<vmem>>, vector<1x4x8xbf16>
    %87 = vector.shape_cast %86 : vector<1x4x8xbf16> to vector<4x8xbf16>
    %cst_86 = arith.constant dense<0.000000e+00> : vector<4x64xf32>
    %88 = tpu.matmul %87, %85, %cst_86 {dimension_numbers = #tpu.dot_dimension_numbers<[1], [0], [0], [1], [0, 0, 1, 1], [], []>} : vector<4x8xbf16>, vector<8x64xbf16>, vector<4x64xf32> -> vector<4x64xf32>
    %c2_87 = arith.constant 2 : index
    %c0_88 = arith.constant 0 : index
    %89 = vector.load %arg3[%c2_87, %c0_88] : memref<3x64xf32, #tpu.memory_space<vmem>>, vector<1x64xf32>
    %90 = vector.shape_cast %89 : vector<1x64xf32> to vector<64xf32>
    %91 = vector.shape_cast %90 : vector<64xf32> to vector<1x64xf32>
    %92 = vector.broadcast %91 : vector<1x64xf32> to vector<4x64xf32>
    %93 = arith.mulf %88, %92 : vector<4x64xf32>
    %c0_89 = arith.constant 0 : index
    %c0_90 = arith.constant 0 : index
    %94 = vector.load %arg6[%c0_89, %c0_90] : memref<4x64xf32, #tpu.memory_space<vmem>>, vector<4x64xf32>
    %95 = arith.addf %94, %93 : vector<4x64xf32>
    %c0_91 = arith.constant 0 : index
    %c0_92 = arith.constant 0 : index
    %96 = vector.load %arg6[%c0_91, %c0_92] : memref<4x64xf32, #tpu.memory_space<vmem>>, vector<4x64xf32>
    tpu.vector_store %arg6[%c0_91, %c0_92], %95 {strides = array<i32>} : memref<4x64xf32, #tpu.memory_space<vmem>>, vector<4x64xf32>,
    %c0_93 = arith.constant 0 : index
    %c0_94 = arith.constant 0 : index
    %97 = vector.load %arg6[%c0_93, %c0_94] : memref<4x64xf32, #tpu.memory_space<vmem>>, vector<4x64xf32>
    %cst_95 = arith.constant dense<0.000000e+00> : vector<4xf32>
    %98 = vector.multi_reduction <add>, %97, %cst_95 [1] : vector<4x64xf32> to vector<4xf32>
    %99 = vector.shape_cast %98 : vector<4xf32> to vector<4x1xf32>
    %cst_96 = arith.constant 1.562500e-02 : f32
    %100 = vector.broadcast %cst_96 : f32 to vector<4x1xf32>
    %101 = arith.mulf %99, %100 : vector<4x1xf32>
    %102 = vector.broadcast %101 : vector<4x1xf32> to vector<4x64xf32>
    %103 = arith.subf %97, %102 : vector<4x64xf32>
    %104 = arith.mulf %103, %103 : vector<4x64xf32>
    %cst_97 = arith.constant dense<0.000000e+00> : vector<4xf32>
    %105 = vector.multi_reduction <add>, %104, %cst_97 [1] : vector<4x64xf32> to vector<4xf32>
    %106 = vector.shape_cast %105 : vector<4xf32> to vector<4x1xf32>
    %cst_98 = arith.constant 1.562500e-02 : f32
    %107 = vector.broadcast %cst_98 : f32 to vector<4x1xf32>
    %108 = arith.mulf %106, %107 : vector<4x1xf32>
    %cst_99 = arith.constant 9.99999974E-6 : f32
    %109 = vector.broadcast %cst_99 : f32 to vector<4x1xf32>
    %110 = arith.addf %108, %109 : vector<4x1xf32>
    %111 = math.rsqrt %110 : vector<4x1xf32>
    %112 = vector.broadcast %111 : vector<4x1xf32> to vector<4x64xf32>
    %113 = arith.mulf %103, %112 : vector<4x64xf32>
    %cst_100 = arith.constant 0.000000e+00 : f32
    %114 = vector.broadcast %cst_100 : f32 to vector<4x64xf32>
    %115 = arith.maximumf %113, %114 : vector<4x64xf32>
    %116 = arith.truncf %115 : vector<4x64xf32> to vector<4x64xbf16>
    %c0_101 = arith.constant 0 : index
    %c0_102 = arith.constant 0 : index
    %c0_103 = arith.constant 0 : index
    %117 = vector.load %arg4[%c0_101, %c0_102, %c0_103] : memref<1x4x64xbf16, #tpu.memory_space<vmem>>, vector<1x4x64xbf16>
    %118 = vector.shape_cast %117 : vector<1x4x64xbf16> to vector<4x64xbf16>
    %119 = vector.shape_cast %116 : vector<4x64xbf16> to vector<1x4x64xbf16>
    tpu.vector_store %arg4[%c0_101, %c0_102, %c0_103], %119 {strides = array<i32>} : memref<1x4x64xbf16, #tpu.memory_space<vmem>>, vector<1x4x64xbf16>,
    return
  }
  func.func @transform_0(%arg0: i32) -> (i32, i32, i32) {
    %c0_i32 = arith.constant 0 : i32
    %c0_i32_0 = arith.constant 0 : i32
    %c0_i32_1 = arith.constant 0 : i32
    %c0_i32_2 = arith.constant 0 : i32
    return %c0_i32, %c0_i32_0, %c0_i32_1 : i32, i32, i32
  }
  func.func @transform_1(%arg0: i32) -> (i32, i32, i32) {
    %c0_i32 = arith.constant 0 : i32
    %c0_i32_0 = arith.constant 0 : i32
    %c0_i32_1 = arith.constant 0 : i32
    return %arg0, %c0_i32, %c0_i32_0 : i32, i32, i32
  }
  func.func @transform_2(%arg0: i32) -> (i32, i32) {
    %c0_i32 = arith.constant 0 : i32
    %c0_i32_0 = arith.constant 0 : i32
    %c0_i32_1 = arith.constant 0 : i32
    return %c0_i32, %c0_i32_0 : i32, i32
  }
  func.func @transform_3(%arg0: i32) -> (i32, i32, i32) {
    %c0_i32 = arith.constant 0 : i32
    %c0_i32_0 = arith.constant 0 : i32
    %c0_i32_1 = arith.constant 0 : i32
    return %arg0, %c0_i32, %c0_i32_0 : i32, i32, i32
  }
}

module attributes {stable_mosaic.version = 11 : i64} {
  func.func @_shift_conv_in_relu_kernel(%arg0: i32, %arg1: memref<7x4x4xbf16, #tpu.memory_space<vmem>>, %arg2: memref<1x4x256xbf16, #tpu.memory_space<vmem>>, %arg3: memref<1x256xf32, #tpu.memory_space<vmem>>, %arg4: memref<1x4x256xbf16, #tpu.memory_space<vmem>>, %arg5: memref<1x4x256xf32, #tpu.memory_space<vmem>>, %arg6: memref<1x4x256xbf16, #tpu.memory_space<vmem>>, %arg7: memref<4x352xbf16, #tpu.memory_space<vmem>>, %arg8: memref<4x256xf32, #tpu.memory_space<vmem>>) attributes {dimension_semantics = [#tpu.dimension_semantics<parallel>], iteration_bounds = array<i64: 2>, scalar_prefetch = 0 : i64, scratch_operands = 2 : i64, tpu.core_type = #tpu.core_type<tc>, window_params = [{pipeline_mode = #tpu.pipeline_mode<synchronous>, transform_indices = @transform_0, window_bounds = array<i64: 7, 4, 4>}, {transform_indices = @transform_1, window_bounds = array<i64: 1, 4, 256>}, {pipeline_mode = #tpu.pipeline_mode<synchronous>, transform_indices = @transform_2, window_bounds = array<i64: 1, 256>}, {transform_indices = @transform_3, window_bounds = array<i64: 1, 4, 256>}, {transform_indices = @transform_4, window_bounds = array<i64: 1, 4, 256>}, {transform_indices = @transform_5, window_bounds = array<i64: 1, 4, 256>}]} {
    %cst = arith.constant 0.000000e+00 : bf16
    %0 = vector.broadcast %cst : bf16 to vector<4x352xbf16>
    %c0 = arith.constant 0 : index
    %c0_0 = arith.constant 0 : index
    %1 = vector.load %arg7[%c0, %c0_0] : memref<4x352xbf16, #tpu.memory_space<vmem>>, vector<4x352xbf16>
    tpu.vector_store %arg7[%c0, %c0_0], %0 {strides = array<i32>} : memref<4x352xbf16, #tpu.memory_space<vmem>>, vector<4x352xbf16>,
    %c0_1 = arith.constant 0 : index
    %c0_2 = arith.constant 0 : index
    %c0_3 = arith.constant 0 : index
    %2 = vector.load %arg2[%c0_1, %c0_2, %c0_3] : memref<1x4x256xbf16, #tpu.memory_space<vmem>>, vector<1x4x256xbf16>
    %3 = vector.shape_cast %2 : vector<1x4x256xbf16> to vector<4x256xbf16>
    %c0_4 = arith.constant 0 : index
    %c48 = arith.constant 48 : index
    %4 = vector.load %arg7[%c0_4, %c48] : memref<4x352xbf16, #tpu.memory_space<vmem>>, vector<4x256xbf16>
    tpu.vector_store %arg7[%c0_4, %c48], %3 {strides = array<i32>} : memref<4x352xbf16, #tpu.memory_space<vmem>>, vector<4x256xbf16>,
    %c0_5 = arith.constant 0 : index
    %c0_6 = arith.constant 0 : index
    %5 = vector.load %arg7[%c0_5, %c0_6] : memref<4x352xbf16, #tpu.memory_space<vmem>>, vector<4x256xbf16>
    %c0_7 = arith.constant 0 : index
    %c0_8 = arith.constant 0 : index
    %c0_9 = arith.constant 0 : index
    %6 = vector.load %arg1[%c0_7, %c0_8, %c0_9] : memref<7x4x4xbf16, #tpu.memory_space<vmem>>, vector<1x4x4xbf16>
    %7 = vector.shape_cast %6 : vector<1x4x4xbf16> to vector<4x4xbf16>
    %cst_10 = arith.constant dense<0.000000e+00> : vector<4x256xf32>
    %8 = tpu.matmul %7, %5, %cst_10 {dimension_numbers = #tpu.dot_dimension_numbers<[1], [0], [0], [1], [0, 0, 1, 1], [], []>} : vector<4x4xbf16>, vector<4x256xbf16>, vector<4x256xf32> -> vector<4x256xf32>
    %c0_11 = arith.constant 0 : index
    %c0_12 = arith.constant 0 : index
    %9 = vector.load %arg8[%c0_11, %c0_12] : memref<4x256xf32, #tpu.memory_space<vmem>>, vector<4x256xf32>
    tpu.vector_store %arg8[%c0_11, %c0_12], %8 {strides = array<i32>} : memref<4x256xf32, #tpu.memory_space<vmem>>, vector<4x256xf32>,
    %c0_13 = arith.constant 0 : index
    %c16 = arith.constant 16 : index
    %10 = vector.load %arg7[%c0_13, %c16] : memref<4x352xbf16, #tpu.memory_space<vmem>>, vector<4x256xbf16>
    %c1 = arith.constant 1 : index
    %c0_14 = arith.constant 0 : index
    %c0_15 = arith.constant 0 : index
    %11 = vector.load %arg1[%c1, %c0_14, %c0_15] : memref<7x4x4xbf16, #tpu.memory_space<vmem>>, vector<1x4x4xbf16>
    %12 = vector.shape_cast %11 : vector<1x4x4xbf16> to vector<4x4xbf16>
    %cst_16 = arith.constant dense<0.000000e+00> : vector<4x256xf32>
    %13 = tpu.matmul %12, %10, %cst_16 {dimension_numbers = #tpu.dot_dimension_numbers<[1], [0], [0], [1], [0, 0, 1, 1], [], []>} : vector<4x4xbf16>, vector<4x256xbf16>, vector<4x256xf32> -> vector<4x256xf32>
    %c0_17 = arith.constant 0 : index
    %c0_18 = arith.constant 0 : index
    %14 = vector.load %arg8[%c0_17, %c0_18] : memref<4x256xf32, #tpu.memory_space<vmem>>, vector<4x256xf32>
    %15 = arith.addf %14, %13 : vector<4x256xf32>
    %c0_19 = arith.constant 0 : index
    %c0_20 = arith.constant 0 : index
    %16 = vector.load %arg8[%c0_19, %c0_20] : memref<4x256xf32, #tpu.memory_space<vmem>>, vector<4x256xf32>
    tpu.vector_store %arg8[%c0_19, %c0_20], %15 {strides = array<i32>} : memref<4x256xf32, #tpu.memory_space<vmem>>, vector<4x256xf32>,
    %c0_21 = arith.constant 0 : index
    %c32 = arith.constant 32 : index
    %17 = vector.load %arg7[%c0_21, %c32] : memref<4x352xbf16, #tpu.memory_space<vmem>>, vector<4x256xbf16>
    %c2 = arith.constant 2 : index
    %c0_22 = arith.constant 0 : index
    %c0_23 = arith.constant 0 : index
    %18 = vector.load %arg1[%c2, %c0_22, %c0_23] : memref<7x4x4xbf16, #tpu.memory_space<vmem>>, vector<1x4x4xbf16>
    %19 = vector.shape_cast %18 : vector<1x4x4xbf16> to vector<4x4xbf16>
    %cst_24 = arith.constant dense<0.000000e+00> : vector<4x256xf32>
    %20 = tpu.matmul %19, %17, %cst_24 {dimension_numbers = #tpu.dot_dimension_numbers<[1], [0], [0], [1], [0, 0, 1, 1], [], []>} : vector<4x4xbf16>, vector<4x256xbf16>, vector<4x256xf32> -> vector<4x256xf32>
    %c0_25 = arith.constant 0 : index
    %c0_26 = arith.constant 0 : index
    %21 = vector.load %arg8[%c0_25, %c0_26] : memref<4x256xf32, #tpu.memory_space<vmem>>, vector<4x256xf32>
    %22 = arith.addf %21, %20 : vector<4x256xf32>
    %c0_27 = arith.constant 0 : index
    %c0_28 = arith.constant 0 : index
    %23 = vector.load %arg8[%c0_27, %c0_28] : memref<4x256xf32, #tpu.memory_space<vmem>>, vector<4x256xf32>
    tpu.vector_store %arg8[%c0_27, %c0_28], %22 {strides = array<i32>} : memref<4x256xf32, #tpu.memory_space<vmem>>, vector<4x256xf32>,
    %c0_29 = arith.constant 0 : index
    %c48_30 = arith.constant 48 : index
    %24 = vector.load %arg7[%c0_29, %c48_30] : memref<4x352xbf16, #tpu.memory_space<vmem>>, vector<4x256xbf16>
    %c3 = arith.constant 3 : index
    %c0_31 = arith.constant 0 : index
    %c0_32 = arith.constant 0 : index
    %25 = vector.load %arg1[%c3, %c0_31, %c0_32] : memref<7x4x4xbf16, #tpu.memory_space<vmem>>, vector<1x4x4xbf16>
    %26 = vector.shape_cast %25 : vector<1x4x4xbf16> to vector<4x4xbf16>
    %cst_33 = arith.constant dense<0.000000e+00> : vector<4x256xf32>
    %27 = tpu.matmul %26, %24, %cst_33 {dimension_numbers = #tpu.dot_dimension_numbers<[1], [0], [0], [1], [0, 0, 1, 1], [], []>} : vector<4x4xbf16>, vector<4x256xbf16>, vector<4x256xf32> -> vector<4x256xf32>
    %c0_34 = arith.constant 0 : index
    %c0_35 = arith.constant 0 : index
    %28 = vector.load %arg8[%c0_34, %c0_35] : memref<4x256xf32, #tpu.memory_space<vmem>>, vector<4x256xf32>
    %29 = arith.addf %28, %27 : vector<4x256xf32>
    %c0_36 = arith.constant 0 : index
    %c0_37 = arith.constant 0 : index
    %30 = vector.load %arg8[%c0_36, %c0_37] : memref<4x256xf32, #tpu.memory_space<vmem>>, vector<4x256xf32>
    tpu.vector_store %arg8[%c0_36, %c0_37], %29 {strides = array<i32>} : memref<4x256xf32, #tpu.memory_space<vmem>>, vector<4x256xf32>,
    %c0_38 = arith.constant 0 : index
    %c64 = arith.constant 64 : index
    %31 = vector.load %arg7[%c0_38, %c64] : memref<4x352xbf16, #tpu.memory_space<vmem>>, vector<4x256xbf16>
    %c4 = arith.constant 4 : index
    %c0_39 = arith.constant 0 : index
    %c0_40 = arith.constant 0 : index
    %32 = vector.load %arg1[%c4, %c0_39, %c0_40] : memref<7x4x4xbf16, #tpu.memory_space<vmem>>, vector<1x4x4xbf16>
    %33 = vector.shape_cast %32 : vector<1x4x4xbf16> to vector<4x4xbf16>
    %cst_41 = arith.constant dense<0.000000e+00> : vector<4x256xf32>
    %34 = tpu.matmul %33, %31, %cst_41 {dimension_numbers = #tpu.dot_dimension_numbers<[1], [0], [0], [1], [0, 0, 1, 1], [], []>} : vector<4x4xbf16>, vector<4x256xbf16>, vector<4x256xf32> -> vector<4x256xf32>
    %c0_42 = arith.constant 0 : index
    %c0_43 = arith.constant 0 : index
    %35 = vector.load %arg8[%c0_42, %c0_43] : memref<4x256xf32, #tpu.memory_space<vmem>>, vector<4x256xf32>
    %36 = arith.addf %35, %34 : vector<4x256xf32>
    %c0_44 = arith.constant 0 : index
    %c0_45 = arith.constant 0 : index
    %37 = vector.load %arg8[%c0_44, %c0_45] : memref<4x256xf32, #tpu.memory_space<vmem>>, vector<4x256xf32>
    tpu.vector_store %arg8[%c0_44, %c0_45], %36 {strides = array<i32>} : memref<4x256xf32, #tpu.memory_space<vmem>>, vector<4x256xf32>,
    %c0_46 = arith.constant 0 : index
    %c80 = arith.constant 80 : index
    %38 = vector.load %arg7[%c0_46, %c80] : memref<4x352xbf16, #tpu.memory_space<vmem>>, vector<4x256xbf16>
    %c5 = arith.constant 5 : index
    %c0_47 = arith.constant 0 : index
    %c0_48 = arith.constant 0 : index
    %39 = vector.load %arg1[%c5, %c0_47, %c0_48] : memref<7x4x4xbf16, #tpu.memory_space<vmem>>, vector<1x4x4xbf16>
    %40 = vector.shape_cast %39 : vector<1x4x4xbf16> to vector<4x4xbf16>
    %cst_49 = arith.constant dense<0.000000e+00> : vector<4x256xf32>
    %41 = tpu.matmul %40, %38, %cst_49 {dimension_numbers = #tpu.dot_dimension_numbers<[1], [0], [0], [1], [0, 0, 1, 1], [], []>} : vector<4x4xbf16>, vector<4x256xbf16>, vector<4x256xf32> -> vector<4x256xf32>
    %c0_50 = arith.constant 0 : index
    %c0_51 = arith.constant 0 : index
    %42 = vector.load %arg8[%c0_50, %c0_51] : memref<4x256xf32, #tpu.memory_space<vmem>>, vector<4x256xf32>
    %43 = arith.addf %42, %41 : vector<4x256xf32>
    %c0_52 = arith.constant 0 : index
    %c0_53 = arith.constant 0 : index
    %44 = vector.load %arg8[%c0_52, %c0_53] : memref<4x256xf32, #tpu.memory_space<vmem>>, vector<4x256xf32>
    tpu.vector_store %arg8[%c0_52, %c0_53], %43 {strides = array<i32>} : memref<4x256xf32, #tpu.memory_space<vmem>>, vector<4x256xf32>,
    %c0_54 = arith.constant 0 : index
    %c96 = arith.constant 96 : index
    %45 = vector.load %arg7[%c0_54, %c96] : memref<4x352xbf16, #tpu.memory_space<vmem>>, vector<4x256xbf16>
    %c6 = arith.constant 6 : index
    %c0_55 = arith.constant 0 : index
    %c0_56 = arith.constant 0 : index
    %46 = vector.load %arg1[%c6, %c0_55, %c0_56] : memref<7x4x4xbf16, #tpu.memory_space<vmem>>, vector<1x4x4xbf16>
    %47 = vector.shape_cast %46 : vector<1x4x4xbf16> to vector<4x4xbf16>
    %cst_57 = arith.constant dense<0.000000e+00> : vector<4x256xf32>
    %48 = tpu.matmul %47, %45, %cst_57 {dimension_numbers = #tpu.dot_dimension_numbers<[1], [0], [0], [1], [0, 0, 1, 1], [], []>} : vector<4x4xbf16>, vector<4x256xbf16>, vector<4x256xf32> -> vector<4x256xf32>
    %c0_58 = arith.constant 0 : index
    %c0_59 = arith.constant 0 : index
    %49 = vector.load %arg8[%c0_58, %c0_59] : memref<4x256xf32, #tpu.memory_space<vmem>>, vector<4x256xf32>
    %50 = arith.addf %49, %48 : vector<4x256xf32>
    %c0_60 = arith.constant 0 : index
    %c0_61 = arith.constant 0 : index
    %51 = vector.load %arg8[%c0_60, %c0_61] : memref<4x256xf32, #tpu.memory_space<vmem>>, vector<4x256xf32>
    tpu.vector_store %arg8[%c0_60, %c0_61], %50 {strides = array<i32>} : memref<4x256xf32, #tpu.memory_space<vmem>>, vector<4x256xf32>,
    %c0_62 = arith.constant 0 : index
    %c0_63 = arith.constant 0 : index
    %52 = vector.load %arg8[%c0_62, %c0_63] : memref<4x256xf32, #tpu.memory_space<vmem>>, vector<4x256xf32>
    %cst_64 = arith.constant dense<0.000000e+00> : vector<4xf32>
    %53 = vector.multi_reduction <add>, %52, %cst_64 [1] : vector<4x256xf32> to vector<4xf32>
    %54 = vector.shape_cast %53 : vector<4xf32> to vector<4x1xf32>
    %cst_65 = arith.constant 3.906250e-03 : f32
    %55 = vector.broadcast %cst_65 : f32 to vector<4x1xf32>
    %56 = arith.mulf %54, %55 : vector<4x1xf32>
    %57 = vector.broadcast %56 : vector<4x1xf32> to vector<4x256xf32>
    %58 = arith.subf %52, %57 : vector<4x256xf32>
    %59 = arith.mulf %58, %58 : vector<4x256xf32>
    %cst_66 = arith.constant dense<0.000000e+00> : vector<4xf32>
    %60 = vector.multi_reduction <add>, %59, %cst_66 [1] : vector<4x256xf32> to vector<4xf32>
    %61 = vector.shape_cast %60 : vector<4xf32> to vector<4x1xf32>
    %cst_67 = arith.constant 3.906250e-03 : f32
    %62 = vector.broadcast %cst_67 : f32 to vector<4x1xf32>
    %63 = arith.mulf %61, %62 : vector<4x1xf32>
    %cst_68 = arith.constant 9.99999974E-6 : f32
    %64 = vector.broadcast %cst_68 : f32 to vector<4x1xf32>
    %65 = arith.addf %63, %64 : vector<4x1xf32>
    %66 = math.rsqrt %65 : vector<4x1xf32>
    %67 = vector.broadcast %66 : vector<4x1xf32> to vector<4x256xf32>
    %68 = arith.mulf %58, %67 : vector<4x256xf32>
    %cst_69 = arith.constant 0.000000e+00 : f32
    %69 = vector.broadcast %cst_69 : f32 to vector<4x256xf32>
    %70 = arith.maximumf %68, %69 : vector<4x256xf32>
    %c0_70 = arith.constant 0 : index
    %c0_71 = arith.constant 0 : index
    %c0_72 = arith.constant 0 : index
    %71 = vector.load %arg4[%c0_70, %c0_71, %c0_72] : memref<1x4x256xbf16, #tpu.memory_space<vmem>>, vector<1x4x256xbf16>
    %72 = vector.shape_cast %71 : vector<1x4x256xbf16> to vector<4x256xbf16>
    %73 = arith.extf %72 : vector<4x256xbf16> to vector<4x256xf32>
    %74 = arith.addf %70, %73 : vector<4x256xf32>
    %c0_73 = arith.constant 0 : index
    %c0_74 = arith.constant 0 : index
    %c0_75 = arith.constant 0 : index
    %75 = vector.load %arg5[%c0_73, %c0_74, %c0_75] : memref<1x4x256xf32, #tpu.memory_space<vmem>>, vector<1x4x256xf32>
    %76 = vector.shape_cast %75 : vector<1x4x256xf32> to vector<4x256xf32>
    %77 = arith.addf %74, %76 : vector<4x256xf32>
    %78 = arith.truncf %77 : vector<4x256xf32> to vector<4x256xbf16>
    %c0_76 = arith.constant 0 : index
    %c0_77 = arith.constant 0 : index
    %c0_78 = arith.constant 0 : index
    %79 = vector.load %arg6[%c0_76, %c0_77, %c0_78] : memref<1x4x256xbf16, #tpu.memory_space<vmem>>, vector<1x4x256xbf16>
    %80 = vector.shape_cast %79 : vector<1x4x256xbf16> to vector<4x256xbf16>
    %81 = vector.shape_cast %78 : vector<4x256xbf16> to vector<1x4x256xbf16>
    tpu.vector_store %arg6[%c0_76, %c0_77, %c0_78], %81 {strides = array<i32>} : memref<1x4x256xbf16, #tpu.memory_space<vmem>>, vector<1x4x256xbf16>,
    return
  }
  func.func @transform_0(%arg0: i32) -> (i32, i32, i32) {
    %c0_i32 = arith.constant 0 : i32
    %c0_i32_0 = arith.constant 0 : i32
    %c0_i32_1 = arith.constant 0 : i32
    %c0_i32_2 = arith.constant 0 : i32
    return %c0_i32, %c0_i32_0, %c0_i32_1 : i32, i32, i32
  }
  func.func @transform_1(%arg0: i32) -> (i32, i32, i32) {
    %c0_i32 = arith.constant 0 : i32
    %c0_i32_0 = arith.constant 0 : i32
    %c0_i32_1 = arith.constant 0 : i32
    return %arg0, %c0_i32, %c0_i32_0 : i32, i32, i32
  }
  func.func @transform_2(%arg0: i32) -> (i32, i32) {
    %c0_i32 = arith.constant 0 : i32
    %c0_i32_0 = arith.constant 0 : i32
    %c0_i32_1 = arith.constant 0 : i32
    return %c0_i32, %c0_i32_0 : i32, i32
  }
  func.func @transform_3(%arg0: i32) -> (i32, i32, i32) {
    %c0_i32 = arith.constant 0 : i32
    %c0_i32_0 = arith.constant 0 : i32
    %c0_i32_1 = arith.constant 0 : i32
    return %arg0, %c0_i32, %c0_i32_0 : i32, i32, i32
  }
  func.func @transform_4(%arg0: i32) -> (i32, i32, i32) {
    %c0_i32 = arith.constant 0 : i32
    %c0_i32_0 = arith.constant 0 : i32
    %c0_i32_1 = arith.constant 0 : i32
    return %arg0, %c0_i32, %c0_i32_0 : i32, i32, i32
  }
  func.func @transform_5(%arg0: i32) -> (i32, i32, i32) {
    %c0_i32 = arith.constant 0 : i32
    %c0_i32_0 = arith.constant 0 : i32
    %c0_i32_1 = arith.constant 0 : i32
    return %arg0, %c0_i32, %c0_i32_0 : i32, i32, i32
  }
}

module attributes {stable_mosaic.version = 11 : i64} {
  func.func @_upsample_mul_kernel(%arg0: i32, %arg1: memref<16x8xbf16, #tpu.memory_space<vmem>>, %arg2: memref<8x16xbf16, #tpu.memory_space<vmem>>, %arg3: memref<1x4x8x8xbf16, #tpu.memory_space<vmem>>, %arg4: memref<1x4x16x16xf32, #tpu.memory_space<vmem>>, %arg5: memref<1x4x16x16xbf16, #tpu.memory_space<vmem>>) attributes {dimension_semantics = [#tpu.dimension_semantics<parallel>], iteration_bounds = array<i64: 2>, scalar_prefetch = 0 : i64, scratch_operands = 0 : i64, tpu.core_type = #tpu.core_type<tc>, window_params = [{pipeline_mode = #tpu.pipeline_mode<synchronous>, transform_indices = @transform_0, window_bounds = array<i64: 16, 8>}, {pipeline_mode = #tpu.pipeline_mode<synchronous>, transform_indices = @transform_1, window_bounds = array<i64: 8, 16>}, {transform_indices = @transform_2, window_bounds = array<i64: 1, 4, 8, 8>}, {transform_indices = @transform_3, window_bounds = array<i64: 1, 4, 16, 16>}, {transform_indices = @transform_4, window_bounds = array<i64: 1, 4, 16, 16>}]} {
    %c0 = arith.constant 0 : index
    %c0_0 = arith.constant 0 : index
    %c0_1 = arith.constant 0 : index
    %c0_2 = arith.constant 0 : index
    %0 = vector.load %arg3[%c0, %c0_0, %c0_1, %c0_2] : memref<1x4x8x8xbf16, #tpu.memory_space<vmem>>, vector<1x4x8x8xbf16>
    %1 = vector.shape_cast %0 : vector<1x4x8x8xbf16> to vector<4x8x8xbf16>
    %c0_3 = arith.constant 0 : index
    %c0_4 = arith.constant 0 : index
    %2 = vector.load %arg2[%c0_3, %c0_4] : memref<8x16xbf16, #tpu.memory_space<vmem>>, vector<8x16xbf16>
    %cst = arith.constant dense<0.000000e+00> : vector<4x8x16xf32>
    %3 = tpu.matmul %1, %2, %cst {dimension_numbers = #tpu.dot_dimension_numbers<[2], [0], [0, 1], [1], [0, 0, 0, 1, 1, 1], [], []>} : vector<4x8x8xbf16>, vector<8x16xbf16>, vector<4x8x16xf32> -> vector<4x8x16xf32>
    %4 = tpu.transpose %3, [0, 2, 1] : vector<4x8x16xf32> -> vector<4x16x8xf32>
    %5 = arith.truncf %4 : vector<4x16x8xf32> to vector<4x16x8xbf16>
    %c0_5 = arith.constant 0 : index
    %c0_6 = arith.constant 0 : index
    %6 = vector.load %arg1[%c0_5, %c0_6] : memref<16x8xbf16, #tpu.memory_space<vmem>>, vector<16x8xbf16>
    %7 = vector.shape_cast %6 : vector<16x8xbf16> to vector<1x16x8xbf16>
    %8 = vector.shape_cast %7 : vector<1x16x8xbf16> to vector<1x16x8xbf16>
    %9 = vector.broadcast %8 : vector<1x16x8xbf16> to vector<4x16x8xbf16>
    %cst_7 = arith.constant dense<0.000000e+00> : vector<4x16x16xf32>
    %10 = tpu.matmul %9, %5, %cst_7 {dimension_numbers = #tpu.dot_dimension_numbers<[2], [2], [1], [1], [0, 0, 0, 1, 1, 1], [0], [0]>} : vector<4x16x8xbf16>, vector<4x16x8xbf16>, vector<4x16x16xf32> -> vector<4x16x16xf32>
    %c0_8 = arith.constant 0 : index
    %c0_9 = arith.constant 0 : index
    %c0_10 = arith.constant 0 : index
    %c0_11 = arith.constant 0 : index
    %11 = vector.load %arg4[%c0_8, %c0_9, %c0_10, %c0_11] : memref<1x4x16x16xf32, #tpu.memory_space<vmem>>, vector<1x4x16x16xf32>
    %12 = vector.shape_cast %11 : vector<1x4x16x16xf32> to vector<4x16x16xf32>
    %13 = arith.mulf %10, %12 : vector<4x16x16xf32>
    %14 = arith.truncf %13 : vector<4x16x16xf32> to vector<4x16x16xbf16>
    %c0_12 = arith.constant 0 : index
    %c0_13 = arith.constant 0 : index
    %c0_14 = arith.constant 0 : index
    %c0_15 = arith.constant 0 : index
    %15 = vector.load %arg5[%c0_12, %c0_13, %c0_14, %c0_15] : memref<1x4x16x16xbf16, #tpu.memory_space<vmem>>, vector<1x4x16x16xbf16>
    %16 = vector.shape_cast %15 : vector<1x4x16x16xbf16> to vector<4x16x16xbf16>
    %17 = vector.shape_cast %14 : vector<4x16x16xbf16> to vector<1x4x16x16xbf16>
    tpu.vector_store %arg5[%c0_12, %c0_13, %c0_14, %c0_15], %17 {strides = array<i32>} : memref<1x4x16x16xbf16, #tpu.memory_space<vmem>>, vector<1x4x16x16xbf16>,
    return
  }
  func.func @transform_0(%arg0: i32) -> (i32, i32) {
    %c0_i32 = arith.constant 0 : i32
    %c0_i32_0 = arith.constant 0 : i32
    %c0_i32_1 = arith.constant 0 : i32
    return %c0_i32, %c0_i32_0 : i32, i32
  }
  func.func @transform_1(%arg0: i32) -> (i32, i32) {
    %c0_i32 = arith.constant 0 : i32
    %c0_i32_0 = arith.constant 0 : i32
    %c0_i32_1 = arith.constant 0 : i32
    return %c0_i32, %c0_i32_0 : i32, i32
  }
  func.func @transform_2(%arg0: i32) -> (i32, i32, i32, i32) {
    %c0_i32 = arith.constant 0 : i32
    %c0_i32_0 = arith.constant 0 : i32
    %c0_i32_1 = arith.constant 0 : i32
    %c0_i32_2 = arith.constant 0 : i32
    return %arg0, %c0_i32, %c0_i32_0, %c0_i32_1 : i32, i32, i32, i32
  }
  func.func @transform_3(%arg0: i32) -> (i32, i32, i32, i32) {
    %c0_i32 = arith.constant 0 : i32
    %c0_i32_0 = arith.constant 0 : i32
    %c0_i32_1 = arith.constant 0 : i32
    %c0_i32_2 = arith.constant 0 : i32
    return %arg0, %c0_i32, %c0_i32_0, %c0_i32_1 : i32, i32, i32, i32
  }
  func.func @transform_4(%arg0: i32) -> (i32, i32, i32, i32) {
    %c0_i32 = arith.constant 0 : i32
    %c0_i32_0 = arith.constant 0 : i32
    %c0_i32_1 = arith.constant 0 : i32
    %c0_i32_2 = arith.constant 0 : i32
    return %arg0, %c0_i32, %c0_i32_0, %c0_i32_1 : i32, i32, i32, i32
  }
}

module attributes {stable_mosaic.version = 11 : i64} {
  func.func @_shift_conv_in_relu_kernel(%arg0: i32, %arg1: memref<7x4x4xbf16, #tpu.memory_space<vmem>>, %arg2: memref<1x4x256xbf16, #tpu.memory_space<vmem>>, %arg3: memref<1x256xf32, #tpu.memory_space<vmem>>, %arg4: memref<1x4x256xbf16, #tpu.memory_space<vmem>>, %arg5: memref<4x352xbf16, #tpu.memory_space<vmem>>, %arg6: memref<4x256xf32, #tpu.memory_space<vmem>>) attributes {dimension_semantics = [#tpu.dimension_semantics<parallel>], iteration_bounds = array<i64: 2>, scalar_prefetch = 0 : i64, scratch_operands = 2 : i64, tpu.core_type = #tpu.core_type<tc>, window_params = [{pipeline_mode = #tpu.pipeline_mode<synchronous>, transform_indices = @transform_0, window_bounds = array<i64: 7, 4, 4>}, {transform_indices = @transform_1, window_bounds = array<i64: 1, 4, 256>}, {pipeline_mode = #tpu.pipeline_mode<synchronous>, transform_indices = @transform_2, window_bounds = array<i64: 1, 256>}, {transform_indices = @transform_3, window_bounds = array<i64: 1, 4, 256>}]} {
    %cst = arith.constant 0.000000e+00 : bf16
    %0 = vector.broadcast %cst : bf16 to vector<4x352xbf16>
    %c0 = arith.constant 0 : index
    %c0_0 = arith.constant 0 : index
    %1 = vector.load %arg5[%c0, %c0_0] : memref<4x352xbf16, #tpu.memory_space<vmem>>, vector<4x352xbf16>
    tpu.vector_store %arg5[%c0, %c0_0], %0 {strides = array<i32>} : memref<4x352xbf16, #tpu.memory_space<vmem>>, vector<4x352xbf16>,
    %c0_1 = arith.constant 0 : index
    %c0_2 = arith.constant 0 : index
    %c0_3 = arith.constant 0 : index
    %2 = vector.load %arg2[%c0_1, %c0_2, %c0_3] : memref<1x4x256xbf16, #tpu.memory_space<vmem>>, vector<1x4x256xbf16>
    %3 = vector.shape_cast %2 : vector<1x4x256xbf16> to vector<4x256xbf16>
    %c0_4 = arith.constant 0 : index
    %c48 = arith.constant 48 : index
    %4 = vector.load %arg5[%c0_4, %c48] : memref<4x352xbf16, #tpu.memory_space<vmem>>, vector<4x256xbf16>
    tpu.vector_store %arg5[%c0_4, %c48], %3 {strides = array<i32>} : memref<4x352xbf16, #tpu.memory_space<vmem>>, vector<4x256xbf16>,
    %c0_5 = arith.constant 0 : index
    %c0_6 = arith.constant 0 : index
    %5 = vector.load %arg5[%c0_5, %c0_6] : memref<4x352xbf16, #tpu.memory_space<vmem>>, vector<4x256xbf16>
    %c0_7 = arith.constant 0 : index
    %c0_8 = arith.constant 0 : index
    %c0_9 = arith.constant 0 : index
    %6 = vector.load %arg1[%c0_7, %c0_8, %c0_9] : memref<7x4x4xbf16, #tpu.memory_space<vmem>>, vector<1x4x4xbf16>
    %7 = vector.shape_cast %6 : vector<1x4x4xbf16> to vector<4x4xbf16>
    %cst_10 = arith.constant dense<0.000000e+00> : vector<4x256xf32>
    %8 = tpu.matmul %7, %5, %cst_10 {dimension_numbers = #tpu.dot_dimension_numbers<[1], [0], [0], [1], [0, 0, 1, 1], [], []>} : vector<4x4xbf16>, vector<4x256xbf16>, vector<4x256xf32> -> vector<4x256xf32>
    %c0_11 = arith.constant 0 : index
    %c0_12 = arith.constant 0 : index
    %9 = vector.load %arg6[%c0_11, %c0_12] : memref<4x256xf32, #tpu.memory_space<vmem>>, vector<4x256xf32>
    tpu.vector_store %arg6[%c0_11, %c0_12], %8 {strides = array<i32>} : memref<4x256xf32, #tpu.memory_space<vmem>>, vector<4x256xf32>,
    %c0_13 = arith.constant 0 : index
    %c16 = arith.constant 16 : index
    %10 = vector.load %arg5[%c0_13, %c16] : memref<4x352xbf16, #tpu.memory_space<vmem>>, vector<4x256xbf16>
    %c1 = arith.constant 1 : index
    %c0_14 = arith.constant 0 : index
    %c0_15 = arith.constant 0 : index
    %11 = vector.load %arg1[%c1, %c0_14, %c0_15] : memref<7x4x4xbf16, #tpu.memory_space<vmem>>, vector<1x4x4xbf16>
    %12 = vector.shape_cast %11 : vector<1x4x4xbf16> to vector<4x4xbf16>
    %cst_16 = arith.constant dense<0.000000e+00> : vector<4x256xf32>
    %13 = tpu.matmul %12, %10, %cst_16 {dimension_numbers = #tpu.dot_dimension_numbers<[1], [0], [0], [1], [0, 0, 1, 1], [], []>} : vector<4x4xbf16>, vector<4x256xbf16>, vector<4x256xf32> -> vector<4x256xf32>
    %c0_17 = arith.constant 0 : index
    %c0_18 = arith.constant 0 : index
    %14 = vector.load %arg6[%c0_17, %c0_18] : memref<4x256xf32, #tpu.memory_space<vmem>>, vector<4x256xf32>
    %15 = arith.addf %14, %13 : vector<4x256xf32>
    %c0_19 = arith.constant 0 : index
    %c0_20 = arith.constant 0 : index
    %16 = vector.load %arg6[%c0_19, %c0_20] : memref<4x256xf32, #tpu.memory_space<vmem>>, vector<4x256xf32>
    tpu.vector_store %arg6[%c0_19, %c0_20], %15 {strides = array<i32>} : memref<4x256xf32, #tpu.memory_space<vmem>>, vector<4x256xf32>,
    %c0_21 = arith.constant 0 : index
    %c32 = arith.constant 32 : index
    %17 = vector.load %arg5[%c0_21, %c32] : memref<4x352xbf16, #tpu.memory_space<vmem>>, vector<4x256xbf16>
    %c2 = arith.constant 2 : index
    %c0_22 = arith.constant 0 : index
    %c0_23 = arith.constant 0 : index
    %18 = vector.load %arg1[%c2, %c0_22, %c0_23] : memref<7x4x4xbf16, #tpu.memory_space<vmem>>, vector<1x4x4xbf16>
    %19 = vector.shape_cast %18 : vector<1x4x4xbf16> to vector<4x4xbf16>
    %cst_24 = arith.constant dense<0.000000e+00> : vector<4x256xf32>
    %20 = tpu.matmul %19, %17, %cst_24 {dimension_numbers = #tpu.dot_dimension_numbers<[1], [0], [0], [1], [0, 0, 1, 1], [], []>} : vector<4x4xbf16>, vector<4x256xbf16>, vector<4x256xf32> -> vector<4x256xf32>
    %c0_25 = arith.constant 0 : index
    %c0_26 = arith.constant 0 : index
    %21 = vector.load %arg6[%c0_25, %c0_26] : memref<4x256xf32, #tpu.memory_space<vmem>>, vector<4x256xf32>
    %22 = arith.addf %21, %20 : vector<4x256xf32>
    %c0_27 = arith.constant 0 : index
    %c0_28 = arith.constant 0 : index
    %23 = vector.load %arg6[%c0_27, %c0_28] : memref<4x256xf32, #tpu.memory_space<vmem>>, vector<4x256xf32>
    tpu.vector_store %arg6[%c0_27, %c0_28], %22 {strides = array<i32>} : memref<4x256xf32, #tpu.memory_space<vmem>>, vector<4x256xf32>,
    %c0_29 = arith.constant 0 : index
    %c48_30 = arith.constant 48 : index
    %24 = vector.load %arg5[%c0_29, %c48_30] : memref<4x352xbf16, #tpu.memory_space<vmem>>, vector<4x256xbf16>
    %c3 = arith.constant 3 : index
    %c0_31 = arith.constant 0 : index
    %c0_32 = arith.constant 0 : index
    %25 = vector.load %arg1[%c3, %c0_31, %c0_32] : memref<7x4x4xbf16, #tpu.memory_space<vmem>>, vector<1x4x4xbf16>
    %26 = vector.shape_cast %25 : vector<1x4x4xbf16> to vector<4x4xbf16>
    %cst_33 = arith.constant dense<0.000000e+00> : vector<4x256xf32>
    %27 = tpu.matmul %26, %24, %cst_33 {dimension_numbers = #tpu.dot_dimension_numbers<[1], [0], [0], [1], [0, 0, 1, 1], [], []>} : vector<4x4xbf16>, vector<4x256xbf16>, vector<4x256xf32> -> vector<4x256xf32>
    %c0_34 = arith.constant 0 : index
    %c0_35 = arith.constant 0 : index
    %28 = vector.load %arg6[%c0_34, %c0_35] : memref<4x256xf32, #tpu.memory_space<vmem>>, vector<4x256xf32>
    %29 = arith.addf %28, %27 : vector<4x256xf32>
    %c0_36 = arith.constant 0 : index
    %c0_37 = arith.constant 0 : index
    %30 = vector.load %arg6[%c0_36, %c0_37] : memref<4x256xf32, #tpu.memory_space<vmem>>, vector<4x256xf32>
    tpu.vector_store %arg6[%c0_36, %c0_37], %29 {strides = array<i32>} : memref<4x256xf32, #tpu.memory_space<vmem>>, vector<4x256xf32>,
    %c0_38 = arith.constant 0 : index
    %c64 = arith.constant 64 : index
    %31 = vector.load %arg5[%c0_38, %c64] : memref<4x352xbf16, #tpu.memory_space<vmem>>, vector<4x256xbf16>
    %c4 = arith.constant 4 : index
    %c0_39 = arith.constant 0 : index
    %c0_40 = arith.constant 0 : index
    %32 = vector.load %arg1[%c4, %c0_39, %c0_40] : memref<7x4x4xbf16, #tpu.memory_space<vmem>>, vector<1x4x4xbf16>
    %33 = vector.shape_cast %32 : vector<1x4x4xbf16> to vector<4x4xbf16>
    %cst_41 = arith.constant dense<0.000000e+00> : vector<4x256xf32>
    %34 = tpu.matmul %33, %31, %cst_41 {dimension_numbers = #tpu.dot_dimension_numbers<[1], [0], [0], [1], [0, 0, 1, 1], [], []>} : vector<4x4xbf16>, vector<4x256xbf16>, vector<4x256xf32> -> vector<4x256xf32>
    %c0_42 = arith.constant 0 : index
    %c0_43 = arith.constant 0 : index
    %35 = vector.load %arg6[%c0_42, %c0_43] : memref<4x256xf32, #tpu.memory_space<vmem>>, vector<4x256xf32>
    %36 = arith.addf %35, %34 : vector<4x256xf32>
    %c0_44 = arith.constant 0 : index
    %c0_45 = arith.constant 0 : index
    %37 = vector.load %arg6[%c0_44, %c0_45] : memref<4x256xf32, #tpu.memory_space<vmem>>, vector<4x256xf32>
    tpu.vector_store %arg6[%c0_44, %c0_45], %36 {strides = array<i32>} : memref<4x256xf32, #tpu.memory_space<vmem>>, vector<4x256xf32>,
    %c0_46 = arith.constant 0 : index
    %c80 = arith.constant 80 : index
    %38 = vector.load %arg5[%c0_46, %c80] : memref<4x352xbf16, #tpu.memory_space<vmem>>, vector<4x256xbf16>
    %c5 = arith.constant 5 : index
    %c0_47 = arith.constant 0 : index
    %c0_48 = arith.constant 0 : index
    %39 = vector.load %arg1[%c5, %c0_47, %c0_48] : memref<7x4x4xbf16, #tpu.memory_space<vmem>>, vector<1x4x4xbf16>
    %40 = vector.shape_cast %39 : vector<1x4x4xbf16> to vector<4x4xbf16>
    %cst_49 = arith.constant dense<0.000000e+00> : vector<4x256xf32>
    %41 = tpu.matmul %40, %38, %cst_49 {dimension_numbers = #tpu.dot_dimension_numbers<[1], [0], [0], [1], [0, 0, 1, 1], [], []>} : vector<4x4xbf16>, vector<4x256xbf16>, vector<4x256xf32> -> vector<4x256xf32>
    %c0_50 = arith.constant 0 : index
    %c0_51 = arith.constant 0 : index
    %42 = vector.load %arg6[%c0_50, %c0_51] : memref<4x256xf32, #tpu.memory_space<vmem>>, vector<4x256xf32>
    %43 = arith.addf %42, %41 : vector<4x256xf32>
    %c0_52 = arith.constant 0 : index
    %c0_53 = arith.constant 0 : index
    %44 = vector.load %arg6[%c0_52, %c0_53] : memref<4x256xf32, #tpu.memory_space<vmem>>, vector<4x256xf32>
    tpu.vector_store %arg6[%c0_52, %c0_53], %43 {strides = array<i32>} : memref<4x256xf32, #tpu.memory_space<vmem>>, vector<4x256xf32>,
    %c0_54 = arith.constant 0 : index
    %c96 = arith.constant 96 : index
    %45 = vector.load %arg5[%c0_54, %c96] : memref<4x352xbf16, #tpu.memory_space<vmem>>, vector<4x256xbf16>
    %c6 = arith.constant 6 : index
    %c0_55 = arith.constant 0 : index
    %c0_56 = arith.constant 0 : index
    %46 = vector.load %arg1[%c6, %c0_55, %c0_56] : memref<7x4x4xbf16, #tpu.memory_space<vmem>>, vector<1x4x4xbf16>
    %47 = vector.shape_cast %46 : vector<1x4x4xbf16> to vector<4x4xbf16>
    %cst_57 = arith.constant dense<0.000000e+00> : vector<4x256xf32>
    %48 = tpu.matmul %47, %45, %cst_57 {dimension_numbers = #tpu.dot_dimension_numbers<[1], [0], [0], [1], [0, 0, 1, 1], [], []>} : vector<4x4xbf16>, vector<4x256xbf16>, vector<4x256xf32> -> vector<4x256xf32>
    %c0_58 = arith.constant 0 : index
    %c0_59 = arith.constant 0 : index
    %49 = vector.load %arg6[%c0_58, %c0_59] : memref<4x256xf32, #tpu.memory_space<vmem>>, vector<4x256xf32>
    %50 = arith.addf %49, %48 : vector<4x256xf32>
    %c0_60 = arith.constant 0 : index
    %c0_61 = arith.constant 0 : index
    %51 = vector.load %arg6[%c0_60, %c0_61] : memref<4x256xf32, #tpu.memory_space<vmem>>, vector<4x256xf32>
    tpu.vector_store %arg6[%c0_60, %c0_61], %50 {strides = array<i32>} : memref<4x256xf32, #tpu.memory_space<vmem>>, vector<4x256xf32>,
    %c0_62 = arith.constant 0 : index
    %c0_63 = arith.constant 0 : index
    %52 = vector.load %arg6[%c0_62, %c0_63] : memref<4x256xf32, #tpu.memory_space<vmem>>, vector<4x256xf32>
    %cst_64 = arith.constant dense<0.000000e+00> : vector<4xf32>
    %53 = vector.multi_reduction <add>, %52, %cst_64 [1] : vector<4x256xf32> to vector<4xf32>
    %54 = vector.shape_cast %53 : vector<4xf32> to vector<4x1xf32>
    %cst_65 = arith.constant 3.906250e-03 : f32
    %55 = vector.broadcast %cst_65 : f32 to vector<4x1xf32>
    %56 = arith.mulf %54, %55 : vector<4x1xf32>
    %57 = vector.broadcast %56 : vector<4x1xf32> to vector<4x256xf32>
    %58 = arith.subf %52, %57 : vector<4x256xf32>
    %59 = arith.mulf %58, %58 : vector<4x256xf32>
    %cst_66 = arith.constant dense<0.000000e+00> : vector<4xf32>
    %60 = vector.multi_reduction <add>, %59, %cst_66 [1] : vector<4x256xf32> to vector<4xf32>
    %61 = vector.shape_cast %60 : vector<4xf32> to vector<4x1xf32>
    %cst_67 = arith.constant 3.906250e-03 : f32
    %62 = vector.broadcast %cst_67 : f32 to vector<4x1xf32>
    %63 = arith.mulf %61, %62 : vector<4x1xf32>
    %cst_68 = arith.constant 9.99999974E-6 : f32
    %64 = vector.broadcast %cst_68 : f32 to vector<4x1xf32>
    %65 = arith.addf %63, %64 : vector<4x1xf32>
    %66 = math.rsqrt %65 : vector<4x1xf32>
    %67 = vector.broadcast %66 : vector<4x1xf32> to vector<4x256xf32>
    %68 = arith.mulf %58, %67 : vector<4x256xf32>
    %cst_69 = arith.constant 0.000000e+00 : f32
    %69 = vector.broadcast %cst_69 : f32 to vector<4x256xf32>
    %70 = arith.maximumf %68, %69 : vector<4x256xf32>
    %71 = arith.truncf %70 : vector<4x256xf32> to vector<4x256xbf16>
    %c0_70 = arith.constant 0 : index
    %c0_71 = arith.constant 0 : index
    %c0_72 = arith.constant 0 : index
    %72 = vector.load %arg4[%c0_70, %c0_71, %c0_72] : memref<1x4x256xbf16, #tpu.memory_space<vmem>>, vector<1x4x256xbf16>
    %73 = vector.shape_cast %72 : vector<1x4x256xbf16> to vector<4x256xbf16>
    %74 = vector.shape_cast %71 : vector<4x256xbf16> to vector<1x4x256xbf16>
    tpu.vector_store %arg4[%c0_70, %c0_71, %c0_72], %74 {strides = array<i32>} : memref<1x4x256xbf16, #tpu.memory_space<vmem>>, vector<1x4x256xbf16>,
    return
  }
  func.func @transform_0(%arg0: i32) -> (i32, i32, i32) {
    %c0_i32 = arith.constant 0 : i32
    %c0_i32_0 = arith.constant 0 : i32
    %c0_i32_1 = arith.constant 0 : i32
    %c0_i32_2 = arith.constant 0 : i32
    return %c0_i32, %c0_i32_0, %c0_i32_1 : i32, i32, i32
  }
  func.func @transform_1(%arg0: i32) -> (i32, i32, i32) {
    %c0_i32 = arith.constant 0 : i32
    %c0_i32_0 = arith.constant 0 : i32
    %c0_i32_1 = arith.constant 0 : i32
    return %arg0, %c0_i32, %c0_i32_0 : i32, i32, i32
  }
  func.func @transform_2(%arg0: i32) -> (i32, i32) {
    %c0_i32 = arith.constant 0 : i32
    %c0_i32_0 = arith.constant 0 : i32
    %c0_i32_1 = arith.constant 0 : i32
    return %c0_i32, %c0_i32_0 : i32, i32
  }
  func.func @transform_3(%arg0: i32) -> (i32, i32, i32) {
    %c0_i32 = arith.constant 0 : i32
    %c0_i32_0 = arith.constant 0 : i32
    %c0_i32_1 = arith.constant 0 : i32
    return %arg0, %c0_i32, %c0_i32_0 : i32, i32, i32
  }
}

module attributes {stable_mosaic.version = 11 : i64} {
  func.func @_shift_conv_in_relu_kernel(%arg0: i32, %arg1: memref<7x4x4xbf16, #tpu.memory_space<vmem>>, %arg2: memref<1x4x256xbf16, #tpu.memory_space<vmem>>, %arg3: memref<7x256xf32, #tpu.memory_space<vmem>>, %arg4: memref<1x4x256xbf16, #tpu.memory_space<vmem>>, %arg5: memref<4x262xbf16, #tpu.memory_space<vmem>>, %arg6: memref<4x256xf32, #tpu.memory_space<vmem>>) attributes {dimension_semantics = [#tpu.dimension_semantics<parallel>], iteration_bounds = array<i64: 2>, scalar_prefetch = 0 : i64, scratch_operands = 2 : i64, tpu.core_type = #tpu.core_type<tc>, window_params = [{pipeline_mode = #tpu.pipeline_mode<synchronous>, transform_indices = @transform_0, window_bounds = array<i64: 7, 4, 4>}, {transform_indices = @transform_1, window_bounds = array<i64: 1, 4, 256>}, {pipeline_mode = #tpu.pipeline_mode<synchronous>, transform_indices = @transform_2, window_bounds = array<i64: 7, 256>}, {transform_indices = @transform_3, window_bounds = array<i64: 1, 4, 256>}]} {
    %cst = arith.constant 0.000000e+00 : bf16
    %0 = vector.broadcast %cst : bf16 to vector<4x262xbf16>
    %c0 = arith.constant 0 : index
    %c0_0 = arith.constant 0 : index
    %1 = vector.load %arg5[%c0, %c0_0] : memref<4x262xbf16, #tpu.memory_space<vmem>>, vector<4x262xbf16>
    tpu.vector_store %arg5[%c0, %c0_0], %0 {strides = array<i32>} : memref<4x262xbf16, #tpu.memory_space<vmem>>, vector<4x262xbf16>,
    %c0_1 = arith.constant 0 : index
    %c0_2 = arith.constant 0 : index
    %c0_3 = arith.constant 0 : index
    %2 = vector.load %arg2[%c0_1, %c0_2, %c0_3] : memref<1x4x256xbf16, #tpu.memory_space<vmem>>, vector<1x4x256xbf16>
    %3 = vector.shape_cast %2 : vector<1x4x256xbf16> to vector<4x256xbf16>
    %c0_4 = arith.constant 0 : index
    %c3 = arith.constant 3 : index
    %4 = vector.load %arg5[%c0_4, %c3] : memref<4x262xbf16, #tpu.memory_space<vmem>>, vector<4x256xbf16>
    tpu.vector_store %arg5[%c0_4, %c3], %3 {strides = array<i32>} : memref<4x262xbf16, #tpu.memory_space<vmem>>, vector<4x256xbf16>,
    %c0_5 = arith.constant 0 : index
    %c0_6 = arith.constant 0 : index
    %5 = vector.load %arg5[%c0_5, %c0_6] : memref<4x262xbf16, #tpu.memory_space<vmem>>, vector<4x256xbf16>
    %c0_7 = arith.constant 0 : index
    %c0_8 = arith.constant 0 : index
    %c0_9 = arith.constant 0 : index
    %6 = vector.load %arg1[%c0_7, %c0_8, %c0_9] : memref<7x4x4xbf16, #tpu.memory_space<vmem>>, vector<1x4x4xbf16>
    %7 = vector.shape_cast %6 : vector<1x4x4xbf16> to vector<4x4xbf16>
    %cst_10 = arith.constant dense<0.000000e+00> : vector<4x256xf32>
    %8 = tpu.matmul %7, %5, %cst_10 {dimension_numbers = #tpu.dot_dimension_numbers<[1], [0], [0], [1], [0, 0, 1, 1], [], []>} : vector<4x4xbf16>, vector<4x256xbf16>, vector<4x256xf32> -> vector<4x256xf32>
    %c0_11 = arith.constant 0 : index
    %c0_12 = arith.constant 0 : index
    %9 = vector.load %arg3[%c0_11, %c0_12] : memref<7x256xf32, #tpu.memory_space<vmem>>, vector<1x256xf32>
    %10 = vector.shape_cast %9 : vector<1x256xf32> to vector<256xf32>
    %11 = vector.shape_cast %10 : vector<256xf32> to vector<1x256xf32>
    %12 = vector.broadcast %11 : vector<1x256xf32> to vector<4x256xf32>
    %13 = arith.mulf %8, %12 : vector<4x256xf32>
    %c0_13 = arith.constant 0 : index
    %c0_14 = arith.constant 0 : index
    %14 = vector.load %arg6[%c0_13, %c0_14] : memref<4x256xf32, #tpu.memory_space<vmem>>, vector<4x256xf32>
    tpu.vector_store %arg6[%c0_13, %c0_14], %13 {strides = array<i32>} : memref<4x256xf32, #tpu.memory_space<vmem>>, vector<4x256xf32>,
    %c0_15 = arith.constant 0 : index
    %c1 = arith.constant 1 : index
    %15 = vector.load %arg5[%c0_15, %c1] : memref<4x262xbf16, #tpu.memory_space<vmem>>, vector<4x256xbf16>
    %c1_16 = arith.constant 1 : index
    %c0_17 = arith.constant 0 : index
    %c0_18 = arith.constant 0 : index
    %16 = vector.load %arg1[%c1_16, %c0_17, %c0_18] : memref<7x4x4xbf16, #tpu.memory_space<vmem>>, vector<1x4x4xbf16>
    %17 = vector.shape_cast %16 : vector<1x4x4xbf16> to vector<4x4xbf16>
    %cst_19 = arith.constant dense<0.000000e+00> : vector<4x256xf32>
    %18 = tpu.matmul %17, %15, %cst_19 {dimension_numbers = #tpu.dot_dimension_numbers<[1], [0], [0], [1], [0, 0, 1, 1], [], []>} : vector<4x4xbf16>, vector<4x256xbf16>, vector<4x256xf32> -> vector<4x256xf32>
    %c1_20 = arith.constant 1 : index
    %c0_21 = arith.constant 0 : index
    %19 = vector.load %arg3[%c1_20, %c0_21] : memref<7x256xf32, #tpu.memory_space<vmem>>, vector<1x256xf32>
    %20 = vector.shape_cast %19 : vector<1x256xf32> to vector<256xf32>
    %21 = vector.shape_cast %20 : vector<256xf32> to vector<1x256xf32>
    %22 = vector.broadcast %21 : vector<1x256xf32> to vector<4x256xf32>
    %23 = arith.mulf %18, %22 : vector<4x256xf32>
    %c0_22 = arith.constant 0 : index
    %c0_23 = arith.constant 0 : index
    %24 = vector.load %arg6[%c0_22, %c0_23] : memref<4x256xf32, #tpu.memory_space<vmem>>, vector<4x256xf32>
    %25 = arith.addf %24, %23 : vector<4x256xf32>
    %c0_24 = arith.constant 0 : index
    %c0_25 = arith.constant 0 : index
    %26 = vector.load %arg6[%c0_24, %c0_25] : memref<4x256xf32, #tpu.memory_space<vmem>>, vector<4x256xf32>
    tpu.vector_store %arg6[%c0_24, %c0_25], %25 {strides = array<i32>} : memref<4x256xf32, #tpu.memory_space<vmem>>, vector<4x256xf32>,
    %c0_26 = arith.constant 0 : index
    %c2 = arith.constant 2 : index
    %27 = vector.load %arg5[%c0_26, %c2] : memref<4x262xbf16, #tpu.memory_space<vmem>>, vector<4x256xbf16>
    %c2_27 = arith.constant 2 : index
    %c0_28 = arith.constant 0 : index
    %c0_29 = arith.constant 0 : index
    %28 = vector.load %arg1[%c2_27, %c0_28, %c0_29] : memref<7x4x4xbf16, #tpu.memory_space<vmem>>, vector<1x4x4xbf16>
    %29 = vector.shape_cast %28 : vector<1x4x4xbf16> to vector<4x4xbf16>
    %cst_30 = arith.constant dense<0.000000e+00> : vector<4x256xf32>
    %30 = tpu.matmul %29, %27, %cst_30 {dimension_numbers = #tpu.dot_dimension_numbers<[1], [0], [0], [1], [0, 0, 1, 1], [], []>} : vector<4x4xbf16>, vector<4x256xbf16>, vector<4x256xf32> -> vector<4x256xf32>
    %c2_31 = arith.constant 2 : index
    %c0_32 = arith.constant 0 : index
    %31 = vector.load %arg3[%c2_31, %c0_32] : memref<7x256xf32, #tpu.memory_space<vmem>>, vector<1x256xf32>
    %32 = vector.shape_cast %31 : vector<1x256xf32> to vector<256xf32>
    %33 = vector.shape_cast %32 : vector<256xf32> to vector<1x256xf32>
    %34 = vector.broadcast %33 : vector<1x256xf32> to vector<4x256xf32>
    %35 = arith.mulf %30, %34 : vector<4x256xf32>
    %c0_33 = arith.constant 0 : index
    %c0_34 = arith.constant 0 : index
    %36 = vector.load %arg6[%c0_33, %c0_34] : memref<4x256xf32, #tpu.memory_space<vmem>>, vector<4x256xf32>
    %37 = arith.addf %36, %35 : vector<4x256xf32>
    %c0_35 = arith.constant 0 : index
    %c0_36 = arith.constant 0 : index
    %38 = vector.load %arg6[%c0_35, %c0_36] : memref<4x256xf32, #tpu.memory_space<vmem>>, vector<4x256xf32>
    tpu.vector_store %arg6[%c0_35, %c0_36], %37 {strides = array<i32>} : memref<4x256xf32, #tpu.memory_space<vmem>>, vector<4x256xf32>,
    %c0_37 = arith.constant 0 : index
    %c3_38 = arith.constant 3 : index
    %39 = vector.load %arg5[%c0_37, %c3_38] : memref<4x262xbf16, #tpu.memory_space<vmem>>, vector<4x256xbf16>
    %c3_39 = arith.constant 3 : index
    %c0_40 = arith.constant 0 : index
    %c0_41 = arith.constant 0 : index
    %40 = vector.load %arg1[%c3_39, %c0_40, %c0_41] : memref<7x4x4xbf16, #tpu.memory_space<vmem>>, vector<1x4x4xbf16>
    %41 = vector.shape_cast %40 : vector<1x4x4xbf16> to vector<4x4xbf16>
    %cst_42 = arith.constant dense<0.000000e+00> : vector<4x256xf32>
    %42 = tpu.matmul %41, %39, %cst_42 {dimension_numbers = #tpu.dot_dimension_numbers<[1], [0], [0], [1], [0, 0, 1, 1], [], []>} : vector<4x4xbf16>, vector<4x256xbf16>, vector<4x256xf32> -> vector<4x256xf32>
    %c0_43 = arith.constant 0 : index
    %c0_44 = arith.constant 0 : index
    %43 = vector.load %arg6[%c0_43, %c0_44] : memref<4x256xf32, #tpu.memory_space<vmem>>, vector<4x256xf32>
    %44 = arith.addf %43, %42 : vector<4x256xf32>
    %c0_45 = arith.constant 0 : index
    %c0_46 = arith.constant 0 : index
    %45 = vector.load %arg6[%c0_45, %c0_46] : memref<4x256xf32, #tpu.memory_space<vmem>>, vector<4x256xf32>
    tpu.vector_store %arg6[%c0_45, %c0_46], %44 {strides = array<i32>} : memref<4x256xf32, #tpu.memory_space<vmem>>, vector<4x256xf32>,
    %c0_47 = arith.constant 0 : index
    %c4 = arith.constant 4 : index
    %46 = vector.load %arg5[%c0_47, %c4] : memref<4x262xbf16, #tpu.memory_space<vmem>>, vector<4x256xbf16>
    %c4_48 = arith.constant 4 : index
    %c0_49 = arith.constant 0 : index
    %c0_50 = arith.constant 0 : index
    %47 = vector.load %arg1[%c4_48, %c0_49, %c0_50] : memref<7x4x4xbf16, #tpu.memory_space<vmem>>, vector<1x4x4xbf16>
    %48 = vector.shape_cast %47 : vector<1x4x4xbf16> to vector<4x4xbf16>
    %cst_51 = arith.constant dense<0.000000e+00> : vector<4x256xf32>
    %49 = tpu.matmul %48, %46, %cst_51 {dimension_numbers = #tpu.dot_dimension_numbers<[1], [0], [0], [1], [0, 0, 1, 1], [], []>} : vector<4x4xbf16>, vector<4x256xbf16>, vector<4x256xf32> -> vector<4x256xf32>
    %c4_52 = arith.constant 4 : index
    %c0_53 = arith.constant 0 : index
    %50 = vector.load %arg3[%c4_52, %c0_53] : memref<7x256xf32, #tpu.memory_space<vmem>>, vector<1x256xf32>
    %51 = vector.shape_cast %50 : vector<1x256xf32> to vector<256xf32>
    %52 = vector.shape_cast %51 : vector<256xf32> to vector<1x256xf32>
    %53 = vector.broadcast %52 : vector<1x256xf32> to vector<4x256xf32>
    %54 = arith.mulf %49, %53 : vector<4x256xf32>
    %c0_54 = arith.constant 0 : index
    %c0_55 = arith.constant 0 : index
    %55 = vector.load %arg6[%c0_54, %c0_55] : memref<4x256xf32, #tpu.memory_space<vmem>>, vector<4x256xf32>
    %56 = arith.addf %55, %54 : vector<4x256xf32>
    %c0_56 = arith.constant 0 : index
    %c0_57 = arith.constant 0 : index
    %57 = vector.load %arg6[%c0_56, %c0_57] : memref<4x256xf32, #tpu.memory_space<vmem>>, vector<4x256xf32>
    tpu.vector_store %arg6[%c0_56, %c0_57], %56 {strides = array<i32>} : memref<4x256xf32, #tpu.memory_space<vmem>>, vector<4x256xf32>,
    %c0_58 = arith.constant 0 : index
    %c5 = arith.constant 5 : index
    %58 = vector.load %arg5[%c0_58, %c5] : memref<4x262xbf16, #tpu.memory_space<vmem>>, vector<4x256xbf16>
    %c5_59 = arith.constant 5 : index
    %c0_60 = arith.constant 0 : index
    %c0_61 = arith.constant 0 : index
    %59 = vector.load %arg1[%c5_59, %c0_60, %c0_61] : memref<7x4x4xbf16, #tpu.memory_space<vmem>>, vector<1x4x4xbf16>
    %60 = vector.shape_cast %59 : vector<1x4x4xbf16> to vector<4x4xbf16>
    %cst_62 = arith.constant dense<0.000000e+00> : vector<4x256xf32>
    %61 = tpu.matmul %60, %58, %cst_62 {dimension_numbers = #tpu.dot_dimension_numbers<[1], [0], [0], [1], [0, 0, 1, 1], [], []>} : vector<4x4xbf16>, vector<4x256xbf16>, vector<4x256xf32> -> vector<4x256xf32>
    %c5_63 = arith.constant 5 : index
    %c0_64 = arith.constant 0 : index
    %62 = vector.load %arg3[%c5_63, %c0_64] : memref<7x256xf32, #tpu.memory_space<vmem>>, vector<1x256xf32>
    %63 = vector.shape_cast %62 : vector<1x256xf32> to vector<256xf32>
    %64 = vector.shape_cast %63 : vector<256xf32> to vector<1x256xf32>
    %65 = vector.broadcast %64 : vector<1x256xf32> to vector<4x256xf32>
    %66 = arith.mulf %61, %65 : vector<4x256xf32>
    %c0_65 = arith.constant 0 : index
    %c0_66 = arith.constant 0 : index
    %67 = vector.load %arg6[%c0_65, %c0_66] : memref<4x256xf32, #tpu.memory_space<vmem>>, vector<4x256xf32>
    %68 = arith.addf %67, %66 : vector<4x256xf32>
    %c0_67 = arith.constant 0 : index
    %c0_68 = arith.constant 0 : index
    %69 = vector.load %arg6[%c0_67, %c0_68] : memref<4x256xf32, #tpu.memory_space<vmem>>, vector<4x256xf32>
    tpu.vector_store %arg6[%c0_67, %c0_68], %68 {strides = array<i32>} : memref<4x256xf32, #tpu.memory_space<vmem>>, vector<4x256xf32>,
    %c0_69 = arith.constant 0 : index
    %c6 = arith.constant 6 : index
    %70 = vector.load %arg5[%c0_69, %c6] : memref<4x262xbf16, #tpu.memory_space<vmem>>, vector<4x256xbf16>
    %c6_70 = arith.constant 6 : index
    %c0_71 = arith.constant 0 : index
    %c0_72 = arith.constant 0 : index
    %71 = vector.load %arg1[%c6_70, %c0_71, %c0_72] : memref<7x4x4xbf16, #tpu.memory_space<vmem>>, vector<1x4x4xbf16>
    %72 = vector.shape_cast %71 : vector<1x4x4xbf16> to vector<4x4xbf16>
    %cst_73 = arith.constant dense<0.000000e+00> : vector<4x256xf32>
    %73 = tpu.matmul %72, %70, %cst_73 {dimension_numbers = #tpu.dot_dimension_numbers<[1], [0], [0], [1], [0, 0, 1, 1], [], []>} : vector<4x4xbf16>, vector<4x256xbf16>, vector<4x256xf32> -> vector<4x256xf32>
    %c6_74 = arith.constant 6 : index
    %c0_75 = arith.constant 0 : index
    %74 = vector.load %arg3[%c6_74, %c0_75] : memref<7x256xf32, #tpu.memory_space<vmem>>, vector<1x256xf32>
    %75 = vector.shape_cast %74 : vector<1x256xf32> to vector<256xf32>
    %76 = vector.shape_cast %75 : vector<256xf32> to vector<1x256xf32>
    %77 = vector.broadcast %76 : vector<1x256xf32> to vector<4x256xf32>
    %78 = arith.mulf %73, %77 : vector<4x256xf32>
    %c0_76 = arith.constant 0 : index
    %c0_77 = arith.constant 0 : index
    %79 = vector.load %arg6[%c0_76, %c0_77] : memref<4x256xf32, #tpu.memory_space<vmem>>, vector<4x256xf32>
    %80 = arith.addf %79, %78 : vector<4x256xf32>
    %c0_78 = arith.constant 0 : index
    %c0_79 = arith.constant 0 : index
    %81 = vector.load %arg6[%c0_78, %c0_79] : memref<4x256xf32, #tpu.memory_space<vmem>>, vector<4x256xf32>
    tpu.vector_store %arg6[%c0_78, %c0_79], %80 {strides = array<i32>} : memref<4x256xf32, #tpu.memory_space<vmem>>, vector<4x256xf32>,
    %c0_80 = arith.constant 0 : index
    %c0_81 = arith.constant 0 : index
    %82 = vector.load %arg6[%c0_80, %c0_81] : memref<4x256xf32, #tpu.memory_space<vmem>>, vector<4x256xf32>
    %cst_82 = arith.constant dense<0.000000e+00> : vector<4xf32>
    %83 = vector.multi_reduction <add>, %82, %cst_82 [1] : vector<4x256xf32> to vector<4xf32>
    %84 = vector.shape_cast %83 : vector<4xf32> to vector<4x1xf32>
    %cst_83 = arith.constant 3.906250e-03 : f32
    %85 = vector.broadcast %cst_83 : f32 to vector<4x1xf32>
    %86 = arith.mulf %84, %85 : vector<4x1xf32>
    %87 = vector.broadcast %86 : vector<4x1xf32> to vector<4x256xf32>
    %88 = arith.subf %82, %87 : vector<4x256xf32>
    %89 = arith.mulf %88, %88 : vector<4x256xf32>
    %cst_84 = arith.constant dense<0.000000e+00> : vector<4xf32>
    %90 = vector.multi_reduction <add>, %89, %cst_84 [1] : vector<4x256xf32> to vector<4xf32>
    %91 = vector.shape_cast %90 : vector<4xf32> to vector<4x1xf32>
    %cst_85 = arith.constant 3.906250e-03 : f32
    %92 = vector.broadcast %cst_85 : f32 to vector<4x1xf32>
    %93 = arith.mulf %91, %92 : vector<4x1xf32>
    %cst_86 = arith.constant 9.99999974E-6 : f32
    %94 = vector.broadcast %cst_86 : f32 to vector<4x1xf32>
    %95 = arith.addf %93, %94 : vector<4x1xf32>
    %96 = math.rsqrt %95 : vector<4x1xf32>
    %97 = vector.broadcast %96 : vector<4x1xf32> to vector<4x256xf32>
    %98 = arith.mulf %88, %97 : vector<4x256xf32>
    %cst_87 = arith.constant 0.000000e+00 : f32
    %99 = vector.broadcast %cst_87 : f32 to vector<4x256xf32>
    %100 = arith.maximumf %98, %99 : vector<4x256xf32>
    %101 = arith.truncf %100 : vector<4x256xf32> to vector<4x256xbf16>
    %c0_88 = arith.constant 0 : index
    %c0_89 = arith.constant 0 : index
    %c0_90 = arith.constant 0 : index
    %102 = vector.load %arg4[%c0_88, %c0_89, %c0_90] : memref<1x4x256xbf16, #tpu.memory_space<vmem>>, vector<1x4x256xbf16>
    %103 = vector.shape_cast %102 : vector<1x4x256xbf16> to vector<4x256xbf16>
    %104 = vector.shape_cast %101 : vector<4x256xbf16> to vector<1x4x256xbf16>
    tpu.vector_store %arg4[%c0_88, %c0_89, %c0_90], %104 {strides = array<i32>} : memref<1x4x256xbf16, #tpu.memory_space<vmem>>, vector<1x4x256xbf16>,
    return
  }
  func.func @transform_0(%arg0: i32) -> (i32, i32, i32) {
    %c0_i32 = arith.constant 0 : i32
    %c0_i32_0 = arith.constant 0 : i32
    %c0_i32_1 = arith.constant 0 : i32
    %c0_i32_2 = arith.constant 0 : i32
    return %c0_i32, %c0_i32_0, %c0_i32_1 : i32, i32, i32
  }
  func.func @transform_1(%arg0: i32) -> (i32, i32, i32) {
    %c0_i32 = arith.constant 0 : i32
    %c0_i32_0 = arith.constant 0 : i32
    %c0_i32_1 = arith.constant 0 : i32
    return %arg0, %c0_i32, %c0_i32_0 : i32, i32, i32
  }
  func.func @transform_2(%arg0: i32) -> (i32, i32) {
    %c0_i32 = arith.constant 0 : i32
    %c0_i32_0 = arith.constant 0 : i32
    %c0_i32_1 = arith.constant 0 : i32
    return %c0_i32, %c0_i32_0 : i32, i32
  }
  func.func @transform_3(%arg0: i32) -> (i32, i32, i32) {
    %c0_i32 = arith.constant 0 : i32
    %c0_i32_0 = arith.constant 0 : i32
    %c0_i32_1 = arith.constant 0 : i32
    return %arg0, %c0_i32, %c0_i32_0 : i32, i32, i32
  }
}

module attributes {stable_mosaic.version = 11 : i64} {
  func.func @_shift_conv_in_relu_kernel(%arg0: i32, %arg1: memref<4x84x4xbf16, #tpu.memory_space<vmem>>, %arg2: memref<1x4x256xbf16, #tpu.memory_space<vmem>>, %arg3: memref<2x256xf32, #tpu.memory_space<vmem>>, %arg4: memref<1x84x256xf32, #tpu.memory_space<vmem>>, %arg5: memref<4x273xbf16, #tpu.memory_space<vmem>>, %arg6: memref<84x256xf32, #tpu.memory_space<vmem>>) attributes {dimension_semantics = [#tpu.dimension_semantics<parallel>], iteration_bounds = array<i64: 2>, scalar_prefetch = 0 : i64, scratch_operands = 2 : i64, tpu.core_type = #tpu.core_type<tc>, window_params = [{pipeline_mode = #tpu.pipeline_mode<synchronous>, transform_indices = @transform_0, window_bounds = array<i64: 4, 84, 4>}, {transform_indices = @transform_1, window_bounds = array<i64: 1, 4, 256>}, {pipeline_mode = #tpu.pipeline_mode<synchronous>, transform_indices = @transform_2, window_bounds = array<i64: 2, 256>}, {transform_indices = @transform_3, window_bounds = array<i64: 1, 84, 256>}]} {
    %cst = arith.constant 0.000000e+00 : bf16
    %0 = vector.broadcast %cst : bf16 to vector<4x273xbf16>
    %c0 = arith.constant 0 : index
    %c0_0 = arith.constant 0 : index
    %1 = vector.load %arg5[%c0, %c0_0] : memref<4x273xbf16, #tpu.memory_space<vmem>>, vector<4x273xbf16>
    tpu.vector_store %arg5[%c0, %c0_0], %0 {strides = array<i32>} : memref<4x273xbf16, #tpu.memory_space<vmem>>, vector<4x273xbf16>,
    %c0_1 = arith.constant 0 : index
    %c0_2 = arith.constant 0 : index
    %c0_3 = arith.constant 0 : index
    %2 = vector.load %arg2[%c0_1, %c0_2, %c0_3] : memref<1x4x256xbf16, #tpu.memory_space<vmem>>, vector<1x4x256xbf16>
    %3 = vector.shape_cast %2 : vector<1x4x256xbf16> to vector<4x256xbf16>
    %c0_4 = arith.constant 0 : index
    %c0_5 = arith.constant 0 : index
    %4 = vector.load %arg5[%c0_4, %c0_5] : memref<4x273xbf16, #tpu.memory_space<vmem>>, vector<4x256xbf16>
    tpu.vector_store %arg5[%c0_4, %c0_5], %3 {strides = array<i32>} : memref<4x273xbf16, #tpu.memory_space<vmem>>, vector<4x256xbf16>,
    %c0_6 = arith.constant 0 : index
    %c0_7 = arith.constant 0 : index
    %5 = vector.load %arg5[%c0_6, %c0_7] : memref<4x273xbf16, #tpu.memory_space<vmem>>, vector<4x256xbf16>
    %c0_8 = arith.constant 0 : index
    %c0_9 = arith.constant 0 : index
    %c0_10 = arith.constant 0 : index
    %6 = vector.load %arg1[%c0_8, %c0_9, %c0_10] : memref<4x84x4xbf16, #tpu.memory_space<vmem>>, vector<1x84x4xbf16>
    %7 = vector.shape_cast %6 : vector<1x84x4xbf16> to vector<84x4xbf16>
    %cst_11 = arith.constant dense<0.000000e+00> : vector<84x256xf32>
    %8 = tpu.matmul %7, %5, %cst_11 {dimension_numbers = #tpu.dot_dimension_numbers<[1], [0], [0], [1], [0, 0, 1, 1], [], []>} : vector<84x4xbf16>, vector<4x256xbf16>, vector<84x256xf32> -> vector<84x256xf32>
    %c0_12 = arith.constant 0 : index
    %c0_13 = arith.constant 0 : index
    %9 = vector.load %arg6[%c0_12, %c0_13] : memref<84x256xf32, #tpu.memory_space<vmem>>, vector<84x256xf32>
    tpu.vector_store %arg6[%c0_12, %c0_13], %8 {strides = array<i32>} : memref<84x256xf32, #tpu.memory_space<vmem>>, vector<84x256xf32>,
    %c0_14 = arith.constant 0 : index
    %c1 = arith.constant 1 : index
    %10 = vector.load %arg5[%c0_14, %c1] : memref<4x273xbf16, #tpu.memory_space<vmem>>, vector<4x256xbf16>
    %c1_15 = arith.constant 1 : index
    %c0_16 = arith.constant 0 : index
    %c0_17 = arith.constant 0 : index
    %11 = vector.load %arg1[%c1_15, %c0_16, %c0_17] : memref<4x84x4xbf16, #tpu.memory_space<vmem>>, vector<1x84x4xbf16>
    %12 = vector.shape_cast %11 : vector<1x84x4xbf16> to vector<84x4xbf16>
    %cst_18 = arith.constant dense<0.000000e+00> : vector<84x256xf32>
    %13 = tpu.matmul %12, %10, %cst_18 {dimension_numbers = #tpu.dot_dimension_numbers<[1], [0], [0], [1], [0, 0, 1, 1], [], []>} : vector<84x4xbf16>, vector<4x256xbf16>, vector<84x256xf32> -> vector<84x256xf32>
    %c1_19 = arith.constant 1 : index
    %c0_20 = arith.constant 0 : index
    %14 = vector.load %arg3[%c1_19, %c0_20] : memref<2x256xf32, #tpu.memory_space<vmem>>, vector<1x256xf32>
    %15 = vector.shape_cast %14 : vector<1x256xf32> to vector<256xf32>
    %16 = vector.shape_cast %15 : vector<256xf32> to vector<1x256xf32>
    %17 = vector.broadcast %16 : vector<1x256xf32> to vector<84x256xf32>
    %18 = arith.mulf %13, %17 : vector<84x256xf32>
    %c0_21 = arith.constant 0 : index
    %c0_22 = arith.constant 0 : index
    %19 = vector.load %arg6[%c0_21, %c0_22] : memref<84x256xf32, #tpu.memory_space<vmem>>, vector<84x256xf32>
    %20 = arith.addf %19, %18 : vector<84x256xf32>
    %c0_23 = arith.constant 0 : index
    %c0_24 = arith.constant 0 : index
    %21 = vector.load %arg6[%c0_23, %c0_24] : memref<84x256xf32, #tpu.memory_space<vmem>>, vector<84x256xf32>
    tpu.vector_store %arg6[%c0_23, %c0_24], %20 {strides = array<i32>} : memref<84x256xf32, #tpu.memory_space<vmem>>, vector<84x256xf32>,
    %c0_25 = arith.constant 0 : index
    %c16 = arith.constant 16 : index
    %22 = vector.load %arg5[%c0_25, %c16] : memref<4x273xbf16, #tpu.memory_space<vmem>>, vector<4x256xbf16>
    %c2 = arith.constant 2 : index
    %c0_26 = arith.constant 0 : index
    %c0_27 = arith.constant 0 : index
    %23 = vector.load %arg1[%c2, %c0_26, %c0_27] : memref<4x84x4xbf16, #tpu.memory_space<vmem>>, vector<1x84x4xbf16>
    %24 = vector.shape_cast %23 : vector<1x84x4xbf16> to vector<84x4xbf16>
    %cst_28 = arith.constant dense<0.000000e+00> : vector<84x256xf32>
    %25 = tpu.matmul %24, %22, %cst_28 {dimension_numbers = #tpu.dot_dimension_numbers<[1], [0], [0], [1], [0, 0, 1, 1], [], []>} : vector<84x4xbf16>, vector<4x256xbf16>, vector<84x256xf32> -> vector<84x256xf32>
    %c0_29 = arith.constant 0 : index
    %c0_30 = arith.constant 0 : index
    %26 = vector.load %arg6[%c0_29, %c0_30] : memref<84x256xf32, #tpu.memory_space<vmem>>, vector<84x256xf32>
    %27 = arith.addf %26, %25 : vector<84x256xf32>
    %c0_31 = arith.constant 0 : index
    %c0_32 = arith.constant 0 : index
    %28 = vector.load %arg6[%c0_31, %c0_32] : memref<84x256xf32, #tpu.memory_space<vmem>>, vector<84x256xf32>
    tpu.vector_store %arg6[%c0_31, %c0_32], %27 {strides = array<i32>} : memref<84x256xf32, #tpu.memory_space<vmem>>, vector<84x256xf32>,
    %c0_33 = arith.constant 0 : index
    %c17 = arith.constant 17 : index
    %29 = vector.load %arg5[%c0_33, %c17] : memref<4x273xbf16, #tpu.memory_space<vmem>>, vector<4x256xbf16>
    %c3 = arith.constant 3 : index
    %c0_34 = arith.constant 0 : index
    %c0_35 = arith.constant 0 : index
    %30 = vector.load %arg1[%c3, %c0_34, %c0_35] : memref<4x84x4xbf16, #tpu.memory_space<vmem>>, vector<1x84x4xbf16>
    %31 = vector.shape_cast %30 : vector<1x84x4xbf16> to vector<84x4xbf16>
    %cst_36 = arith.constant dense<0.000000e+00> : vector<84x256xf32>
    %32 = tpu.matmul %31, %29, %cst_36 {dimension_numbers = #tpu.dot_dimension_numbers<[1], [0], [0], [1], [0, 0, 1, 1], [], []>} : vector<84x4xbf16>, vector<4x256xbf16>, vector<84x256xf32> -> vector<84x256xf32>
    %c1_37 = arith.constant 1 : index
    %c0_38 = arith.constant 0 : index
    %33 = vector.load %arg3[%c1_37, %c0_38] : memref<2x256xf32, #tpu.memory_space<vmem>>, vector<1x256xf32>
    %34 = vector.shape_cast %33 : vector<1x256xf32> to vector<256xf32>
    %35 = vector.shape_cast %34 : vector<256xf32> to vector<1x256xf32>
    %36 = vector.broadcast %35 : vector<1x256xf32> to vector<84x256xf32>
    %37 = arith.mulf %32, %36 : vector<84x256xf32>
    %c0_39 = arith.constant 0 : index
    %c0_40 = arith.constant 0 : index
    %38 = vector.load %arg6[%c0_39, %c0_40] : memref<84x256xf32, #tpu.memory_space<vmem>>, vector<84x256xf32>
    %39 = arith.addf %38, %37 : vector<84x256xf32>
    %c0_41 = arith.constant 0 : index
    %c0_42 = arith.constant 0 : index
    %40 = vector.load %arg6[%c0_41, %c0_42] : memref<84x256xf32, #tpu.memory_space<vmem>>, vector<84x256xf32>
    tpu.vector_store %arg6[%c0_41, %c0_42], %39 {strides = array<i32>} : memref<84x256xf32, #tpu.memory_space<vmem>>, vector<84x256xf32>,
    %c0_43 = arith.constant 0 : index
    %c0_44 = arith.constant 0 : index
    %41 = vector.load %arg6[%c0_43, %c0_44] : memref<84x256xf32, #tpu.memory_space<vmem>>, vector<84x256xf32>
    %cst_45 = arith.constant dense<0.000000e+00> : vector<84xf32>
    %42 = vector.multi_reduction <add>, %41, %cst_45 [1] : vector<84x256xf32> to vector<84xf32>
    %43 = vector.shape_cast %42 : vector<84xf32> to vector<84x1xf32>
    %44 = vector.extract_strided_slice %43 {offsets = [0, 0], sizes = [21, 1], strides = [1, 1]} : vector<84x1xf32> to vector<21x1xf32>
    %45 = vector.extract_strided_slice %43 {offsets = [21, 0], sizes = [21, 1], strides = [1, 1]} : vector<84x1xf32> to vector<21x1xf32>
    %46 = arith.addf %44, %45 : vector<21x1xf32>
    %47 = vector.extract_strided_slice %43 {offsets = [42, 0], sizes = [21, 1], strides = [1, 1]} : vector<84x1xf32> to vector<21x1xf32>
    %48 = arith.addf %46, %47 : vector<21x1xf32>
    %49 = vector.extract_strided_slice %43 {offsets = [63, 0], sizes = [21, 1], strides = [1, 1]} : vector<84x1xf32> to vector<21x1xf32>
    %50 = arith.addf %48, %49 : vector<21x1xf32>
    %cst_46 = arith.constant 9.765625E-4 : f32
    %51 = vector.broadcast %cst_46 : f32 to vector<21x1xf32>
    %52 = arith.mulf %50, %51 : vector<21x1xf32>
    %53 = tpu.concatenate %52, %52, %52, %52 in 0 : vector<21x1xf32>, vector<21x1xf32>, vector<21x1xf32>, vector<21x1xf32> -> vector<84x1xf32>
    %54 = vector.broadcast %53 : vector<84x1xf32> to vector<84x256xf32>
    %55 = arith.subf %41, %54 : vector<84x256xf32>
    %56 = arith.mulf %55, %55 : vector<84x256xf32>
    %cst_47 = arith.constant dense<0.000000e+00> : vector<84xf32>
    %57 = vector.multi_reduction <add>, %56, %cst_47 [1] : vector<84x256xf32> to vector<84xf32>
    %58 = vector.shape_cast %57 : vector<84xf32> to vector<84x1xf32>
    %59 = vector.extract_strided_slice %58 {offsets = [0, 0], sizes = [21, 1], strides = [1, 1]} : vector<84x1xf32> to vector<21x1xf32>
    %60 = vector.extract_strided_slice %58 {offsets = [21, 0], sizes = [21, 1], strides = [1, 1]} : vector<84x1xf32> to vector<21x1xf32>
    %61 = arith.addf %59, %60 : vector<21x1xf32>
    %62 = vector.extract_strided_slice %58 {offsets = [42, 0], sizes = [21, 1], strides = [1, 1]} : vector<84x1xf32> to vector<21x1xf32>
    %63 = arith.addf %61, %62 : vector<21x1xf32>
    %64 = vector.extract_strided_slice %58 {offsets = [63, 0], sizes = [21, 1], strides = [1, 1]} : vector<84x1xf32> to vector<21x1xf32>
    %65 = arith.addf %63, %64 : vector<21x1xf32>
    %cst_48 = arith.constant 9.765625E-4 : f32
    %66 = vector.broadcast %cst_48 : f32 to vector<21x1xf32>
    %67 = arith.mulf %65, %66 : vector<21x1xf32>
    %68 = tpu.concatenate %67, %67, %67, %67 in 0 : vector<21x1xf32>, vector<21x1xf32>, vector<21x1xf32>, vector<21x1xf32> -> vector<84x1xf32>
    %cst_49 = arith.constant 9.99999974E-6 : f32
    %69 = vector.broadcast %cst_49 : f32 to vector<84x1xf32>
    %70 = arith.addf %68, %69 : vector<84x1xf32>
    %71 = math.rsqrt %70 : vector<84x1xf32>
    %72 = vector.broadcast %71 : vector<84x1xf32> to vector<84x256xf32>
    %73 = arith.mulf %55, %72 : vector<84x256xf32>
    %cst_50 = arith.constant 0.000000e+00 : f32
    %74 = vector.broadcast %cst_50 : f32 to vector<84x256xf32>
    %75 = arith.maximumf %73, %74 : vector<84x256xf32>
    %c0_51 = arith.constant 0 : index
    %c0_52 = arith.constant 0 : index
    %c0_53 = arith.constant 0 : index
    %76 = vector.load %arg4[%c0_51, %c0_52, %c0_53] : memref<1x84x256xf32, #tpu.memory_space<vmem>>, vector<1x84x256xf32>
    %77 = vector.shape_cast %76 : vector<1x84x256xf32> to vector<84x256xf32>
    %78 = vector.shape_cast %75 : vector<84x256xf32> to vector<1x84x256xf32>
    tpu.vector_store %arg4[%c0_51, %c0_52, %c0_53], %78 {strides = array<i32>} : memref<1x84x256xf32, #tpu.memory_space<vmem>>, vector<1x84x256xf32>,
    return
  }
  func.func @transform_0(%arg0: i32) -> (i32, i32, i32) {
    %c0_i32 = arith.constant 0 : i32
    %c0_i32_0 = arith.constant 0 : i32
    %c0_i32_1 = arith.constant 0 : i32
    %c0_i32_2 = arith.constant 0 : i32
    return %c0_i32, %c0_i32_0, %c0_i32_1 : i32, i32, i32
  }
  func.func @transform_1(%arg0: i32) -> (i32, i32, i32) {
    %c0_i32 = arith.constant 0 : i32
    %c0_i32_0 = arith.constant 0 : i32
    %c0_i32_1 = arith.constant 0 : i32
    return %arg0, %c0_i32, %c0_i32_0 : i32, i32, i32
  }
  func.func @transform_2(%arg0: i32) -> (i32, i32) {
    %c0_i32 = arith.constant 0 : i32
    %c0_i32_0 = arith.constant 0 : i32
    %c0_i32_1 = arith.constant 0 : i32
    return %c0_i32, %c0_i32_0 : i32, i32
  }
  func.func @transform_3(%arg0: i32) -> (i32, i32, i32) {
    %c0_i32 = arith.constant 0 : i32
    %c0_i32_0 = arith.constant 0 : i32
    %c0_i32_1 = arith.constant 0 : i32
    return %arg0, %c0_i32, %c0_i32_0 : i32, i32, i32
  }
}

</mosaic_0001>

<bundles_post_ra>
// kernel: unet_exfuse_level.7
= control target key start
LH: loop header
LB: loop body
LE: loop exit
PB: predicated region body
PF: predicated region fallthrough
CT: control target
= control target key end

     0   :  { %s978_s12 = smov 0   ;;  %s1088_s0 = inlined_call_operand.vmem [shape: bf16[9,4,8], index: 0, kind: input, shape index: {}]   ;;  %s1089_s1 = inlined_call_operand.vmem [shape: f32[2,8,64], index: 1, kind: input, shape index: {}]   ;;  %s1090_s2 = inlined_call_operand.vmem [shape: f32[3,64], index: 2, kind: input, shape index: {}]   ;;  %s1091_s3 = inlined_call_operand.vmem [shape: bf16[2,4,64], index: 3, kind: output, shape index: {}]  }
   0x1 LB: > { %s794_s13 = sadd.s32 4294967295, %s944_s12   ;;  %p798_p0 = scmp.ge.s32.totalorder %s944_s12, 1  ;;  %s944_s12 = sphi %s978_s12, %s13_s12  }
   0x2   : > { %p136_p1 = scmp.lt.s32.totalorder %s944_s12, 3 }
   0x4   : > { %p137_p2 = pnand %p798_p0, %p136_p1 }
   0x5   : > { %p158_p3 = scmp.lt.s32.totalorder (!%p137_p2), %s794_s13, 1  ;;  %s948_s18 = smov (!%p137_p2), 9  }
   0x6   : > { %140 = sbr.rel (%p137_p2) target bundleno = 843 (0x34b), region = 32  ;;  %s950_s21 = smov (!%p137_p2), 126  }
   0x7   : > { %s951_s22 = smov (!%p137_p2), 127   ;;  %s952_s23 = smov (!%p137_p2), 120  }
   0x8   : > { %s953_s24 = smov (!%p137_p2), 119   ;;  %s954_s25 = smov (!%p137_p2), 118  }
   0x9   : > { %s955_s26 = smov (!%p137_p2), 112   ;;  %s956_s27 = smov (!%p137_p2), 111  }
   0xa   : > { %s957_s28 = smov (!%p137_p2), 110  }
   0xb   : > { %vm167_vm0 = vcmask 666624   ;;  %v946_v0 = vmov 0   ;;  %v947_v1 = vmov 0.0   ;;  %s1093_s13 = smov (!%p158_p3, %s794_s13), 1  ;;  %vm949_vm1 = vmmov 0  }
   0xc   : > { %168 = vst.msk [vmem:[#allocation2] sm:$0xf] %vm167_vm0, %v946_v0  ;;  %854 = vmatprep.subr.bf16.mxu0 %v947_v1  ;;  %860 = vmatprep.subr.bf16.mxu1 %v947_v1  ;;  %s799_s14 = sshll.u32 %s1093_s13, 3  ;;  %vm177_vm2 = vcmask 592968   ;;  %vm185_vm3 = vcmask 1043456   ;;  %vm181_vm4 = vcmask 64512  }
   0xd   : > { %s161_s17 = scalar_lea.vmem %s1089_s1, %s799_s14  ;;  %856 = vmatprep.mubr.msk.bf16.mxu0 %vm949_vm1, %v947_v1  ;;  %862 = vmatprep.mubr.msk.bf16.mxu1 %vm949_vm1, %v947_v1  ;;  %v180_v7 = vld [vmem:[%s1088_s0] sm:$0x3]  ;;  %v807_v20 = vld [vmem:[%s1088_s0 + $0x4] sm:$0x3]  ;;  %v804_v21 = vld [vmem:[%s1088_s0 + $0x2] sm:$0x3] }
   0xe   : > { %v169_v2 = vld [vmem:[%s161_s17] sm:$0xff]  ;;  %v815_v27 = vld [vmem:[%s1088_s0 + $0x8] sm:$0x3]  ;;  %v822_v33 = vld [vmem:[%s1088_s0 + $0xc] sm:$0x3]  ;;  %vm235_vm5 = vcmask 519168  }
   0xf   : > { %v835_v3 = vpack.c.bf16 %v169_v2, %v169_v2  ;;  %v811_v29 = vld [vmem:[%s1088_s0 + $0x6] sm:$0x3]  ;;  %v818_v35 = vld [vmem:[%s1088_s0 + $0xa] sm:$0x3]  ;;  %v829_v38 = vld [vmem:[%s1088_s0 + $0x10] sm:$0x3] }
  0x10   : > { %v826_v39 = vld [vmem:[%s1088_s0 + $0xe] sm:$0x3]  ;;  %v803_v40 = vld [vmem:[%s1090_s2] ss:$0 sm:$0xff]  ;;  %v810_v53 = vld [vmem:[%s1090_s2 + $0x2] ss:$0 sm:$0xff] }
  0x11   : > { %174 = vrot.lane.b32.xlu0 %v835_v3, %s948_s18  ;;  %vm739_vm6 = vcmask 517120  }
  0x83   : > { %v175_v4 = vpop.permute.xlu0 %174 }
  0x84   : > { %178 = vst.msk [vmem:[#allocation2] sm:$0xf] %vm177_vm2, %v175_v4 }
  0x8b   : > { %v179_v5 = vld [vmem:[#allocation2] sm:$0xf] }
  0x8c   : > { %v928_v6 = vld [vmem:[#allocation2] ss:$0 sps:$4 sm:$0xff]   ;;  %v187_v8 = vsel %vm185_vm3, %v179_v5, 0 }
  0x8d   : > { %v929_v9 = vld [vmem:[#allocation2] ss:$0 sps:$4 sm:$0xff]   ;;  %855 = vmatpush3.bf16.msra.mxu0 %v187_v8  ;;  %300 = vrot.lane.b32.xlu1 %v928_v6, %s950_s21 }
  0x8e   : > { %243 = vrot.lane.b32.xlu0 %v929_v9, %s951_s22  ;;  %866 = vmatprep.subr.bf16.mxu0 %v947_v1  ;;  %v930_v10 = vld [vmem:[#allocation2] ss:$0 sps:$4 sm:$0xff]  }
  0x8f   : > { %v931_v11 = vld [vmem:[#allocation2] ss:$0 sps:$4 sm:$0xff]  }
  0x90   : > { %857 = vmatmul.mubr.msk.bf16.vlgmr.msra.gmra.mxu0 %vm181_vm4, %v180_v7  ;;  %v932_v12 = vld [vmem:[#allocation2] ss:$0 sps:$4 sm:$0xff]  }
  0x91   : > { %363 = vrot.lane.b32.xlu1 %v930_v10, %s952_s23  ;;  %868 = vmatprep.mubr.msk.bf16.mxu0 %vm949_vm1, %v947_v1  ;;  %v933_v13 = vld [vmem:[#allocation2] ss:$0 sps:$4 sm:$0xff]  }
  0x92   : > { %426 = vrot.lane.b32.xlu0 %v931_v11, %s953_s24  ;;  %v934_v14 = vld [vmem:[#allocation2] ss:$0 sps:$4 sm:$0xff]   ;;  %s800_s24 = sshll.u32 %s1093_s13, 1 }
  0x93   : > { %v935_v15 = vld [vmem:[#allocation2] ss:$0 sps:$4 sm:$0xff]  }
  0x95   : > { %483 = vrot.lane.b32.xlu1 %v932_v12, %s954_s25 }
  0x96   : > { %546 = vrot.lane.b32.xlu0 %v933_v13, %s955_s26 }
  0x99   : > { %609 = vrot.lane.b32.xlu1 %v934_v14, %s956_s27  ;;  %s165_s27 = scalar_lea.vmem %s1091_s3, %s800_s24 }
  0x9a   : > { %666 = vrot.lane.b32.xlu0 %v935_v15, %s957_s28 }
  0xff   : > { %v301_v16 = vpop.permute.xlu1 %300 }
 0x100   : > { %v306_v17 = vsel %vm185_vm3, %v301_v16, 0  ;;  %v244_v18 = vpop.permute.xlu0 %243 }
 0x101   : > { %v249_v19 = vsel %vm185_vm3, %v244_v18, 0  ;;  %867 = vmatpush3.bf16.msra.mxu0 %v306_v17 }
 0x102   : > { %861 = vmatpush3.bf16.msra.mxu1 %v249_v19  ;;  %878 = vmatprep.subr.bf16.mxu0 %v947_v1 }
 0x103   : > { %v364_v22 = vpop.permute.xlu1 %363  ;;  %872 = vmatprep.subr.bf16.mxu1 %v947_v1 }
 0x104   : > { %v369_v23 = vsel %vm185_vm3, %v364_v22, 0  ;;  %v427_v24 = vpop.permute.xlu0 %426  ;;  %869 = vmatmul.mubr.msk.bf16.vlgmr.msra.gmra.mxu0 %vm181_vm4, %v807_v20 }
 0x105   : > { %v432_v25 = vsel %vm185_vm3, %v427_v24, 0  ;;  %863 = vmatmul.mubr.msk.bf16.vlgmr.msra.gmra.mxu1 %vm181_vm4, %v804_v21  ;;  %880 = vmatprep.mubr.msk.bf16.mxu0 %vm949_vm1, %v947_v1 }
 0x106   : > { %873 = vmatpush3.bf16.msra.mxu1 %v369_v23  ;;  %879 = vmatpush3.bf16.msra.mxu0 %v432_v25 }
 0x107   : > { %874 = vmatprep.mubr.msk.bf16.mxu1 %vm949_vm1, %v947_v1  ;;  %884 = vmatprep.subr.bf16.mxu1 %v947_v1  ;;  %v484_v28 = vpop.permute.xlu1 %483 }
 0x108   : > { %890 = vmatprep.subr.bf16.mxu0 %v947_v1  ;;  %v547_v26 = vpop.permute.xlu0 %546  ;;  %v489_v31 = vsel %vm185_vm3, %v484_v28, 0 }
 0x109   : > { %v552_v30 = vsel %vm185_vm3, %v547_v26, 0 }
 0x10b   : > { %v610_v34 = vpop.permute.xlu1 %609 }
 0x10c   : > { %881 = vmatmul.mubr.msk.bf16.vlgmr.msra.gmra.mxu0 %vm181_vm4, %v815_v27  ;;  %v667_v32 = vpop.permute.xlu0 %666  ;;  %v615_v37 = vsel %vm185_vm3, %v610_v34, 0 }
 0x10d   : > { %875 = vmatmul.mubr.msk.bf16.vlgmr.msra.gmra.mxu1 %vm181_vm4, %v811_v29  ;;  %891 = vmatpush3.bf16.msra.mxu0 %v552_v30  ;;  %v672_v36 = vsel %vm185_vm3, %v667_v32, 0 }
 0x10e   : > { %885 = vmatpush3.bf16.msra.mxu1 %v489_v31  ;;  %886 = vmatprep.mubr.msk.bf16.mxu1 %vm949_vm1, %v947_v1 }
 0x10f   : > { %892 = vmatprep.mubr.msk.bf16.mxu0 %vm949_vm1, %v947_v1  ;;  %896 = vmatprep.subr.bf16.mxu1 %v947_v1 }
 0x110   : > { %902 = vmatprep.subr.bf16.mxu0 %v947_v1 }
 0x114   : > { %893 = vmatmul.mubr.msk.bf16.vlgmr.msra.gmra.mxu0 %vm181_vm4, %v822_v33 }
 0x115   : > { %887 = vmatmul.mubr.msk.bf16.vlgmr.msra.gmra.mxu1 %vm181_vm4, %v818_v35  ;;  %903 = vmatpush3.bf16.msra.mxu0 %v672_v36 }
 0x116   : > { %897 = vmatpush3.bf16.msra.mxu1 %v615_v37  ;;  %898 = vmatprep.mubr.msk.bf16.mxu1 %vm949_vm1, %v947_v1 }
 0x117   : > { %904 = vmatprep.mubr.msk.bf16.mxu0 %vm949_vm1, %v947_v1 }
 0x11c   : > { %905 = vmatmul.mubr.msk.bf16.vlgmr.msra.gmra.mxu0 %vm181_vm4, %v829_v38 }
 0x11d   : > { %899 = vmatmul.mubr.msk.bf16.vlgmr.msra.gmra.mxu1 %vm181_vm4, %v826_v39 }
 0x150   : > { %v223_v41 = vpop.f32.mrf.mxu0 }
 0x151   : > { %v234_v42 = vmul.f32 %v803_v40, %v223_v41 }
 0x152   : > { %v858_v43 = vpop.f32.mrf.mxu0 }
 0x153   : > { %236 = vst.msk [vmem:[#allocation3] sm:$0xf] %vm235_vm5, %v234_v42 }
 0x154   : > { %v226_v44 = vpop.f32.mrf.mxu0 }
 0x156   : > { %v859_v45 = vpop.f32.mrf.mxu0 }
 0x15a   : > { %v291_v46 = vld [vmem:[#allocation3] sm:$0xf] }
 0x1c4   : > { %v342_v47 = vpop.f32.mrf.mxu0 }
 0x1c5   : > { %v285_v48 = vpop.f32.mrf.mxu1  ;;  %v353_v57 = vmul.f32 %v810_v53, %v342_v47 }
 0x1c6   : > { %v292_v49 = vadd.f32 %v291_v46, %v285_v48  ;;  %v870_v50 = vpop.f32.mrf.mxu0 }
 0x1c7   : > { %v864_v51 = vpop.f32.mrf.mxu1 }
 0x1c8   : > { %293 = vst.msk [vmem:[#allocation3] sm:$0xf] %vm235_vm5, %v292_v49  ;;  %v345_v52 = vpop.f32.mrf.mxu0 }
 0x1c9   : > { %v288_v54 = vpop.f32.mrf.mxu1 }
 0x1ca   : > { %v871_v55 = vpop.f32.mrf.mxu0 }
 0x1cb   : > { %v865_v56 = vpop.f32.mrf.mxu1 }
 0x1cc   : > { %v468_v58 = vpop.f32.mrf.mxu0 }
 0x1cd   : > { %v405_v59 = vpop.f32.mrf.mxu1 }
 0x1ce   : > { %v882_v60 = vpop.f32.mrf.mxu0  ;;  %v416_v6 = vmul.f32 %v803_v40, %v405_v59 }
 0x1cf   : > { %v354_v61 = vld [vmem:[#allocation3] sm:$0xf]  ;;  %v876_v62 = vpop.f32.mrf.mxu1 }
 0x1d0   : > { %v355_v63 = vadd.f32 %v354_v61, %v353_v57  ;;  %v471_v0 = vpop.f32.mrf.mxu0 }
 0x1d1   : > { %v408_v1 = vpop.f32.mrf.mxu1 }
 0x1d2   : > { %356 = vst.msk [vmem:[#allocation3] sm:$0xf] %vm235_vm5, %v355_v63  ;;  %v883_v2 = vpop.f32.mrf.mxu0 }
 0x1d3   : > { %v877_v3 = vpop.f32.mrf.mxu1 }
 0x1d4   : > { %v588_v4 = vpop.f32.mrf.mxu0 }
 0x1d5   : > { %v525_v5 = vpop.f32.mrf.mxu1  ;;  %v599_v28 = vmul.f32 %v803_v40, %v588_v4 }
 0x1d6   : > { %v894_v7 = vpop.f32.mrf.mxu0  ;;  %v536_v25 = vmul.f32 %v810_v53, %v525_v5 }
 0x1d7   : > { %v888_v8 = vpop.f32.mrf.mxu1 }
 0x1d8   : > { %v591_v9 = vpop.f32.mrf.mxu0 }
 0x1d9   : > { %v417_v10 = vld [vmem:[#allocation3] sm:$0xf]  ;;  %v528_v11 = vpop.f32.mrf.mxu1 }
 0x1da   : > { %v418_v12 = vadd.f32 %v417_v10, %v416_v6  ;;  %v895_v13 = vpop.f32.mrf.mxu0 }
 0x1db   : > { %v889_v14 = vpop.f32.mrf.mxu1 }
 0x1dc   : > { %419 = vst.msk [vmem:[#allocation3] sm:$0xf] %vm235_vm5, %v418_v12  ;;  %v708_v15 = vpop.f32.mrf.mxu0 }
 0x1dd   : > { %v651_v16 = vpop.f32.mrf.mxu1  ;;  %v719_v33 = vmul.f32 %v810_v53, %v708_v15 }
 0x1de   : > { %v906_v17 = vpop.f32.mrf.mxu0 }
 0x1df   : > { %v900_v18 = vpop.f32.mrf.mxu1 }
 0x1e0   : > { %v711_v19 = vpop.f32.mrf.mxu0 }
 0x1e1   : > { %v654_v20 = vpop.f32.mrf.mxu1 }
 0x1e2   : > { %v907_v21 = vpop.f32.mrf.mxu0 }
 0x1e3   : > { %v474_v22 = vld [vmem:[#allocation3] sm:$0xf]  ;;  %v901_v23 = vpop.f32.mrf.mxu1 }
 0x1e4   : > { %v475_v24 = vadd.f32 %v474_v22, %v468_v58 }
 0x1e6   : > { %476 = vst.msk [vmem:[#allocation3] sm:$0xf] %vm235_vm5, %v475_v24 }
 0x1ed   : > { %v537_v26 = vld [vmem:[#allocation3] sm:$0xf] }
 0x1ee   : > { %v538_v27 = vadd.f32 %v537_v26, %v536_v25 }
 0x1f0   : > { %539 = vst.msk [vmem:[#allocation3] sm:$0xf] %vm235_vm5, %v538_v27 }
 0x1f7   : > { %v600_v29 = vld [vmem:[#allocation3] sm:$0xf] }
 0x1f8   : > { %v601_v30 = vadd.f32 %v600_v29, %v599_v28 }
 0x1fa   : > { %602 = vst.msk [vmem:[#allocation3] sm:$0xf] %vm235_vm5, %v601_v30 }
 0x201   : > { %v657_v31 = vld [vmem:[#allocation3] sm:$0xf] }
 0x202   : > { %v658_v32 = vadd.f32 %v657_v31, %v651_v16 }
 0x204   : > { %659 = vst.msk [vmem:[#allocation3] sm:$0xf] %vm235_vm5, %v658_v32 }
 0x20b   : > { %v720_v34 = vld [vmem:[#allocation3] sm:$0xf] }
 0x20c   : > { %v721_v35 = vadd.f32 %v720_v34, %v719_v33 }
 0x20e   : > { %722 = vst.msk [vmem:[#allocation3] sm:$0xf] %vm235_vm5, %v721_v35 }
 0x215   : > { %v723_v36 = vld [vmem:[#allocation3] sm:$0xf] }
 0x216   : > { %v724_v37 = vsel %vm235_vm5, %v723_v36, 0.0 }
 0x217   : > { %725 = vadd.xlane.f32.xlu1 %v724_v37 }
 0x2a0   : > { %v726_v38 = vpop.xlane.xlu1 %725 }
 0x2a1   : > { %v727_v39 = vmul.f32 0.015625, %v726_v38 }
 0x2a3   : > { %v728_v40 = vsub.f32 %v723_v36, %v727_v39 }
 0x2a5   : > { %v729_v41 = vmul.f32 %v728_v40, %v728_v40 }
 0x2a7   : > { %v730_v42 = vsel %vm235_vm5, %v729_v41, 0.0 }
 0x2a8   : > { %731 = vadd.xlane.f32.xlu0 %v730_v42 }
 0x331   : > { %v732_v43 = vpop.xlane.xlu0 %731 }
 0x332   : > { %v733_v44 = vmul.f32 0.015625, %v732_v43 }
 0x334   : > { %v734_v45 = vadd.f32 1e-05, %v733_v44 }
 0x336   : > { %936 = vrsqrt.f32 %v734_v45 }
 0x343   : > { %v937_v46 = vpop.eup %936 }
 0x344   : > { %v736_v47 = vmul.f32 %v937_v46, %v728_v40 }
 0x346   : > { %v737_v48 = vmax.f32 %v736_v47, 0.0 }
 0x348   : > { %v738_v49 = vpack.c.bf16 %v737_v48, %v737_v48 }
 0x34a   : > { %740 = vst.msk [vmem:[%s165_s27] sm:$0x3] %vm739_vm6, %v738_v49 }
 0x34b PF: > { %s13_s12 = sadd.s32 1, %s944_s12  }
 0x34c   : > { %p10_p4 = scmp.ge.s32.totalorder %s13_s12, 4  }
 0x34e   :  { %12 = sbr.rel (!%p10_p4) target bundleno = 1 (0x1), region = 70 }

// kernel: unet_exfuse_level.12
= control target key start
LH: loop header
LB: loop body
LE: loop exit
PB: predicated region body
PF: predicated region fallthrough
CT: control target
= control target key end

     0   :  { %s1126_s18 = smov 0   ;;  %s1229_s0 = inlined_call_operand.vmem [shape: bf16[7,4,4], index: 0, kind: input, shape index: {}]   ;;  %s1230_s1 = inlined_call_operand.vmem [shape: bf16[2,4,256], index: 1, kind: input, shape index: {}]   ;;  %s1231_s2 = inlined_call_operand.vmem [shape: f32[1,256], index: 2, kind: input, shape index: {}]   ;;  %s1232_s3 = inlined_call_operand.vmem [shape: bf16[2,4,256], index: 3, kind: input, shape index: {}]   ;;  %s1233_s4 = inlined_call_operand.vmem [shape: f32[2,4,256], index: 4, kind: input, shape index: {}]   ;;  %s1234_s5 = inlined_call_operand.vmem [shape: bf16[2,4,256], index: 5, kind: output, shape index: {}]  }
   0x1 LB: > { %s1012_s2 = sadd.s32 4294967295, %s1085_s18   ;;  %p1016_p0 = scmp.ge.s32.totalorder %s1085_s18, 1  ;;  %s1085_s18 = sphi %s1126_s18, %s15_s18  }
   0x2   : > { %p207_p1 = scmp.lt.s32.totalorder %s1085_s18, 3 }
   0x4   : > { %p208_p2 = pnand %p1016_p0, %p207_p1 }
   0x5   : > { %p245_p3 = scmp.lt.s32.totalorder (!%p208_p2), %s1012_s2, 1  ;;  %s1088_s23 = smov (!%p208_p2), 48  }
   0x6   : > { %211 = sbr.rel (%p208_p2) target bundleno = 822 (0x336), region = 40  ;;  %s1090_s24 = smov (!%p208_p2), 80  }
   0x7   : > { %s1091_s25 = smov (!%p208_p2), 112   ;;  %s1092_s28 = smov (!%p208_p2), 96  }
   0x8   : > { %s1093_s29 = smov (!%p208_p2), 64   ;;  %s1094_s30 = smov (!%p208_p2), 32  }
   0xb   : > { %vm266_vm0 = vcmask 1041408   ;;  %vm267_vm1 = vcmask 1043458   ;;  %vm269_vm2 = vcmask 783364   ;;  %v1087_v0 = vmov 0   ;;  %s1236_s2 = smov (!%p245_p3, %s1012_s2), 1 }
   0xc   : > { %vm268_vm3 = vmor %vm267_vm1, %vm266_vm0  ;;  %338 = vmatprep.mubr.bf16.mxu0 %v1087_v0  ;;  %422 = vmatprep.mubr.bf16.mxu1 %v1087_v0  ;;  %s1142_s19 = sshll.u32 %s1236_s2, 2  ;;  %vm280_vm5 = vcmask 1041792   ;;  %vm282_vm7 = vcmask 390148   ;;  %vm277_vm8 = vcmask 392192   ;;  %v1089_v3 = vmov 1983009808  }
   0xd   : > { %vm270_vm4 = vmor %vm269_vm2, %vm268_vm3  ;;  %s249_s22 = scalar_lea.vmem %s1230_s1, %s1142_s19  ;;  %v358_v4 = vunpack.c.l.s4 %v1089_v3  ;;  %v360_v5 = vlaneseq  ;;  %v286_v22 = vld [vmem:[%s1229_s0] sm:$0x3]  ;;  %vm296_vm10 = vcmask 31744   ;;  %vm378_vm11 = vcmask 916480   ;;  %v1028_v56 = vld [vmem:[%s1229_s0 + $0x2] sm:$0x3] }
   0xe   : > { %271 = vst.msk [vmem:[#allocation2] sm:$0x3f] %vm270_vm4, %v1087_v0  ;;  %v272_v1 = vld [vmem:[%s249_s22] sm:$0xf]  ;;  %vm281_vm6 = vmor %vm267_vm1, %vm280_vm5  ;;  %vm464_vm12 = vcmask 785408   ;;  %vm550_vm13 = vcmask 654336   ;;  %s254_s22 = scalar_lea.vmem %s1232_s3, %s1142_s19 }
   0xf   : > { %274 = vrot.lane.b32.xlu0 %v272_v1, %s1088_s23  ;;  %vm283_vm9 = vmor %vm282_vm7, %vm281_vm6  ;;  %v359_v8 = vunpack.c.0.s8 %v358_v4  ;;  %v1151_v9 = vshrl.u32 %v360_v5, 7  ;;  %v1031_v62 = vld [vmem:[%s1229_s0 + $0x4] sm:$0x3]  ;;  %vm636_vm14 = vcmask 523264   ;;  %v1034_v5 = vld [vmem:[%s1229_s0 + $0x6] sm:$0x3] }
  0x10   : > { %vm807_vm15 = vcmask 261120  }
  0x11   : > { %v362_v10 = vsub.s32 %v359_v8, %v1151_v9 }
  0x81   : > { %v275_v2 = vpop.permute.xlu0 %274 }
  0x82   : > { %v276_v6 = vrot.slane %v275_v2, 6 }
  0x84   : > { %v278_v7 = vsel %vm277_vm8, %v276_v6, %v275_v2 }
  0x85   : > { %284 = vst.msk [vmem:[#allocation2] sm:$0x3f] %vm283_vm9, %v278_v7 }
  0x8c   : > { %v524_v11 = vld [vmem:[#allocation2] sm:$0x3f] }
  0x8d   : > { %v352_v12 = vld [vmem:[#allocation2] sm:$0x3f]  ;;  %v535_v13 = vrot.slane %v524_v11, %v362_v10  ;;  %v528_v31 = vcombine.high %v524_v11, %v524_v11 }
  0x8e   : > { %v363_v14 = vrot.slane %v352_v12, %v362_v10  ;;  %v1025_v15 = vld.sshfl [vmem:[#allocation2] sm:$0x33 pattern:$0x76325410]  ;;  %v356_v26 = vcombine.high %v352_v12, %v352_v12  ;;  %v1037_v12 = vld [vmem:[%s1229_s0 + $0x8] sm:$0x3] }
  0x8f   : > { %v295_v16 = vcombine.high %v1025_v15, %v1025_v15  ;;  %v696_v17 = vld [vmem:[#allocation2] sm:$0x3f]  ;;  %544 = vrot.lane.b32.xlu1 %v535_v13, %s1090_s24  ;;  %v301_v19 = vsel %vm266_vm0, %v1025_v15, 0  ;;  %v543_v34 = vcombine.high %v535_v13, %v535_v13  ;;  %v542_v35 = vrot.slane %v528_v31, %v362_v10 }
  0x90   : > { %v438_v18 = vld [vmem:[#allocation2] sm:$0x3f]  ;;  %372 = vrot.lane.b32.xlu0 %v363_v14, %s1091_s25  ;;  %v707_v20 = vrot.slane %v696_v17, %v362_v10  ;;  %v371_v25 = vcombine.high %v363_v14, %v363_v14  ;;  %v370_v29 = vrot.slane %v356_v26, %v362_v10  ;;  %v700_v39 = vcombine.high %v696_v17, %v696_v17 }
  0x91   : > { %1026 = vmatprep.subr.msk.bf16.mxu0 %vm266_vm0, %v295_v16  ;;  %v449_v21 = vrot.slane %v438_v18, %v362_v10  ;;  %v610_v23 = vld [vmem:[#allocation2] sm:$0x3f]  ;;  %v442_v30 = vcombine.high %v438_v18, %v438_v18  ;;  %v1040_v18 = vld [vmem:[%s1229_s0 + $0xa] sm:$0x3] }
  0x92   : > { %321 = vmatpush1.bf16.msra.mxu0 %v301_v19  ;;  %v621_v24 = vrot.slane %v610_v23, %v362_v10  ;;  %v781_v27 = vld [vmem:[#allocation2] sm:$0x3f]  ;;  %v614_v36 = vcombine.high %v610_v23, %v610_v23  ;;  %v715_v40 = vcombine.high %v707_v20, %v707_v20  ;;  %v714_v41 = vrot.slane %v700_v39, %v362_v10 }
  0x93   : > { %716 = vrot.lane.b32.xlu1 %v707_v20, %s1088_s23  ;;  %v792_v28 = vrot.slane %v781_v27, %v362_v10  ;;  %v456_v32 = vrot.slane %v442_v30, %v362_v10  ;;  %v457_v33 = vcombine.high %v449_v21, %v449_v21  ;;  %v785_v42 = vcombine.high %v781_v27, %v781_v27 }
  0x94   : > { %458 = vrot.lane.b32.xlu0 %v449_v21, %s1092_s28  ;;  %v628_v37 = vrot.slane %v614_v36, %v362_v10  ;;  %v629_v38 = vcombine.high %v621_v24, %v621_v24 }
  0x95   : > { %1027 = vmatmul.mubr.msk.bf16.vlgmr.msra.gmra.mxu0 %vm296_vm10, %v286_v22  ;;  %v799_v43 = vrot.slane %v785_v42, %v362_v10  ;;  %v800_v44 = vcombine.high %v792_v28, %v792_v28 }
  0x96   : > { %508 = vmatprep.mubr.bf16.mxu0 %v1087_v0 }
  0x97   : > { %374 = vrot.lane.b32.xlu1 %v371_v25, %s1091_s25 }
  0x98   : > { %630 = vrot.lane.b32.xlu0 %v621_v24, %s1093_s29  ;;  %v1043_v24 = vld [vmem:[%s1229_s0 + $0xc] sm:$0x3] }
  0x9b   : > { %376 = vrot.lane.b32.xlu1 %v370_v29, %s1091_s25 }
  0x9c   : > { %801 = vrot.lane.b32.xlu0 %v792_v28, %s1094_s30 }
  0x9f   : > { %460 = vrot.lane.b32.xlu1 %v457_v33, %s1092_s28 }
  0xa0   : > { %462 = vrot.lane.b32.xlu0 %v456_v32, %s1092_s28 }
  0xa3   : > { %548 = vrot.lane.b32.xlu1 %v542_v35, %s1090_s24 }
  0xa4   : > { %546 = vrot.lane.b32.xlu0 %v543_v34, %s1090_s24 }
  0xa7   : > { %632 = vrot.lane.b32.xlu1 %v629_v38, %s1093_s29 }
  0xa8   : > { %634 = vrot.lane.b32.xlu0 %v628_v37, %s1093_s29  ;;  %s264_s29 = scalar_lea.vmem %s1234_s5, %s1142_s19 }
  0xab   : > { %720 = vrot.lane.b32.xlu1 %v714_v41, %s1088_s23 }
  0xac   : > { %718 = vrot.lane.b32.xlu0 %v715_v40, %s1088_s23  ;;  %s1052_s23 = sshll.u32 %s1236_s2, 3 }
  0xad   : > { %s259_s26 = scalar_lea.vmem %s1233_s4, %s1052_s23 }
  0xaf   : > { %803 = vrot.lane.b32.xlu1 %v800_v44, %s1094_s30 }
  0xb0   : > { %805 = vrot.lane.b32.xlu0 %v799_v43, %s1094_s30 }
 0x101   : > { %v545_v45 = vpop.permute.xlu1 %544 }
 0x102   : > { %v373_v46 = vpop.permute.xlu0 %372 }
 0x105   : > { %v717_v47 = vpop.permute.xlu1 %716 }
 0x106   : > { %v459_v48 = vpop.permute.xlu0 %458 }
 0x109   : > { %v375_v50 = vpop.permute.xlu1 %374 }
 0x10a   : > { %v631_v49 = vpop.permute.xlu0 %630  ;;  %v379_v51 = vsel %vm378_vm11, %v373_v46, %v375_v50 }
 0x10b   : > { %v385_v55 = vsel %vm266_vm0, %v379_v51, 0 }
 0x10d   : > { %v377_v53 = vpop.permute.xlu1 %376 }
 0x10e   : > { %v802_v52 = vpop.permute.xlu0 %801  ;;  %v380_v54 = vsel %vm378_vm11, %v375_v50, %v377_v53 }
 0x10f   : > { %1029 = vmatprep.subr.msk.bf16.mxu1 %vm266_vm0, %v380_v54 }
 0x110   : > { %405 = vmatpush1.bf16.msra.mxu1 %v385_v55 }
 0x111   : > { %v461_v58 = vpop.permute.xlu1 %460 }
 0x112   : > { %v463_v57 = vpop.permute.xlu0 %462  ;;  %v465_v59 = vsel %vm464_vm12, %v459_v48, %v461_v58 }
 0x113   : > { %v466_v60 = vsel %vm464_vm12, %v461_v58, %v463_v57  ;;  %v471_v61 = vsel %vm266_vm0, %v465_v59, 0  ;;  %1030 = vmatmul.mubr.msk.bf16.vlgmr.msra.gmra.mxu1 %vm296_vm10, %v1028_v56 }
 0x114   : > { %1032 = vmatprep.subr.msk.bf16.mxu0 %vm266_vm0, %v466_v60  ;;  %594 = vmatprep.mubr.bf16.mxu1 %v1087_v0 }
 0x115   : > { %491 = vmatpush1.bf16.msra.mxu0 %v471_v61  ;;  %v549_v1 = vpop.permute.xlu1 %548 }
 0x116   : > { %v547_v63 = vpop.permute.xlu0 %546 }
 0x117   : > { %v551_v2 = vsel %vm550_vm13, %v545_v45, %v547_v63  ;;  %v552_v3 = vsel %vm550_vm13, %v547_v63, %v549_v1 }
 0x118   : > { %v557_v4 = vsel %vm266_vm0, %v551_v2, 0  ;;  %1033 = vmatmul.mubr.msk.bf16.vlgmr.msra.gmra.mxu0 %vm296_vm10, %v1031_v62  ;;  %1035 = vmatprep.subr.msk.bf16.mxu1 %vm266_vm0, %v552_v3 }
 0x119   : > { %577 = vmatpush1.bf16.msra.mxu1 %v557_v4  ;;  %680 = vmatprep.mubr.bf16.mxu0 %v1087_v0  ;;  %v633_v7 = vpop.permute.xlu1 %632 }
 0x11a   : > { %v635_v6 = vpop.permute.xlu0 %634  ;;  %v637_v8 = vsel %vm636_vm14, %v631_v49, %v633_v7 }
 0x11b   : > { %v638_v10 = vsel %vm636_vm14, %v633_v7, %v635_v6  ;;  %v643_v11 = vsel %vm266_vm0, %v637_v8, 0  ;;  %v1095_v6 = vmov 839922192  }
 0x11c   : > { %1036 = vmatmul.mubr.msk.bf16.vlgmr.msra.gmra.mxu1 %vm296_vm10, %v1034_v5  ;;  %1038 = vmatprep.subr.msk.bf16.mxu0 %vm266_vm0, %v638_v10  ;;  %v880_v7 = vunpack.c.l.s4 %v1095_v6 }
 0x11d   : > { %663 = vmatpush1.bf16.msra.mxu0 %v643_v11  ;;  %765 = vmatprep.mubr.bf16.mxu1 %v1087_v0  ;;  %v721_v14 = vpop.permute.xlu1 %720 }
 0x11e   : > { %v719_v13 = vpop.permute.xlu0 %718  ;;  %v881_v8 = vunpack.c.0.s8 %v880_v7 }
 0x11f   : > { %v722_v15 = vsel %vm277_vm8, %v717_v47, %v719_v13  ;;  %v723_v16 = vsel %vm277_vm8, %v719_v13, %v721_v14 }
 0x120   : > { %v728_v17 = vsel %vm266_vm0, %v722_v15, 0  ;;  %1039 = vmatmul.mubr.msk.bf16.vlgmr.msra.gmra.mxu0 %vm296_vm10, %v1037_v12  ;;  %1041 = vmatprep.subr.msk.bf16.mxu1 %vm266_vm0, %v723_v16  ;;  %v884_v10 = vsub.s32 %v881_v8, %v1151_v9 }
 0x121   : > { %748 = vmatpush1.bf16.msra.mxu1 %v728_v17  ;;  %851 = vmatprep.mubr.bf16.mxu0 %v1087_v0  ;;  %v804_v20 = vpop.permute.xlu1 %803 }
 0x122   : > { %v806_v19 = vpop.permute.xlu0 %805  ;;  %v808_v21 = vsel %vm807_vm15, %v802_v52, %v804_v20 }
 0x123   : > { %v809_v22 = vsel %vm807_vm15, %v804_v20, %v806_v19  ;;  %v814_v23 = vsel %vm266_vm0, %v808_v21, 0 }
 0x124   : > { %1042 = vmatmul.mubr.msk.bf16.vlgmr.msra.gmra.mxu1 %vm296_vm10, %v1040_v18  ;;  %1044 = vmatprep.subr.msk.bf16.mxu0 %vm266_vm0, %v809_v22  ;;  %vm871_vm0 = vcmask 1043456  }
 0x125   : > { %834 = vmatpush1.bf16.msra.mxu0 %v814_v23  ;;  %v911_v23 = vld [vmem:[%s254_s22] sm:$0xf] }
 0x128   : > { %1045 = vmatmul.mubr.msk.bf16.vlgmr.msra.gmra.mxu0 %vm296_vm10, %v1043_v24 }
 0x155   : > { %v340_v25 = vpop.f32.mrf.mxu0 }
 0x157   : > { %v342_v26 = vpop.f32.mrf.mxu0 }
 0x158   : > { %v349_v0 = vcombine.low %v340_v25, %v342_v26  ;;  %v912_v25 = vunpack.c.l.bf16 %v911_v23 }
 0x159   : > { %v344_v27 = vpop.f32.mrf.mxu0 }
 0x15a   : > { %v914_v27 = vld [vmem:[%s259_s26] sm:$0xff] }
 0x15b   : > { %v345_v28 = vpop.f32.mrf.mxu0 }
 0x1d3   : > { %v424_v29 = vpop.f32.mrf.mxu1 }
 0x1d5   : > { %v426_v30 = vpop.f32.mrf.mxu1 }
 0x1d6   : > { %v434_v39 = vcombine.low %v424_v29, %v426_v30 }
 0x1d7   : > { %v428_v31 = vpop.f32.mrf.mxu1 }
 0x1d8   : > { %v510_v32 = vpop.f32.mrf.mxu0  ;;  %v436_v45 = vadd.f32 %v434_v39, %v349_v0 }
 0x1d9   : > { %v429_v33 = vpop.f32.mrf.mxu1 }
 0x1da   : > { %v512_v34 = vpop.f32.mrf.mxu0 }
 0x1db   : > { %v520_v42 = vcombine.low %v510_v32, %v512_v34 }
 0x1dc   : > { %v514_v35 = vpop.f32.mrf.mxu0  ;;  %v596_v36 = vpop.f32.mrf.mxu1 }
 0x1dd   : > { %v522_v49 = vadd.f32 %v520_v42, %v436_v45 }
 0x1de   : > { %v515_v37 = vpop.f32.mrf.mxu0  ;;  %v598_v38 = vpop.f32.mrf.mxu1 }
 0x1df   : > { %v606_v46 = vcombine.low %v596_v36, %v598_v38 }
 0x1e0   : > { %v600_v40 = vpop.f32.mrf.mxu1  ;;  %v682_v41 = vpop.f32.mrf.mxu0 }
 0x1e1   : > { %v608_v53 = vadd.f32 %v606_v46, %v522_v49 }
 0x1e2   : > { %v601_v43 = vpop.f32.mrf.mxu1  ;;  %v684_v44 = vpop.f32.mrf.mxu0 }
 0x1e3   : > { %v692_v50 = vcombine.low %v682_v41, %v684_v44 }
 0x1e4   : > { %v686_v47 = vpop.f32.mrf.mxu0  ;;  %v767_v48 = vpop.f32.mrf.mxu1 }
 0x1e5   : > { %v694_v57 = vadd.f32 %v692_v50, %v608_v53 }
 0x1e6   : > { %v687_v51 = vpop.f32.mrf.mxu0  ;;  %v769_v52 = vpop.f32.mrf.mxu1 }
 0x1e7   : > { %v777_v54 = vcombine.low %v767_v48, %v769_v52 }
 0x1e8   : > { %v853_v55 = vpop.f32.mrf.mxu0  ;;  %v771_v56 = vpop.f32.mrf.mxu1 }
 0x1e9   : > { %v779_v60 = vadd.f32 %v777_v54, %v694_v57 }
 0x1ea   : > { %v855_v58 = vpop.f32.mrf.mxu0  ;;  %v772_v59 = vpop.f32.mrf.mxu1 }
 0x1eb   : > { %v863_v61 = vcombine.low %v853_v55, %v855_v58 }
 0x1ec   : > { %v857_v62 = vpop.f32.mrf.mxu0 }
 0x1ed   : > { %v865_v63 = vadd.f32 %v863_v61, %v779_v60 }
 0x1ee   : > { %v858_v1 = vpop.f32.mrf.mxu0 }
 0x1ef   : > { %v869_v2 = vcombine.high %v865_v63, %v865_v63  ;;  %v872_v3 = vsel %vm871_vm0, %v865_v63, 0.0 }
 0x1f1   : > { %v873_v4 = vsel %vm871_vm0, %v869_v2, 0.0 }
 0x1f2   : > { %v874_v5 = vadd.f32 %v873_v4, %v872_v3 }
 0x1f4   : > { %875 = vadd.xlane.f32.xlu1 %v874_v5 }
 0x27d   : > { %v876_v11 = vpop.xlane.xlu1 %875 }
 0x27e   : > { %v877_v12 = vmul.f32 0.00390625, %v876_v11 }
 0x280   : > { %v885_v13 = vrot.slane %v877_v12, %v884_v10 }
 0x282   : > { %v887_v14 = vsub.f32 %v865_v63, %v885_v13 }
 0x284   : > { %v888_v15 = vmul.f32 %v887_v14, %v887_v14 }
 0x286   : > { %v890_v16 = vcombine.high %v888_v15, %v888_v15  ;;  %v892_v17 = vsel %vm871_vm0, %v888_v15, 0.0 }
 0x288   : > { %v893_v18 = vsel %vm871_vm0, %v890_v16, 0.0 }
 0x289   : > { %v894_v19 = vadd.f32 %v893_v18, %v892_v17 }
 0x28b   : > { %895 = vadd.xlane.f32.xlu0 %v894_v19 }
 0x314   : > { %v896_v20 = vpop.xlane.xlu0 %895 }
 0x315   : > { %v897_v21 = vmul.f32 0.00390625, %v896_v20 }
 0x317   : > { %v898_v22 = vadd.f32 1e-05, %v897_v21 }
 0x319   : > { %1077 = vrsqrt.f32 %v898_v22 }
 0x326   : > { %v1078_v9 = vpop.eup %1077 }
 0x327   : > { %v907_v24 = vrot.slane %v1078_v9, %v884_v10 }
 0x329   : > { %v909_v26 = vmul.f32 %v907_v24, %v887_v14 }
 0x32b   : > { %v910_v0 = vmax.f32 %v909_v26, 0.0 }
 0x32d   : > { %v913_v28 = vadd.f32 %v912_v25, %v910_v0 }
 0x32f   : > { %v915_v29 = vadd.f32 %v914_v27, %v913_v28 }
 0x331   : > { %v917_v30 = vcombine.high %v915_v29, %v915_v29 }
 0x333   : > { %v1046_v31 = vpack.c.bf16 %v917_v30, %v915_v29 }
 0x335   : > { %1047 = vst.sshfl [vmem:[%s264_s29] sm:$0x33 pattern:$0x76325410] %v1046_v31 }
 0x336 PF: > { %s15_s18 = sadd.s32 1, %s1085_s18  }
 0x337   : > { %p12_p4 = scmp.ge.s32.totalorder %s15_s18, 4  }
 0x339   :  { %14 = sbr.rel (!%p12_p4) target bundleno = 1 (0x1), region = 82 }

// kernel: unet_exfuse_level.8
= control target key start
LH: loop header
LB: loop body
LE: loop exit
PB: predicated region body
PF: predicated region fallthrough
CT: control target
= control target key end

     0   :  { %s891_s15 = smov 0   ;;  %s964_s0 = inlined_call_operand.vmem [shape: bf16[16,8], index: 0, kind: input, shape index: {}]   ;;  %s965_s1 = inlined_call_operand.vmem [shape: bf16[8,16], index: 1, kind: input, shape index: {}]   ;;  %s966_s2 = inlined_call_operand.vmem [shape: bf16[2,4,8,8], index: 2, kind: input, shape index: {}]   ;;  %s967_s3 = inlined_call_operand.vmem [shape: f32[2,4,16,16], index: 3, kind: input, shape index: {}]   ;;  %s968_s4 = inlined_call_operand.vmem [shape: bf16[2,4,16,16], index: 4, kind: output, shape index: {}]  }
   0x1 LB: > { %s736_s16 = sadd.s32 4294967295, %s862_s15   ;;  %p740_p0 = scmp.ge.s32.totalorder %s862_s15, 1  ;;  %s862_s15 = sphi %s891_s15, %s14_s15  }
   0x2   : > { %p172_p1 = scmp.lt.s32.totalorder %s862_s15, 3 }
   0x4   : > { %p173_p2 = pnand %p740_p0, %p172_p1 }
   0x5   : > { %p203_p3 = scmp.lt.s32.totalorder (!%p173_p2), %s736_s16, 1 }
   0x6   : > { %176 = sbr.rel (%p173_p2) target bundleno = 568 (0x238), region = 36 }
   0xb   : > { %v223_v0 = vld [vmem:[%s965_s1] sm:$0xf]  ;;  %vm241_vm0 = vcmask 1043456   ;;  %s970_s16 = smov (!%p203_p3, %s736_s16), 1  ;;  %vm234_vm1 = vcmask 64512   ;;  %v864_v10 = vmov 0.0  }
   0xc   : > { %818 = vmatprep.subr.msk.bf16.mxu0 %vm241_vm0, %v223_v0  ;;  %v243_v1 = vsel %vm241_vm0, %v223_v0, 0  ;;  %s766_s19 = sshll.u32 %s970_s16, 4  ;;  %794 = vmatprep.subr.bf16.mxu1 %v864_v10  ;;  %vm865_vm2 = vmmov 0   ;;  %v855_v27 = vld [vmem:[%s964_s0] sm:$0xff]   ;;  %s767_s25 = sshll.u32 %s970_s16, 6  ;;  %vm660_vm3 = vcmask 125952  }
   0xd   : > { %789 = vmatpush3.bf16.msra.mxu0 %v243_v1  ;;  %s207_s22 = scalar_lea.vmem %s966_s2, %s766_s19  ;;  %796 = vmatprep.mubr.msk.bf16.mxu1 %vm865_vm2, %v864_v10  ;;  %s929_s28 = scalar_lea.vmem %s967_s3, %s767_s25 }
   0xe   : > { %v853_v2 = vld [vmem:[%s207_s22] sm:$0xff]   ;;  %v854_v3 = vld [vmem:[%s207_s22 + $0x8] sm:$0xff]   ;;  %800 = vmatprep.subr.bf16.mxu0 %v864_v10  ;;  %v614_v33 = vld [vmem:[%s929_s28 + $0x10] sm:$0xff]  ;;  %s768_s29 = sshll.u32 %s970_s16, 5 }
   0xf   : > { %790 = vmatprep.mubr.msk.bf16.mxu0 %vm234_vm1, %v853_v2  ;;  %v612_v32 = vld [vmem:[%s929_s28] sm:$0xff]  ;;  %s937_s6 = scalar_lea.vmem %s968_s4, %s768_s29  ;;  %v613_v40 = vld [vmem:[%s929_s28 + $0x8] sm:$0xff]  ;;  %v615_v41 = vld [vmem:[%s929_s28 + $0x18] sm:$0xff] }
  0x10   : > { %791 = vmatmul.mubr.msk.bf16.vlgmr.msra.gmra.mxu0 %vm234_vm1, %v854_v3  ;;  %v616_v50 = vld [vmem:[%s929_s28 + $0x20] sm:$0xff]  ;;  %v618_v51 = vld [vmem:[%s929_s28 + $0x30] sm:$0xff]  ;;  %v617_v60 = vld [vmem:[%s929_s28 + $0x28] sm:$0xff] }
  0x11   : > { %802 = vmatprep.mubr.msk.bf16.mxu0 %vm865_vm2, %v864_v10  ;;  %v619_v61 = vld [vmem:[%s929_s28 + $0x38] sm:$0xff] }
  0xd0   : > { %v792_v4 = vpop.f32.mrf.mxu0 }
  0xd2   : > { %v279_v5 = vpop.f32.mrf.mxu0 }
  0xd4   : > { %v793_v6 = vpop.f32.mrf.mxu0 }
  0xd5   : > { %v841_v9 = vpack.i.bf16 %v793_v6, %v792_v4 }
  0xd6   : > { %v282_v7 = vpop.f32.mrf.mxu0 }
  0xd7   : > { %v829_v8 = vpack.i.bf16 %v282_v7, %v279_v5 }
  0xd9   : > { %830 = vxpose.xlu0.b32.start.end [1/1] (short) (narrow) %v829_v8, 16 }
  0xde   : > { %842 = vxpose.xlu0.b32.start.end [1/1] (short) (narrow) %v841_v9, 16 }
 0x155   : > { %v831_v11 = vpop.trf.xlu0 }
 0x156   : > { %v835_v12 = vunpack.i.h.bf16 %v831_v11  ;;  %v832_v14 = vunpack.i.l.bf16 %v831_v11 }
 0x159   : > { %v836_v13 = vpop.trf.xlu0 }
 0x15a   : > { %v840_v15 = vunpack.i.h.bf16 %v836_v13  ;;  %v837_v16 = vunpack.i.l.bf16 %v836_v13 }
 0x15c   : > { %v422_v17 = vpack.c.bf16 %v837_v16, %v832_v14  ;;  %v423_v18 = vpack.c.bf16 %v840_v15, %v835_v12 }
 0x15d   : > { %v843_v19 = vpop.trf.xlu0 }
 0x15e   : > { %v437_v20 = vsel %vm234_vm1, %v422_v17, 0  ;;  %v481_v21 = vsel %vm234_vm1, %v423_v18, 0  ;;  %v847_v22 = vunpack.i.h.bf16 %v843_v19  ;;  %v844_v23 = vunpack.i.l.bf16 %v843_v19 }
 0x15f   : > { %795 = vmatpush3.bf16.xpose.msra.mxu1 %v437_v20  ;;  %801 = vmatpush3.bf16.xpose.msra.mxu0 %v481_v21 }
 0x160   : > { %806 = vmatprep.subr.bf16.mxu1 %v864_v10  ;;  %812 = vmatprep.subr.bf16.mxu0 %v864_v10 }
 0x161   : > { %v848_v24 = vpop.trf.xlu0 }
 0x162   : > { %v852_v25 = vunpack.i.h.bf16 %v848_v24  ;;  %v849_v26 = vunpack.i.l.bf16 %v848_v24 }
 0x164   : > { %v424_v28 = vpack.c.bf16 %v849_v26, %v844_v23  ;;  %v425_v29 = vpack.c.bf16 %v852_v25, %v847_v22 }
 0x166   : > { %v525_v30 = vsel %vm234_vm1, %v424_v28, 0  ;;  %v569_v31 = vsel %vm234_vm1, %v425_v29, 0  ;;  %797 = vmatmul.mubr.msk.bf16.vlgmr.msra.gmra.mxu1 %vm234_vm1, %v855_v27  ;;  %803 = vmatmul.mubr.msk.bf16.vlgmr.msra.gmra.mxu0 %vm234_vm1, %v855_v27 }
 0x167   : > { %807 = vmatpush3.bf16.xpose.msra.mxu1 %v525_v30  ;;  %813 = vmatpush3.bf16.xpose.msra.mxu0 %v569_v31 }
 0x168   : > { %808 = vmatprep.mubr.msk.bf16.mxu1 %vm865_vm2, %v864_v10  ;;  %814 = vmatprep.mubr.msk.bf16.mxu0 %vm865_vm2, %v864_v10 }
 0x16e   : > { %809 = vmatmul.mubr.msk.bf16.vlgmr.msra.gmra.mxu1 %vm234_vm1, %v855_v27  ;;  %815 = vmatmul.mubr.msk.bf16.vlgmr.msra.gmra.mxu0 %vm234_vm1, %v855_v27 }
 0x226   : > { %v473_v34 = vpop.f32.mrf.mxu1  ;;  %v517_v35 = vpop.f32.mrf.mxu0 }
 0x227   : > { %v620_v36 = vmul.f32 %v612_v32, %v473_v34  ;;  %v622_v37 = vmul.f32 %v614_v33, %v517_v35 }
 0x228   : > { %v798_v38 = vpop.f32.mrf.mxu1  ;;  %v804_v39 = vpop.f32.mrf.mxu0 }
 0x229   : > { %v769_v42 = vpack.c.bf16 %v620_v36, %v620_v36  ;;  %v771_v43 = vpack.c.bf16 %v622_v37, %v622_v37 }
 0x22a   : > { %v476_v44 = vpop.f32.mrf.mxu1  ;;  %v520_v45 = vpop.f32.mrf.mxu0 }
 0x22b   : > { %661 = vst.msk [vmem:[%s937_s6] sm:$0xf] %vm660_vm3, %v769_v42  ;;  %663 = vst.msk [vmem:[%s937_s6 + $0x8] sm:$0xf] %vm660_vm3, %v771_v43  ;;  %v621_v46 = vmul.f32 %v613_v40, %v476_v44  ;;  %v623_v47 = vmul.f32 %v615_v41, %v520_v45 }
 0x22c   : > { %v799_v48 = vpop.f32.mrf.mxu1  ;;  %v805_v49 = vpop.f32.mrf.mxu0 }
 0x22d   : > { %v770_v52 = vpack.c.bf16 %v621_v46, %v621_v46  ;;  %v772_v53 = vpack.c.bf16 %v623_v47, %v623_v47 }
 0x22e   : > { %v561_v54 = vpop.f32.mrf.mxu1  ;;  %v605_v55 = vpop.f32.mrf.mxu0 }
 0x22f   : > { %662 = vst.msk [vmem:[%s937_s6 + $0x4] sm:$0xf] %vm660_vm3, %v770_v52  ;;  %664 = vst.msk [vmem:[%s937_s6 + $0xc] sm:$0xf] %vm660_vm3, %v772_v53  ;;  %v624_v56 = vmul.f32 %v616_v50, %v561_v54  ;;  %v626_v57 = vmul.f32 %v618_v51, %v605_v55 }
 0x230   : > { %v810_v58 = vpop.f32.mrf.mxu1  ;;  %v816_v59 = vpop.f32.mrf.mxu0 }
 0x231   : > { %v773_v62 = vpack.c.bf16 %v624_v56, %v624_v56  ;;  %v775_v63 = vpack.c.bf16 %v626_v57, %v626_v57 }
 0x232   : > { %v564_v0 = vpop.f32.mrf.mxu1  ;;  %v608_v1 = vpop.f32.mrf.mxu0 }
 0x233   : > { %665 = vst.msk [vmem:[%s937_s6 + $0x10] sm:$0xf] %vm660_vm3, %v773_v62  ;;  %667 = vst.msk [vmem:[%s937_s6 + $0x18] sm:$0xf] %vm660_vm3, %v775_v63  ;;  %v625_v2 = vmul.f32 %v617_v60, %v564_v0  ;;  %v627_v3 = vmul.f32 %v619_v61, %v608_v1 }
 0x234   : > { %v811_v4 = vpop.f32.mrf.mxu1  ;;  %v817_v5 = vpop.f32.mrf.mxu0 }
 0x235   : > { %v774_v6 = vpack.c.bf16 %v625_v2, %v625_v2  ;;  %v776_v7 = vpack.c.bf16 %v627_v3, %v627_v3 }
 0x237   : > { %666 = vst.msk [vmem:[%s937_s6 + $0x14] sm:$0xf] %vm660_vm3, %v774_v6  ;;  %668 = vst.msk [vmem:[%s937_s6 + $0x1c] sm:$0xf] %vm660_vm3, %v776_v7 }
 0x238 PF: > { %s14_s15 = sadd.s32 1, %s862_s15  }
 0x239   : > { %p11_p4 = scmp.ge.s32.totalorder %s14_s15, 4  }
 0x23b   :  { %13 = sbr.rel (!%p11_p4) target bundleno = 1 (0x1), region = 69 }

// kernel: unet_exfuse_level.9
= control target key start
LH: loop header
LB: loop body
LE: loop exit
PB: predicated region body
PF: predicated region fallthrough
CT: control target
= control target key end

     0   :  { %s987_s12 = smov 0   ;;  %s1082_s0 = inlined_call_operand.vmem [shape: bf16[7,4,4], index: 0, kind: input, shape index: {}]   ;;  %s1083_s1 = inlined_call_operand.vmem [shape: bf16[2,4,256], index: 1, kind: input, shape index: {}]   ;;  %s1084_s2 = inlined_call_operand.vmem [shape: f32[1,256], index: 2, kind: input, shape index: {}]   ;;  %s1085_s3 = inlined_call_operand.vmem [shape: bf16[2,4,256], index: 3, kind: output, shape index: {}]  }
   0x1 LB: > { %s889_s13 = sadd.s32 4294967295, %s956_s12   ;;  %p893_p0 = scmp.ge.s32.totalorder %s956_s12, 1  ;;  %s956_s12 = sphi %s987_s12, %s13_s12  }
   0x2   : > { %p137_p1 = scmp.lt.s32.totalorder %s956_s12, 3 }
   0x4   : > { %p138_p2 = pnand %p893_p0, %p137_p1 }
   0x5   : > { %p161_p3 = scmp.lt.s32.totalorder (!%p138_p2), %s889_s13, 1  ;;  %s959_s17 = smov (!%p138_p2), 48  }
   0x6   : > { %141 = sbr.rel (%p138_p2) target bundleno = 818 (0x332), region = 32  ;;  %s961_s18 = smov (!%p138_p2), 80  }
   0x7   : > { %s962_s19 = smov (!%p138_p2), 112   ;;  %s963_s22 = smov (!%p138_p2), 96  }
   0x8   : > { %s964_s23 = smov (!%p138_p2), 64   ;;  %s965_s24 = smov (!%p138_p2), 32  }
   0xb   : > { %vm172_vm0 = vcmask 1041408   ;;  %vm173_vm1 = vcmask 1043458   ;;  %vm175_vm2 = vcmask 783364   ;;  %v958_v0 = vmov 0   ;;  %s1087_s13 = smov (!%p161_p3, %s889_s13), 1 }
   0xc   : > { %vm174_vm3 = vmor %vm173_vm1, %vm172_vm0  ;;  %244 = vmatprep.mubr.bf16.mxu0 %v958_v0  ;;  %328 = vmatprep.mubr.bf16.mxu1 %v958_v0  ;;  %s923_s2 = sshll.u32 %s1087_s13, 2  ;;  %vm186_vm5 = vcmask 1041792   ;;  %vm188_vm7 = vcmask 390148   ;;  %vm183_vm8 = vcmask 392192   ;;  %v960_v3 = vmov 1983009808  }
   0xd   : > { %vm176_vm4 = vmor %vm175_vm2, %vm174_vm3  ;;  %s165_s16 = scalar_lea.vmem %s1083_s1, %s923_s2  ;;  %v264_v4 = vunpack.c.l.s4 %v960_v3  ;;  %v266_v5 = vlaneseq  ;;  %v192_v22 = vld [vmem:[%s1082_s0] sm:$0x3]  ;;  %vm202_vm10 = vcmask 31744   ;;  %vm284_vm11 = vcmask 916480   ;;  %v901_v56 = vld [vmem:[%s1082_s0 + $0x2] sm:$0x3]  ;;  %s170_s14 = scalar_lea.vmem %s1085_s3, %s923_s2 }
   0xe   : > { %177 = vst.msk [vmem:[#allocation2] sm:$0x3f] %vm176_vm4, %v958_v0  ;;  %v178_v1 = vld [vmem:[%s165_s16] sm:$0xf]  ;;  %vm187_vm6 = vmor %vm173_vm1, %vm186_vm5  ;;  %vm370_vm12 = vcmask 785408   ;;  %vm456_vm13 = vcmask 654336  }
   0xf   : > { %180 = vrot.lane.b32.xlu0 %v178_v1, %s959_s17  ;;  %vm189_vm9 = vmor %vm188_vm7, %vm187_vm6  ;;  %v265_v8 = vunpack.c.0.s8 %v264_v4  ;;  %v1011_v9 = vshrl.u32 %v266_v5, 7  ;;  %v904_v62 = vld [vmem:[%s1082_s0 + $0x4] sm:$0x3]  ;;  %vm542_vm14 = vcmask 523264   ;;  %v907_v5 = vld [vmem:[%s1082_s0 + $0x6] sm:$0x3] }
  0x10   : > { %vm713_vm15 = vcmask 261120  }
  0x11   : > { %v268_v10 = vsub.s32 %v265_v8, %v1011_v9 }
  0x81   : > { %v181_v2 = vpop.permute.xlu0 %180 }
  0x82   : > { %v182_v6 = vrot.slane %v181_v2, 6 }
  0x84   : > { %v184_v7 = vsel %vm183_vm8, %v182_v6, %v181_v2 }
  0x85   : > { %190 = vst.msk [vmem:[#allocation2] sm:$0x3f] %vm189_vm9, %v184_v7 }
  0x8c   : > { %v430_v11 = vld [vmem:[#allocation2] sm:$0x3f] }
  0x8d   : > { %v258_v12 = vld [vmem:[#allocation2] sm:$0x3f]  ;;  %v441_v13 = vrot.slane %v430_v11, %v268_v10  ;;  %v434_v31 = vcombine.high %v430_v11, %v430_v11 }
  0x8e   : > { %v269_v14 = vrot.slane %v258_v12, %v268_v10  ;;  %v898_v15 = vld.sshfl [vmem:[#allocation2] sm:$0x33 pattern:$0x76325410]  ;;  %v262_v26 = vcombine.high %v258_v12, %v258_v12  ;;  %v910_v12 = vld [vmem:[%s1082_s0 + $0x8] sm:$0x3] }
  0x8f   : > { %v201_v16 = vcombine.high %v898_v15, %v898_v15  ;;  %v602_v17 = vld [vmem:[#allocation2] sm:$0x3f]  ;;  %450 = vrot.lane.b32.xlu1 %v441_v13, %s961_s18  ;;  %v207_v19 = vsel %vm172_vm0, %v898_v15, 0  ;;  %v449_v34 = vcombine.high %v441_v13, %v441_v13  ;;  %v448_v35 = vrot.slane %v434_v31, %v268_v10 }
  0x90   : > { %v344_v18 = vld [vmem:[#allocation2] sm:$0x3f]  ;;  %278 = vrot.lane.b32.xlu0 %v269_v14, %s962_s19  ;;  %v613_v20 = vrot.slane %v602_v17, %v268_v10  ;;  %v277_v25 = vcombine.high %v269_v14, %v269_v14  ;;  %v276_v29 = vrot.slane %v262_v26, %v268_v10  ;;  %v606_v39 = vcombine.high %v602_v17, %v602_v17 }
  0x91   : > { %899 = vmatprep.subr.msk.bf16.mxu0 %vm172_vm0, %v201_v16  ;;  %v355_v21 = vrot.slane %v344_v18, %v268_v10  ;;  %v516_v23 = vld [vmem:[#allocation2] sm:$0x3f]  ;;  %v348_v30 = vcombine.high %v344_v18, %v344_v18  ;;  %v913_v18 = vld [vmem:[%s1082_s0 + $0xa] sm:$0x3] }
  0x92   : > { %227 = vmatpush1.bf16.msra.mxu0 %v207_v19  ;;  %v527_v24 = vrot.slane %v516_v23, %v268_v10  ;;  %v687_v27 = vld [vmem:[#allocation2] sm:$0x3f]  ;;  %v520_v36 = vcombine.high %v516_v23, %v516_v23  ;;  %v621_v40 = vcombine.high %v613_v20, %v613_v20  ;;  %v620_v41 = vrot.slane %v606_v39, %v268_v10 }
  0x93   : > { %622 = vrot.lane.b32.xlu1 %v613_v20, %s959_s17  ;;  %v698_v28 = vrot.slane %v687_v27, %v268_v10  ;;  %v362_v32 = vrot.slane %v348_v30, %v268_v10  ;;  %v363_v33 = vcombine.high %v355_v21, %v355_v21  ;;  %v691_v42 = vcombine.high %v687_v27, %v687_v27 }
  0x94   : > { %364 = vrot.lane.b32.xlu0 %v355_v21, %s963_s22  ;;  %v534_v37 = vrot.slane %v520_v36, %v268_v10  ;;  %v535_v38 = vcombine.high %v527_v24, %v527_v24 }
  0x95   : > { %900 = vmatmul.mubr.msk.bf16.vlgmr.msra.gmra.mxu0 %vm202_vm10, %v192_v22  ;;  %v705_v43 = vrot.slane %v691_v42, %v268_v10  ;;  %v706_v44 = vcombine.high %v698_v28, %v698_v28 }
  0x96   : > { %414 = vmatprep.mubr.bf16.mxu0 %v958_v0 }
  0x97   : > { %280 = vrot.lane.b32.xlu1 %v277_v25, %s962_s19 }
  0x98   : > { %536 = vrot.lane.b32.xlu0 %v527_v24, %s964_s23  ;;  %v916_v24 = vld [vmem:[%s1082_s0 + $0xc] sm:$0x3] }
  0x9b   : > { %282 = vrot.lane.b32.xlu1 %v276_v29, %s962_s19 }
  0x9c   : > { %707 = vrot.lane.b32.xlu0 %v698_v28, %s965_s24 }
  0x9f   : > { %366 = vrot.lane.b32.xlu1 %v363_v33, %s963_s22 }
  0xa0   : > { %368 = vrot.lane.b32.xlu0 %v362_v32, %s963_s22 }
  0xa3   : > { %454 = vrot.lane.b32.xlu1 %v448_v35, %s961_s18 }
  0xa4   : > { %452 = vrot.lane.b32.xlu0 %v449_v34, %s961_s18 }
  0xa7   : > { %538 = vrot.lane.b32.xlu1 %v535_v38, %s964_s23 }
  0xa8   : > { %540 = vrot.lane.b32.xlu0 %v534_v37, %s964_s23 }
  0xab   : > { %626 = vrot.lane.b32.xlu1 %v620_v41, %s959_s17 }
  0xac   : > { %624 = vrot.lane.b32.xlu0 %v621_v40, %s959_s17 }
  0xaf   : > { %709 = vrot.lane.b32.xlu1 %v706_v44, %s965_s24 }
  0xb0   : > { %711 = vrot.lane.b32.xlu0 %v705_v43, %s965_s24 }
 0x101   : > { %v451_v45 = vpop.permute.xlu1 %450 }
 0x102   : > { %v279_v46 = vpop.permute.xlu0 %278 }
 0x105   : > { %v623_v47 = vpop.permute.xlu1 %622 }
 0x106   : > { %v365_v48 = vpop.permute.xlu0 %364 }
 0x109   : > { %v281_v50 = vpop.permute.xlu1 %280 }
 0x10a   : > { %v537_v49 = vpop.permute.xlu0 %536  ;;  %v285_v51 = vsel %vm284_vm11, %v279_v46, %v281_v50 }
 0x10b   : > { %v291_v55 = vsel %vm172_vm0, %v285_v51, 0 }
 0x10d   : > { %v283_v53 = vpop.permute.xlu1 %282 }
 0x10e   : > { %v708_v52 = vpop.permute.xlu0 %707  ;;  %v286_v54 = vsel %vm284_vm11, %v281_v50, %v283_v53 }
 0x10f   : > { %902 = vmatprep.subr.msk.bf16.mxu1 %vm172_vm0, %v286_v54 }
 0x110   : > { %311 = vmatpush1.bf16.msra.mxu1 %v291_v55 }
 0x111   : > { %v367_v58 = vpop.permute.xlu1 %366 }
 0x112   : > { %v369_v57 = vpop.permute.xlu0 %368  ;;  %v371_v59 = vsel %vm370_vm12, %v365_v48, %v367_v58 }
 0x113   : > { %v372_v60 = vsel %vm370_vm12, %v367_v58, %v369_v57  ;;  %v377_v61 = vsel %vm172_vm0, %v371_v59, 0  ;;  %903 = vmatmul.mubr.msk.bf16.vlgmr.msra.gmra.mxu1 %vm202_vm10, %v901_v56 }
 0x114   : > { %905 = vmatprep.subr.msk.bf16.mxu0 %vm172_vm0, %v372_v60  ;;  %500 = vmatprep.mubr.bf16.mxu1 %v958_v0 }
 0x115   : > { %397 = vmatpush1.bf16.msra.mxu0 %v377_v61  ;;  %v455_v1 = vpop.permute.xlu1 %454 }
 0x116   : > { %v453_v63 = vpop.permute.xlu0 %452 }
 0x117   : > { %v457_v2 = vsel %vm456_vm13, %v451_v45, %v453_v63  ;;  %v458_v3 = vsel %vm456_vm13, %v453_v63, %v455_v1 }
 0x118   : > { %v463_v4 = vsel %vm172_vm0, %v457_v2, 0  ;;  %906 = vmatmul.mubr.msk.bf16.vlgmr.msra.gmra.mxu0 %vm202_vm10, %v904_v62  ;;  %908 = vmatprep.subr.msk.bf16.mxu1 %vm172_vm0, %v458_v3 }
 0x119   : > { %483 = vmatpush1.bf16.msra.mxu1 %v463_v4  ;;  %586 = vmatprep.mubr.bf16.mxu0 %v958_v0  ;;  %v539_v7 = vpop.permute.xlu1 %538 }
 0x11a   : > { %v541_v6 = vpop.permute.xlu0 %540  ;;  %v543_v8 = vsel %vm542_vm14, %v537_v49, %v539_v7 }
 0x11b   : > { %v544_v10 = vsel %vm542_vm14, %v539_v7, %v541_v6  ;;  %v549_v11 = vsel %vm172_vm0, %v543_v8, 0  ;;  %v966_v6 = vmov 839922192  }
 0x11c   : > { %909 = vmatmul.mubr.msk.bf16.vlgmr.msra.gmra.mxu1 %vm202_vm10, %v907_v5  ;;  %911 = vmatprep.subr.msk.bf16.mxu0 %vm172_vm0, %v544_v10  ;;  %v786_v7 = vunpack.c.l.s4 %v966_v6 }
 0x11d   : > { %569 = vmatpush1.bf16.msra.mxu0 %v549_v11  ;;  %671 = vmatprep.mubr.bf16.mxu1 %v958_v0  ;;  %v627_v14 = vpop.permute.xlu1 %626 }
 0x11e   : > { %v625_v13 = vpop.permute.xlu0 %624  ;;  %v787_v8 = vunpack.c.0.s8 %v786_v7 }
 0x11f   : > { %v628_v15 = vsel %vm183_vm8, %v623_v47, %v625_v13  ;;  %v629_v16 = vsel %vm183_vm8, %v625_v13, %v627_v14 }
 0x120   : > { %v634_v17 = vsel %vm172_vm0, %v628_v15, 0  ;;  %912 = vmatmul.mubr.msk.bf16.vlgmr.msra.gmra.mxu0 %vm202_vm10, %v910_v12  ;;  %914 = vmatprep.subr.msk.bf16.mxu1 %vm172_vm0, %v629_v16  ;;  %v790_v10 = vsub.s32 %v787_v8, %v1011_v9 }
 0x121   : > { %654 = vmatpush1.bf16.msra.mxu1 %v634_v17  ;;  %757 = vmatprep.mubr.bf16.mxu0 %v958_v0  ;;  %v710_v20 = vpop.permute.xlu1 %709 }
 0x122   : > { %v712_v19 = vpop.permute.xlu0 %711  ;;  %v714_v21 = vsel %vm713_vm15, %v708_v52, %v710_v20 }
 0x123   : > { %v715_v22 = vsel %vm713_vm15, %v710_v20, %v712_v19  ;;  %v720_v23 = vsel %vm172_vm0, %v714_v21, 0 }
 0x124   : > { %915 = vmatmul.mubr.msk.bf16.vlgmr.msra.gmra.mxu1 %vm202_vm10, %v913_v18  ;;  %917 = vmatprep.subr.msk.bf16.mxu0 %vm172_vm0, %v715_v22  ;;  %vm777_vm0 = vcmask 1043456  }
 0x125   : > { %740 = vmatpush1.bf16.msra.mxu0 %v720_v23 }
 0x128   : > { %918 = vmatmul.mubr.msk.bf16.vlgmr.msra.gmra.mxu0 %vm202_vm10, %v916_v24 }
 0x155   : > { %v246_v25 = vpop.f32.mrf.mxu0 }
 0x157   : > { %v248_v26 = vpop.f32.mrf.mxu0 }
 0x158   : > { %v255_v0 = vcombine.low %v246_v25, %v248_v26 }
 0x159   : > { %v250_v27 = vpop.f32.mrf.mxu0 }
 0x15b   : > { %v251_v28 = vpop.f32.mrf.mxu0 }
 0x1d3   : > { %v330_v29 = vpop.f32.mrf.mxu1 }
 0x1d5   : > { %v332_v30 = vpop.f32.mrf.mxu1 }
 0x1d6   : > { %v340_v39 = vcombine.low %v330_v29, %v332_v30 }
 0x1d7   : > { %v334_v31 = vpop.f32.mrf.mxu1 }
 0x1d8   : > { %v416_v32 = vpop.f32.mrf.mxu0  ;;  %v342_v45 = vadd.f32 %v340_v39, %v255_v0 }
 0x1d9   : > { %v335_v33 = vpop.f32.mrf.mxu1 }
 0x1da   : > { %v418_v34 = vpop.f32.mrf.mxu0 }
 0x1db   : > { %v426_v42 = vcombine.low %v416_v32, %v418_v34 }
 0x1dc   : > { %v420_v35 = vpop.f32.mrf.mxu0  ;;  %v502_v36 = vpop.f32.mrf.mxu1 }
 0x1dd   : > { %v428_v49 = vadd.f32 %v426_v42, %v342_v45 }
 0x1de   : > { %v421_v37 = vpop.f32.mrf.mxu0  ;;  %v504_v38 = vpop.f32.mrf.mxu1 }
 0x1df   : > { %v512_v46 = vcombine.low %v502_v36, %v504_v38 }
 0x1e0   : > { %v506_v40 = vpop.f32.mrf.mxu1  ;;  %v588_v41 = vpop.f32.mrf.mxu0 }
 0x1e1   : > { %v514_v53 = vadd.f32 %v512_v46, %v428_v49 }
 0x1e2   : > { %v507_v43 = vpop.f32.mrf.mxu1  ;;  %v590_v44 = vpop.f32.mrf.mxu0 }
 0x1e3   : > { %v598_v50 = vcombine.low %v588_v41, %v590_v44 }
 0x1e4   : > { %v592_v47 = vpop.f32.mrf.mxu0  ;;  %v673_v48 = vpop.f32.mrf.mxu1 }
 0x1e5   : > { %v600_v57 = vadd.f32 %v598_v50, %v514_v53 }
 0x1e6   : > { %v593_v51 = vpop.f32.mrf.mxu0  ;;  %v675_v52 = vpop.f32.mrf.mxu1 }
 0x1e7   : > { %v683_v54 = vcombine.low %v673_v48, %v675_v52 }
 0x1e8   : > { %v759_v55 = vpop.f32.mrf.mxu0  ;;  %v677_v56 = vpop.f32.mrf.mxu1 }
 0x1e9   : > { %v685_v60 = vadd.f32 %v683_v54, %v600_v57 }
 0x1ea   : > { %v761_v58 = vpop.f32.mrf.mxu0  ;;  %v678_v59 = vpop.f32.mrf.mxu1 }
 0x1eb   : > { %v769_v61 = vcombine.low %v759_v55, %v761_v58 }
 0x1ec   : > { %v763_v62 = vpop.f32.mrf.mxu0 }
 0x1ed   : > { %v771_v63 = vadd.f32 %v769_v61, %v685_v60 }
 0x1ee   : > { %v764_v1 = vpop.f32.mrf.mxu0 }
 0x1ef   : > { %v775_v2 = vcombine.high %v771_v63, %v771_v63  ;;  %v778_v3 = vsel %vm777_vm0, %v771_v63, 0.0 }
 0x1f1   : > { %v779_v4 = vsel %vm777_vm0, %v775_v2, 0.0 }
 0x1f2   : > { %v780_v5 = vadd.f32 %v779_v4, %v778_v3 }
 0x1f4   : > { %781 = vadd.xlane.f32.xlu1 %v780_v5 }
 0x27d   : > { %v782_v11 = vpop.xlane.xlu1 %781 }
 0x27e   : > { %v783_v12 = vmul.f32 0.00390625, %v782_v11 }
 0x280   : > { %v791_v13 = vrot.slane %v783_v12, %v790_v10 }
 0x282   : > { %v793_v14 = vsub.f32 %v771_v63, %v791_v13 }
 0x284   : > { %v794_v15 = vmul.f32 %v793_v14, %v793_v14 }
 0x286   : > { %v796_v16 = vcombine.high %v794_v15, %v794_v15  ;;  %v798_v17 = vsel %vm777_vm0, %v794_v15, 0.0 }
 0x288   : > { %v799_v18 = vsel %vm777_vm0, %v796_v16, 0.0 }
 0x289   : > { %v800_v19 = vadd.f32 %v799_v18, %v798_v17 }
 0x28b   : > { %801 = vadd.xlane.f32.xlu0 %v800_v19 }
 0x314   : > { %v802_v20 = vpop.xlane.xlu0 %801 }
 0x315   : > { %v803_v21 = vmul.f32 0.00390625, %v802_v20 }
 0x317   : > { %v804_v22 = vadd.f32 1e-05, %v803_v21 }
 0x319   : > { %948 = vrsqrt.f32 %v804_v22 }
 0x326   : > { %v949_v23 = vpop.eup %948 }
 0x327   : > { %v813_v24 = vrot.slane %v949_v23, %v790_v10 }
 0x329   : > { %v815_v9 = vmul.f32 %v813_v24, %v793_v14 }
 0x32b   : > { %v816_v25 = vmax.f32 %v815_v9, 0.0 }
 0x32d   : > { %v818_v26 = vcombine.high %v816_v25, %v816_v25 }
 0x32f   : > { %v919_v0 = vpack.c.bf16 %v818_v26, %v816_v25 }
 0x331   : > { %920 = vst.sshfl [vmem:[%s170_s14] sm:$0x33 pattern:$0x76325410] %v919_v0 }
 0x332 PF: > { %s13_s12 = sadd.s32 1, %s956_s12  }
 0x333   : > { %p10_p4 = scmp.ge.s32.totalorder %s13_s12, 4  }
 0x335   :  { %12 = sbr.rel (!%p10_p4) target bundleno = 1 (0x1), region = 68 }

// kernel: unet_exfuse_level.11
= control target key start
LH: loop header
LB: loop body
LE: loop exit
PB: predicated region body
PF: predicated region fallthrough
CT: control target
= control target key end

     0   :  { %s1084_s12 = smov 0   ;;  %s1211_s0 = inlined_call_operand.vmem [shape: bf16[7,4,4], index: 0, kind: input, shape index: {}]   ;;  %s1212_s1 = inlined_call_operand.vmem [shape: bf16[2,4,256], index: 1, kind: input, shape index: {}]   ;;  %s1213_s2 = inlined_call_operand.vmem [shape: f32[7,256], index: 2, kind: input, shape index: {}]   ;;  %s1214_s3 = inlined_call_operand.vmem [shape: bf16[2,4,256], index: 3, kind: output, shape index: {}]  }
   0x1 LB: > { %s979_s13 = sadd.s32 4294967295, %s1052_s12   ;;  %p983_p0 = scmp.ge.s32.totalorder %s1052_s12, 1  ;;  %s1052_s12 = sphi %s1084_s12, %s13_s12  }
   0x2   : > { %p137_p1 = scmp.lt.s32.totalorder %s1052_s12, 3 }
   0x4   : > { %p138_p2 = pnand %p983_p0, %p137_p1 }
   0x5   : > { %p161_p3 = scmp.lt.s32.totalorder (!%p138_p2), %s979_s13, 1  ;;  %s1055_s18 = smov (!%p138_p2), 3  }
   0x6   : > { %141 = sbr.rel (%p138_p2) target bundleno = 820 (0x334), region = 32  ;;  %s1057_s19 = smov (!%p138_p2), 125  }
   0x7   : > { %s1058_s20 = smov (!%p138_p2), 127   ;;  %s1059_s23 = smov (!%p138_p2), 123  }
   0x8   : > { %s1060_s24 = smov (!%p138_p2), 126   ;;  %s1061_s25 = smov (!%p138_p2), 124  }
   0x9   : > { %s1062_s26 = smov (!%p138_p2), 122  }
   0xb   : > { %vm172_vm0 = vcmask 1041408   ;;  %vm173_vm1 = vcmask 1043458   ;;  %vm175_vm2 = vcmask 46084   ;;  %v1054_v0 = vmov 0   ;;  %s1216_s13 = smov (!%p161_p3, %s979_s13), 1 }
   0xc   : > { %vm174_vm3 = vmor %vm173_vm1, %vm172_vm0  ;;  %244 = vmatprep.mubr.bf16.mxu0 %v1054_v0  ;;  %342 = vmatprep.mubr.bf16.mxu1 %v1054_v0  ;;  %s1018_s14 = sshll.u32 %s1216_s13, 2  ;;  %vm186_vm5 = vcmask 1041432   ;;  %vm188_vm7 = vcmask 21508   ;;  %vm183_vm8 = vcmask 23552   ;;  %v255_v3 = vlaneseq  ;;  %v192_v22 = vld [vmem:[%s1211_s0] sm:$0x3] }
   0xd   : > { %vm176_vm4 = vmor %vm175_vm2, %vm174_vm3  ;;  %s165_s17 = scalar_lea.vmem %s1212_s1, %s1018_s14  ;;  %v1056_v4 = vmov 1983009808   ;;  %vm202_vm10 = vcmask 31744   ;;  %vm298_vm11 = vcmask 1039360   ;;  %vm399_vm12 = vcmask 1031168   ;;  %s170_s29 = scalar_lea.vmem %s1214_s3, %s1018_s14 }
   0xe   : > { %177 = vst.msk [vmem:[#allocation2] sm:$0x3f] %vm176_vm4, %v1054_v0  ;;  %v178_v1 = vld [vmem:[%s165_s17] sm:$0xf]  ;;  %vm187_vm6 = vmor %vm173_vm1, %vm186_vm5  ;;  %v278_v5 = vunpack.c.l.s4 %v1056_v4  ;;  %v1106_v8 = vshrl.u32 %v255_v3, 7  ;;  %vm500_vm13 = vcmask 1022976  }
   0xf   : > { %180 = vrot.lane.b32.xlu0 %v178_v1, %s1055_s18  ;;  %vm189_vm9 = vmor %vm188_vm7, %vm187_vm6  ;;  %v991_v56 = vld [vmem:[%s1211_s0 + $0x2] sm:$0x3]  ;;  %v995_v62 = vld [vmem:[%s1211_s0 + $0x4] sm:$0x3]  ;;  %vm586_vm14 = vcmask 1014784   ;;  %vm687_vm15 = vcmask 1006592  }
  0x10   : > { %v279_v9 = vunpack.c.0.s8 %v278_v5  ;;  %v999_v5 = vld [vmem:[%s1211_s0 + $0x6] sm:$0x3]  ;;  %vm788_vm1 = vcmask 998400  }
  0x12   : > { %v282_v10 = vsub.s32 %v279_v9, %v1106_v8 }
  0x81   : > { %v181_v2 = vpop.permute.xlu0 %180 }
  0x82   : > { %v182_v6 = vrot.slane %v181_v2, 6 }
  0x84   : > { %v184_v7 = vsel %vm183_vm8, %v182_v6, %v181_v2 }
  0x85   : > { %190 = vst.msk [vmem:[#allocation2] sm:$0x3f] %vm189_vm9, %v184_v7 }
  0x8c   : > { %v474_v11 = vld [vmem:[#allocation2] sm:$0x3f] }
  0x8d   : > { %v272_v12 = vld [vmem:[#allocation2] sm:$0x3f]  ;;  %v485_v13 = vrot.slane %v474_v11, %v282_v10  ;;  %v478_v31 = vcombine.high %v474_v11, %v474_v11 }
  0x8e   : > { %v283_v14 = vrot.slane %v272_v12, %v282_v10  ;;  %v988_v15 = vld.sshfl [vmem:[#allocation2] sm:$0x33 pattern:$0x76325410]  ;;  %v276_v26 = vcombine.high %v272_v12, %v272_v12  ;;  %v1002_v12 = vld [vmem:[%s1211_s0 + $0x8] sm:$0x3] }
  0x8f   : > { %v201_v16 = vcombine.high %v988_v15, %v988_v15  ;;  %v661_v17 = vld [vmem:[#allocation2] sm:$0x3f]  ;;  %494 = vrot.lane.b32.xlu1 %v485_v13, %s1057_s19  ;;  %v207_v19 = vsel %vm172_vm0, %v988_v15, 0  ;;  %v493_v34 = vcombine.high %v485_v13, %v485_v13  ;;  %v492_v35 = vrot.slane %v478_v31, %v282_v10 }
  0x90   : > { %v373_v18 = vld [vmem:[#allocation2] sm:$0x3f]  ;;  %292 = vrot.lane.b32.xlu0 %v283_v14, %s1058_s20  ;;  %v672_v20 = vrot.slane %v661_v17, %v282_v10  ;;  %v291_v25 = vcombine.high %v283_v14, %v283_v14  ;;  %v290_v29 = vrot.slane %v276_v26, %v282_v10  ;;  %v665_v39 = vcombine.high %v661_v17, %v661_v17 }
  0x91   : > { %989 = vmatprep.subr.msk.bf16.mxu0 %vm172_vm0, %v201_v16  ;;  %v384_v21 = vrot.slane %v373_v18, %v282_v10  ;;  %v560_v23 = vld [vmem:[#allocation2] sm:$0x3f]  ;;  %v377_v30 = vcombine.high %v373_v18, %v373_v18  ;;  %v1006_v18 = vld [vmem:[%s1211_s0 + $0xa] sm:$0x3]  ;;  %v1169_v26 = vsub.s32 1, %v1106_v8 }
  0x92   : > { %227 = vmatpush1.bf16.msra.mxu0 %v207_v19  ;;  %v571_v24 = vrot.slane %v560_v23, %v282_v10  ;;  %v762_v27 = vld [vmem:[#allocation2] sm:$0x3f]  ;;  %v564_v36 = vcombine.high %v560_v23, %v560_v23  ;;  %v680_v40 = vcombine.high %v672_v20, %v672_v20  ;;  %v679_v41 = vrot.slane %v665_v39, %v282_v10 }
  0x93   : > { %681 = vrot.lane.b32.xlu1 %v672_v20, %s1059_s23  ;;  %v773_v28 = vrot.slane %v762_v27, %v282_v10  ;;  %v391_v32 = vrot.slane %v377_v30, %v282_v10  ;;  %v392_v33 = vcombine.high %v384_v21, %v384_v21  ;;  %v766_v42 = vcombine.high %v762_v27, %v762_v27 }
  0x94   : > { %393 = vrot.lane.b32.xlu0 %v384_v21, %s1060_s24  ;;  %v578_v37 = vrot.slane %v564_v36, %v282_v10  ;;  %v579_v38 = vcombine.high %v571_v24, %v571_v24 }
  0x95   : > { %990 = vmatmul.mubr.msk.bf16.vlgmr.msra.gmra.mxu0 %vm202_vm10, %v192_v22  ;;  %v780_v43 = vrot.slane %v766_v42, %v282_v10  ;;  %v781_v44 = vcombine.high %v773_v28, %v773_v28 }
  0x96   : > { %443 = vmatprep.mubr.bf16.mxu0 %v1054_v0 }
  0x97   : > { %294 = vrot.lane.b32.xlu1 %v291_v25, %s1058_s20  ;;  %v1163_v25 = vsub.s32 0, %v1106_v8 }
  0x98   : > { %580 = vrot.lane.b32.xlu0 %v571_v24, %s1061_s25  ;;  %v1010_v24 = vld [vmem:[%s1211_s0 + $0xc] sm:$0x3] }
  0x9b   : > { %296 = vrot.lane.b32.xlu1 %v290_v29, %s1058_s20 }
  0x9c   : > { %782 = vrot.lane.b32.xlu0 %v773_v28, %s1062_s26 }
  0x9f   : > { %395 = vrot.lane.b32.xlu1 %v392_v33, %s1060_s24 }
  0xa0   : > { %397 = vrot.lane.b32.xlu0 %v391_v32, %s1060_s24 }
  0xa3   : > { %498 = vrot.lane.b32.xlu1 %v492_v35, %s1057_s19 }
  0xa4   : > { %496 = vrot.lane.b32.xlu0 %v493_v34, %s1057_s19 }
  0xa7   : > { %582 = vrot.lane.b32.xlu1 %v579_v38, %s1061_s25 }
  0xa8   : > { %584 = vrot.lane.b32.xlu0 %v578_v37, %s1061_s25  ;;  %v994_v37 = vld [vmem:[%s1213_s2 + $0x1] ss:$8 sm:$0x3] }
  0xa9   : > { %v357_v39 = vrot.slane %v994_v37, %v1163_v25 }
  0xab   : > { %685 = vrot.lane.b32.xlu1 %v679_v41, %s1059_s23 }
  0xac   : > { %683 = vrot.lane.b32.xlu0 %v680_v40, %s1059_s23  ;;  %v361_v40 = vrot.slane %v994_v37, %v1169_v26 }
  0xaf   : > { %784 = vrot.lane.b32.xlu1 %v781_v44, %s1062_s26 }
  0xb0   : > { %786 = vrot.lane.b32.xlu0 %v780_v43, %s1062_s26  ;;  %v998_v43 = vld [vmem:[%s1213_s2 + $0x2] ss:$8 sm:$0x3] }
  0xb1   : > { %v462_v44 = vrot.slane %v998_v43, %v1169_v26 }
 0x101   : > { %v495_v45 = vpop.permute.xlu1 %494 }
 0x102   : > { %v293_v46 = vpop.permute.xlu0 %292 }
 0x105   : > { %v682_v47 = vpop.permute.xlu1 %681 }
 0x106   : > { %v394_v48 = vpop.permute.xlu0 %393 }
 0x109   : > { %v295_v50 = vpop.permute.xlu1 %294 }
 0x10a   : > { %v581_v49 = vpop.permute.xlu0 %580  ;;  %v299_v51 = vsel %vm298_vm11, %v293_v46, %v295_v50 }
 0x10b   : > { %v305_v55 = vsel %vm172_vm0, %v299_v51, 0 }
 0x10d   : > { %v297_v53 = vpop.permute.xlu1 %296 }
 0x10e   : > { %v783_v52 = vpop.permute.xlu0 %782  ;;  %v300_v54 = vsel %vm298_vm11, %v295_v50, %v297_v53 }
 0x10f   : > { %992 = vmatprep.subr.msk.bf16.mxu1 %vm172_vm0, %v300_v54 }
 0x110   : > { %325 = vmatpush1.bf16.msra.mxu1 %v305_v55  ;;  %v1005_v55 = vld [vmem:[%s1213_s2 + $0x4] ss:$8 sm:$0x3] }
 0x111   : > { %v396_v58 = vpop.permute.xlu1 %395 }
 0x112   : > { %v398_v57 = vpop.permute.xlu0 %397  ;;  %v400_v59 = vsel %vm399_vm12, %v394_v48, %v396_v58 }
 0x113   : > { %v401_v60 = vsel %vm399_vm12, %v396_v58, %v398_v57  ;;  %v406_v61 = vsel %vm172_vm0, %v400_v59, 0  ;;  %993 = vmatmul.mubr.msk.bf16.vlgmr.msra.gmra.mxu1 %vm202_vm10, %v991_v56  ;;  %v1009_v56 = vld [vmem:[%s1213_s2 + $0x5] ss:$8 sm:$0x3]  ;;  %v649_v59 = vrot.slane %v1005_v55, %v1169_v26 }
 0x114   : > { %996 = vmatprep.subr.msk.bf16.mxu0 %vm172_vm0, %v401_v60  ;;  %544 = vmatprep.mubr.bf16.mxu1 %v1054_v0 }
 0x115   : > { %426 = vmatpush1.bf16.msra.mxu0 %v406_v61  ;;  %v499_v1 = vpop.permute.xlu1 %498 }
 0x116   : > { %v497_v63 = vpop.permute.xlu0 %496 }
 0x117   : > { %v501_v2 = vsel %vm500_vm13, %v495_v45, %v497_v63  ;;  %v502_v3 = vsel %vm500_vm13, %v497_v63, %v499_v1  ;;  %v645_v63 = vrot.slane %v1005_v55, %v1163_v25  ;;  %v746_v1 = vrot.slane %v1009_v56, %v1163_v25 }
 0x118   : > { %v507_v4 = vsel %vm172_vm0, %v501_v2, 0  ;;  %997 = vmatmul.mubr.msk.bf16.vlgmr.msra.gmra.mxu0 %vm202_vm10, %v995_v62  ;;  %1000 = vmatprep.subr.msk.bf16.mxu1 %vm172_vm0, %v502_v3 }
 0x119   : > { %527 = vmatpush1.bf16.msra.mxu1 %v507_v4  ;;  %630 = vmatprep.mubr.bf16.mxu0 %v1054_v0  ;;  %v583_v7 = vpop.permute.xlu1 %582 }
 0x11a   : > { %v585_v6 = vpop.permute.xlu0 %584  ;;  %v587_v9 = vsel %vm586_vm14, %v581_v49, %v583_v7  ;;  %v458_v49 = vrot.slane %v998_v43, %v1163_v25 }
 0x11b   : > { %v588_v10 = vsel %vm586_vm14, %v583_v7, %v585_v6  ;;  %v593_v11 = vsel %vm172_vm0, %v587_v9, 0  ;;  %v750_v6 = vrot.slane %v1009_v56, %v1169_v26 }
 0x11c   : > { %1001 = vmatmul.mubr.msk.bf16.vlgmr.msra.gmra.mxu1 %vm202_vm10, %v999_v5  ;;  %1003 = vmatprep.subr.msk.bf16.mxu0 %vm172_vm0, %v588_v10  ;;  %v1013_v10 = vld [vmem:[%s1213_s2 + $0x6] ss:$8 sm:$0x3] }
 0x11d   : > { %613 = vmatpush1.bf16.msra.mxu0 %v593_v11  ;;  %731 = vmatprep.mubr.bf16.mxu1 %v1054_v0  ;;  %v686_v14 = vpop.permute.xlu1 %685 }
 0x11e   : > { %v684_v13 = vpop.permute.xlu0 %683 }
 0x11f   : > { %v688_v15 = vsel %vm687_vm15, %v682_v47, %v684_v13  ;;  %v689_v16 = vsel %vm687_vm15, %v684_v13, %v686_v14 }
 0x120   : > { %v694_v17 = vsel %vm172_vm0, %v688_v15, 0  ;;  %1004 = vmatmul.mubr.msk.bf16.vlgmr.msra.gmra.mxu0 %vm202_vm10, %v1002_v12  ;;  %1007 = vmatprep.subr.msk.bf16.mxu1 %vm172_vm0, %v689_v16 }
 0x121   : > { %714 = vmatpush1.bf16.msra.mxu1 %v694_v17  ;;  %832 = vmatprep.mubr.bf16.mxu0 %v1054_v0  ;;  %v785_v20 = vpop.permute.xlu1 %784  ;;  %v253_v0 = vld [vmem:[%s1213_s2] ss:$8 sm:$0x3] }
 0x122   : > { %v787_v19 = vpop.permute.xlu0 %786  ;;  %v789_v21 = vsel %vm788_vm1, %v783_v52, %v785_v20  ;;  %v258_v27 = vrot.slane %v253_v0, %v1163_v25  ;;  %v262_v28 = vrot.slane %v253_v0, %v1169_v26 }
 0x123   : > { %v790_v22 = vsel %vm788_vm1, %v785_v20, %v787_v19  ;;  %v795_v23 = vsel %vm172_vm0, %v789_v21, 0  ;;  %v847_v19 = vrot.slane %v1013_v10, %v1163_v25  ;;  %v851_v20 = vrot.slane %v1013_v10, %v1169_v26 }
 0x124   : > { %1008 = vmatmul.mubr.msk.bf16.vlgmr.msra.gmra.mxu1 %vm202_vm10, %v1006_v18  ;;  %1011 = vmatprep.subr.msk.bf16.mxu0 %vm172_vm0, %v790_v22  ;;  %vm867_vm0 = vcmask 1043456  }
 0x125   : > { %815 = vmatpush1.bf16.msra.mxu0 %v795_v23 }
 0x128   : > { %1012 = vmatmul.mubr.msk.bf16.vlgmr.msra.gmra.mxu0 %vm202_vm10, %v1010_v24 }
 0x155   : > { %v246_v29 = vpop.f32.mrf.mxu0 }
 0x156   : > { %v265_v30 = vmul.f32 %v258_v27, %v246_v29 }
 0x157   : > { %v248_v31 = vpop.f32.mrf.mxu0 }
 0x158   : > { %v266_v32 = vmul.f32 %v262_v28, %v248_v31 }
 0x159   : > { %v250_v33 = vpop.f32.mrf.mxu0 }
 0x15a   : > { %v269_v34 = vcombine.low %v265_v30, %v266_v32 }
 0x15b   : > { %v251_v35 = vpop.f32.mrf.mxu0 }
 0x1d3   : > { %v344_v36 = vpop.f32.mrf.mxu1 }
 0x1d4   : > { %v364_v47 = vmul.f32 %v357_v39, %v344_v36 }
 0x1d5   : > { %v346_v38 = vpop.f32.mrf.mxu1 }
 0x1d6   : > { %v365_v48 = vmul.f32 %v361_v40, %v346_v38  ;;  %v1063_v38 = vmov 839922192  }
 0x1d7   : > { %v348_v41 = vpop.f32.mrf.mxu1  ;;  %v876_v39 = vunpack.c.l.s4 %v1063_v38 }
 0x1d8   : > { %v445_v42 = vpop.f32.mrf.mxu0  ;;  %v369_v57 = vcombine.low %v364_v47, %v365_v48 }
 0x1d9   : > { %v349_v45 = vpop.f32.mrf.mxu1  ;;  %v465_v58 = vmul.f32 %v458_v49, %v445_v42  ;;  %v877_v40 = vunpack.c.0.s8 %v876_v39 }
 0x1da   : > { %v447_v46 = vpop.f32.mrf.mxu0  ;;  %v371_v4 = vadd.f32 %v369_v57, %v269_v34 }
 0x1db   : > { %v466_v52 = vmul.f32 %v462_v44, %v447_v46  ;;  %v880_v41 = vsub.s32 %v877_v40, %v1106_v8 }
 0x1dc   : > { %v449_v50 = vpop.f32.mrf.mxu0  ;;  %v546_v51 = vpop.f32.mrf.mxu1 }
 0x1dd   : > { %v470_v62 = vcombine.low %v465_v58, %v466_v52 }
 0x1de   : > { %v450_v53 = vpop.f32.mrf.mxu0  ;;  %v548_v54 = vpop.f32.mrf.mxu1 }
 0x1df   : > { %v472_v11 = vadd.f32 %v470_v62, %v371_v4  ;;  %v556_v12 = vcombine.low %v546_v51, %v548_v54 }
 0x1e0   : > { %v550_v60 = vpop.f32.mrf.mxu1  ;;  %v632_v61 = vpop.f32.mrf.mxu0 }
 0x1e1   : > { %v652_v13 = vmul.f32 %v645_v63, %v632_v61  ;;  %v558_v23 = vadd.f32 %v556_v12, %v472_v11 }
 0x1e2   : > { %v551_v2 = vpop.f32.mrf.mxu1  ;;  %v634_v3 = vpop.f32.mrf.mxu0 }
 0x1e3   : > { %v653_v5 = vmul.f32 %v649_v59, %v634_v3 }
 0x1e4   : > { %v636_v7 = vpop.f32.mrf.mxu0  ;;  %v733_v9 = vpop.f32.mrf.mxu1 }
 0x1e5   : > { %v753_v14 = vmul.f32 %v746_v1, %v733_v9  ;;  %v657_v17 = vcombine.low %v652_v13, %v653_v5 }
 0x1e6   : > { %v637_v15 = vpop.f32.mrf.mxu0  ;;  %v735_v16 = vpop.f32.mrf.mxu1 }
 0x1e7   : > { %v754_v18 = vmul.f32 %v750_v6, %v735_v16  ;;  %v659_v28 = vadd.f32 %v657_v17, %v558_v23 }
 0x1e8   : > { %v834_v21 = vpop.f32.mrf.mxu0  ;;  %v737_v22 = vpop.f32.mrf.mxu1 }
 0x1e9   : > { %v758_v24 = vcombine.low %v753_v14, %v754_v18  ;;  %v854_v29 = vmul.f32 %v847_v19, %v834_v21 }
 0x1ea   : > { %v836_v0 = vpop.f32.mrf.mxu0  ;;  %v738_v27 = vpop.f32.mrf.mxu1 }
 0x1eb   : > { %v855_v30 = vmul.f32 %v851_v20, %v836_v0  ;;  %v760_v32 = vadd.f32 %v758_v24, %v659_v28 }
 0x1ec   : > { %v838_v31 = vpop.f32.mrf.mxu0 }
 0x1ed   : > { %v859_v33 = vcombine.low %v854_v29, %v855_v30 }
 0x1ee   : > { %v839_v34 = vpop.f32.mrf.mxu0 }
 0x1ef   : > { %v861_v35 = vadd.f32 %v859_v33, %v760_v32 }
 0x1f1   : > { %v865_v36 = vcombine.high %v861_v35, %v861_v35  ;;  %v868_v25 = vsel %vm867_vm0, %v861_v35, 0.0 }
 0x1f3   : > { %v869_v26 = vsel %vm867_vm0, %v865_v36, 0.0 }
 0x1f4   : > { %v870_v37 = vadd.f32 %v869_v26, %v868_v25 }
 0x1f6   : > { %871 = vadd.xlane.f32.xlu1 %v870_v37 }
 0x27f   : > { %v872_v42 = vpop.xlane.xlu1 %871 }
 0x280   : > { %v873_v43 = vmul.f32 0.00390625, %v872_v42 }
 0x282   : > { %v881_v44 = vrot.slane %v873_v43, %v880_v41 }
 0x284   : > { %v883_v45 = vsub.f32 %v861_v35, %v881_v44 }
 0x286   : > { %v884_v46 = vmul.f32 %v883_v45, %v883_v45 }
 0x288   : > { %v886_v47 = vcombine.high %v884_v46, %v884_v46  ;;  %v888_v48 = vsel %vm867_vm0, %v884_v46, 0.0 }
 0x28a   : > { %v889_v49 = vsel %vm867_vm0, %v886_v47, 0.0 }
 0x28b   : > { %v890_v50 = vadd.f32 %v889_v49, %v888_v48 }
 0x28d   : > { %891 = vadd.xlane.f32.xlu0 %v890_v50 }
 0x316   : > { %v892_v51 = vpop.xlane.xlu0 %891 }
 0x317   : > { %v893_v52 = vmul.f32 0.00390625, %v892_v51 }
 0x319   : > { %v894_v53 = vadd.f32 1e-05, %v893_v52 }
 0x31b   : > { %1044 = vrsqrt.f32 %v894_v53 }
 0x328   : > { %v1045_v54 = vpop.eup %1044 }
 0x329   : > { %v903_v55 = vrot.slane %v1045_v54, %v880_v41 }
 0x32b   : > { %v905_v8 = vmul.f32 %v903_v55, %v883_v45 }
 0x32d   : > { %v906_v56 = vmax.f32 %v905_v8, 0.0 }
 0x32f   : > { %v908_v57 = vcombine.high %v906_v56, %v906_v56 }
 0x331   : > { %v1014_v58 = vpack.c.bf16 %v908_v57, %v906_v56 }
 0x333   : > { %1015 = vst.sshfl [vmem:[%s170_s29] sm:$0x33 pattern:$0x76325410] %v1014_v58 }
 0x334 PF: > { %s13_s12 = sadd.s32 1, %s1052_s12  }
 0x335   : > { %p10_p4 = scmp.ge.s32.totalorder %s13_s12, 4  }
 0x337   :  { %12 = sbr.rel (!%p10_p4) target bundleno = 1 (0x1), region = 73 }

// kernel: unet_exfuse_level.13
= control target key start
LH: loop header
LB: loop body
LE: loop exit
PB: predicated region body
PF: predicated region fallthrough
CT: control target
= control target key end

     0   :  { %s1920_s12 = smov 0   ;;  %s2564_s0 = inlined_call_operand.vmem [shape: bf16[4,84,4], index: 0, kind: input, shape index: {}]   ;;  %s2565_s1 = inlined_call_operand.vmem [shape: bf16[2,4,256], index: 1, kind: input, shape index: {}]   ;;  %s2566_s2 = inlined_call_operand.vmem [shape: f32[2,256], index: 2, kind: input, shape index: {}]   ;;  %s2567_s3 = inlined_call_operand.vmem [shape: f32[2,84,256], index: 3, kind: output, shape index: {}]  }
   0x1 LB: > { %s1723_s13 = sadd.s32 4294967295, %s1893_s12   ;;  %p1727_p0 = scmp.ge.s32.totalorder %s1893_s12, 1  ;;  %s1893_s12 = sphi %s1920_s12, %s13_s12  }
   0x2   : > { %p137_p1 = scmp.lt.s32.totalorder %s1893_s12, 3 }
   0x4   : > { %p138_p2 = pnand %p1727_p0, %p137_p1 }
   0x6   : > { %141 = sbr.rel (%p138_p2) target bundleno = 1061 (0x425), region = 32 }
   0xb   : > { %p161_p3 = scmp.lt.s32.totalorder %s1723_s13, 1  ;;  %vm172_vm0 = vcmask 1041408   ;;  %vm173_vm1 = vcmask 1043458   ;;  %vm175_vm2 = vcmask 136196   ;;  %v1895_v0 = vmov 0   ;;  %s1897_s18 = smov 127  }
   0xc   : > { %vm174_vm3 = vmor %vm173_vm1, %vm172_vm0  ;;  %286 = vmatprep.mubr.bf16.mxu0 %v1895_v0  ;;  %490 = vmatprep.mubr.bf16.mxu1 %v1895_v0  ;;  %v1896_v1 = vmov 1983009808   ;;  %v413_v3 = vlaneseq  ;;  %v1841_v17 = vld [vmem:[%s2564_s0] sm:$0xff]   ;;  %vm229_vm5 = vcmask 31744   ;;  %s1898_s21 = smov 112   ;;  %v1842_v25 = vld [vmem:[%s2564_s0 + $0x8] sm:$0xff]  }
   0xd   : > { %s2601_s13 = smov (!%p161_p3, %s1723_s13), 1  ;;  %vm176_vm4 = vmor %vm175_vm2, %vm174_vm3  ;;  %1836 = vset.pattern.permute.xlu1 %v1895_v0  ;;  %1837 = vset.pattern.permute.xlu0 %v1895_v0  ;;  %v411_v2 = vunpack.c.l.s4 %v1896_v1  ;;  %s1899_s24 = smov 111   ;;  %v1843_v28 = vld [vmem:[%s2564_s0 + $0x10] sm:$0xff]   ;;  %v1844_v29 = vld [vmem:[%s2564_s0 + $0x18] sm:$0xff]   ;;  %vm431_vm6 = vcmask 1039360   ;;  %vm714_vm7 = vcmask 916480  }
   0xe   : > { %177 = vst.msk [vmem:[#allocation2] sm:$0x3f] %vm176_vm4, %v1895_v0  ;;  %s1821_s14 = sshll.u32 %s2601_s13, 2  ;;  %v1940_v6 = vshrl.u32 %v413_v3, 7  ;;  %v1845_v30 = vld [vmem:[%s2564_s0 + $0x20] sm:$0xff]   ;;  %v1846_v39 = vld [vmem:[%s2564_s0 + $0x2c] sm:$0xff]  }
   0xf   : > { %s165_s17 = scalar_lea.vmem %s2565_s1, %s1821_s14  ;;  %v412_v5 = vunpack.c.0.s8 %v411_v2  ;;  %v1847_v31 = vld [vmem:[%s2564_s0 + $0x28] ss:$0 sps:$4 sm:$0x33]   ;;  %vm962_vm8 = vcmask 908288   ;;  %v1849_v46 = vld [vmem:[%s2564_s0 + $0x58] sm:$0xff]   ;;  %v1851_v53 = vld [vmem:[%s2564_s0 + $0x60] sm:$0xff]  }
  0x10   : > { %v178_v4 = vld [vmem:[%s165_s17] sm:$0xf]  ;;  %v1848_v48 = vld [vmem:[%s2564_s0 + $0x34] sm:$0xff]   ;;  %v1853_v55 = vld [vmem:[%s2564_s0 + $0x68] sm:$0xff]   ;;  %vm1232_vm9 = vcmask 1043456   ;;  %vm1242_vm10 = vcmask 1042432  }
  0x11   : > { %179 = vst [vmem:[#allocation2] sm:$0xf] %v178_v4  ;;  %v415_v7 = vsub.s32 %v412_v5, %v1940_v6  ;;  %v1850_v54 = vld [vmem:[%s2564_s0 + $0x3c] sm:$0xff]   ;;  %v1852_v56 = vld [vmem:[%s2564_s0 + $0x44] sm:$0xff]   ;;  %v1855_v57 = vld [vmem:[%s2564_s0 + $0x70] sm:$0xff]   ;;  %vm1258_vm11 = vcmask 1045504  }
  0x12   : > { %v1854_v58 = vld [vmem:[%s2564_s0 + $0x4c] sm:$0xff]   ;;  %v1857_v59 = vld [vmem:[%s2564_s0 + $0x78] sm:$0xff]   ;;  %v1856_v60 = vld [vmem:[%s2564_s0 + $0x54] ss:$0 sps:$4 sm:$0x33]   ;;  %vm1273_vm12 = vcmask 1040384  }
  0x13   : > { %v1860_v61 = vld [vmem:[%s2564_s0 + $0x80] ss:$0 sps:$4 sm:$0x33]   ;;  %v1858_v62 = vld [vmem:[%s2564_s0 + $0x84] sm:$0xff]   ;;  %v1859_v63 = vld [vmem:[%s2564_s0 + $0x8c] sm:$0xff]   ;;  %vm1293_vm13 = vcmask 1044480  }
  0x14   : > { %v1861_v1 = vld [vmem:[%s2564_s0 + $0x94] sm:$0xff]   ;;  %v1862_v2 = vld [vmem:[%s2564_s0 + $0x9c] sm:$0xff]   ;;  %v1863_v5 = vld [vmem:[%s2564_s0 + $0xa4] sm:$0xff]   ;;  %vm1308_vm14 = vcmask 1046528   ;;  %s1822_s23 = smul.u32 176, %s2601_s13 }
  0x16   : > { %s2517_s26 = scalar_lea.vmem %s2567_s3, %s1822_s23 }
  0x18   : > { %v367_v8 = vld [vmem:[#allocation2] sm:$0x3f] }
  0x19   : > { %v650_v9 = vld [vmem:[#allocation2] sm:$0x3f]  ;;  %v416_v10 = vrot.slane %v367_v8, %v415_v7  ;;  %v409_v11 = vcombine.high %v367_v8, %v367_v8 }
  0x1a   : > { %v1737_v12 = vld.sshfl [vmem:[#allocation2] sm:$0x33 pattern:$0x76325410]  ;;  %v699_v18 = vrot.slane %v650_v9, %v415_v7  ;;  %v692_v19 = vcombine.high %v650_v9, %v650_v9 }
  0x1b   : > { %v228_v13 = vcombine.high %v1737_v12, %v1737_v12  ;;  %v249_v14 = vsel %vm172_vm0, %v1737_v12, 0  ;;  %425 = vrot.lane.b32.xlu0 %v416_v10, %s1897_s18  ;;  %v424_v15 = vcombine.high %v416_v10, %v416_v10  ;;  %v423_v16 = vrot.slane %v409_v11, %v415_v7  ;;  %v898_v21 = vld [vmem:[#allocation2] sm:$0x3f]  ;;  %v1864_v11 = vld [vmem:[%s2564_s0 + $0xac] ss:$0 sps:$4 sm:$0x33]  }
  0x1c   : > { %v707_v20 = vcombine.high %v699_v18, %v699_v18  ;;  %v706_v22 = vrot.slane %v692_v19, %v415_v7  ;;  %v947_v23 = vrot.slane %v898_v21, %v415_v7  ;;  %v940_v24 = vcombine.high %v898_v21, %v898_v21 }
  0x1d   : > { %1738 = vmatprep.subr.msk.bf16.mxu0 %vm172_vm0, %v228_v13  ;;  %429 = vrot.lane.b32.xlu1 %v423_v16, %s1897_s18 }
  0x1e   : > { %269 = vmatpush1.bf16.msra.mxu0 %v249_v14  ;;  %v955_v26 = vcombine.high %v947_v23, %v947_v23  ;;  %v954_v27 = vrot.slane %v940_v24, %v415_v7 }
  0x1f   : > { %427 = vrot.lane.b32.xlu0 %v424_v15, %s1897_s18 }
  0x21   : > { %1739 = vmatmul.mubr.msk.bf16.vlgmr.msra.gmra.mxu0 %vm229_vm5, %v1841_v17  ;;  %708 = vrot.lane.b32.xlu1 %v699_v18, %s1898_s21 }
  0x22   : > { %296 = vmatprep.mubr.bf16.mxu0 %v1895_v0 }
  0x23   : > { %710 = vrot.lane.b32.xlu0 %v707_v20, %s1898_s21 }
  0x25   : > { %712 = vrot.lane.b32.xlu1 %v706_v22, %s1898_s21 }
  0x27   : > { %956 = vrot.lane.b32.xlu0 %v947_v23, %s1899_s24 }
  0x29   : > { %1740 = vmatmul.mubr.msk.bf16.gmra.mxu0 %vm229_vm5, %v1842_v25  ;;  %958 = vrot.lane.b32.xlu1 %v955_v26, %s1899_s24 }
  0x2a   : > { %306 = vmatprep.mubr.bf16.mxu0 %v1895_v0 }
  0x2b   : > { %960 = vrot.lane.b32.xlu0 %v954_v27, %s1899_s24 }
  0x31   : > { %1741 = vmatmul.mubr.msk.bf16.gmra.mxu0 %vm229_vm5, %v1843_v28 }
  0x32   : > { %316 = vmatprep.mubr.bf16.mxu0 %v1895_v0 }
  0x39   : > { %1742 = vmatmul.mubr.msk.bf16.gmra.mxu0 %vm229_vm5, %v1844_v29 }
  0x3a   : > { %326 = vmatprep.mubr.bf16.mxu0 %v1895_v0 }
  0x41   : > { %1743 = vmatmul.mubr.msk.bf16.gmra.mxu0 %vm229_vm5, %v1845_v30 }
  0x42   : > { %336 = vmatprep.mubr.bf16.mxu0 %v1895_v0 }
  0x49   : > { %1744 = vmatmul.mubr.msk.bf16.gmra.mxu0 %vm229_vm5, %v1847_v31 }
  0x4a   : > { %773 = vmatprep.mubr.bf16.mxu0 %v1895_v0 }
  0x8d   : > { %v426_v32 = vpop.permute.xlu0 %425 }
  0x8f   : > { %v430_v33 = vpop.permute.xlu1 %429 }
  0x91   : > { %v428_v34 = vpop.permute.xlu0 %427 }
  0x92   : > { %v433_v35 = vsel %vm431_vm6, %v428_v34, %v430_v33  ;;  %v432_v36 = vsel %vm431_vm6, %v426_v32, %v428_v34 }
  0x93   : > { %1762 = vmatprep.subr.msk.bf16.mxu1 %vm172_vm0, %v433_v35  ;;  %v709_v37 = vpop.permute.xlu1 %708  ;;  %v453_v38 = vsel %vm172_vm0, %v432_v36, 0 }
  0x94   : > { %473 = vmatpush1.bf16.msra.mxu1 %v453_v38 }
  0x95   : > { %v711_v40 = vpop.permute.xlu0 %710 }
  0x96   : > { %v715_v41 = vsel %vm714_vm7, %v709_v37, %v711_v40 }
  0x97   : > { %v736_v42 = vsel %vm172_vm0, %v715_v41, 0  ;;  %1763 = vmatmul.mubr.msk.bf16.vlgmr.msra.gmra.mxu1 %vm229_vm5, %v1846_v39  ;;  %v713_v43 = vpop.permute.xlu1 %712 }
  0x98   : > { %v716_v44 = vsel %vm714_vm7, %v711_v40, %v713_v43  ;;  %500 = vmatprep.mubr.bf16.mxu1 %v1895_v0 }
  0x99   : > { %v957_v45 = vpop.permute.xlu0 %956  ;;  %1787 = vmatprep.subr.msk.bf16.mxu0 %vm172_vm0, %v716_v44 }
  0x9a   : > { %756 = vmatpush1.bf16.msra.mxu0 %v736_v42 }
  0x9b   : > { %v959_v47 = vpop.permute.xlu1 %958 }
  0x9c   : > { %v963_v49 = vsel %vm962_vm8, %v957_v45, %v959_v47 }
  0x9d   : > { %v984_v50 = vsel %vm172_vm0, %v963_v49, 0  ;;  %v961_v51 = vpop.permute.xlu0 %960  ;;  %1788 = vmatmul.mubr.msk.bf16.vlgmr.msra.gmra.mxu0 %vm229_vm5, %v1849_v46 }
  0x9e   : > { %v964_v52 = vsel %vm962_vm8, %v959_v47, %v961_v51  ;;  %783 = vmatprep.mubr.bf16.mxu0 %v1895_v0 }
  0x9f   : > { %1764 = vmatmul.mubr.msk.bf16.gmra.mxu1 %vm229_vm5, %v1848_v48  ;;  %1811 = vmatprep.subr.msk.bf16.mxu1 %vm172_vm0, %v964_v52 }
  0xa0   : > { %1004 = vmatpush1.bf16.msra.mxu1 %v984_v50  ;;  %510 = vmatprep.mubr.bf16.mxu1 %v1895_v0 }
  0xa5   : > { %1789 = vmatmul.mubr.msk.bf16.gmra.mxu0 %vm229_vm5, %v1851_v53 }
  0xa6   : > { %793 = vmatprep.mubr.bf16.mxu0 %v1895_v0 }
  0xa7   : > { %1765 = vmatmul.mubr.msk.bf16.gmra.mxu1 %vm229_vm5, %v1850_v54 }
  0xa8   : > { %520 = vmatprep.mubr.bf16.mxu1 %v1895_v0 }
  0xad   : > { %1790 = vmatmul.mubr.msk.bf16.gmra.mxu0 %vm229_vm5, %v1853_v55 }
  0xae   : > { %803 = vmatprep.mubr.bf16.mxu0 %v1895_v0 }
  0xaf   : > { %1766 = vmatmul.mubr.msk.bf16.gmra.mxu1 %vm229_vm5, %v1852_v56 }
  0xb0   : > { %530 = vmatprep.mubr.bf16.mxu1 %v1895_v0 }
  0xb5   : > { %1791 = vmatmul.mubr.msk.bf16.gmra.mxu0 %vm229_vm5, %v1855_v57 }
  0xb6   : > { %813 = vmatprep.mubr.bf16.mxu0 %v1895_v0 }
  0xb7   : > { %1767 = vmatmul.mubr.msk.bf16.gmra.mxu1 %vm229_vm5, %v1854_v58 }
  0xb8   : > { %540 = vmatprep.mubr.bf16.mxu1 %v1895_v0 }
  0xbd   : > { %1792 = vmatmul.mubr.msk.bf16.gmra.mxu0 %vm229_vm5, %v1857_v59 }
  0xbe   : > { %823 = vmatprep.mubr.bf16.mxu0 %v1895_v0 }
  0xbf   : > { %1768 = vmatmul.mubr.msk.bf16.gmra.mxu1 %vm229_vm5, %v1856_v60 }
  0xc0   : > { %1021 = vmatprep.mubr.bf16.mxu1 %v1895_v0 }
  0xc5   : > { %1793 = vmatmul.mubr.msk.bf16.gmra.mxu0 %vm229_vm5, %v1860_v61 }
  0xc7   : > { %1812 = vmatmul.mubr.msk.bf16.vlgmr.msra.gmra.mxu1 %vm229_vm5, %v1858_v62  ;;  %v554_v62 = vsub.s32 0, %v1940_v6 }
  0xc8   : > { %1031 = vmatprep.mubr.bf16.mxu1 %v1895_v0 }
  0xcf   : > { %1813 = vmatmul.mubr.msk.bf16.gmra.mxu1 %vm229_vm5, %v1859_v63  ;;  %v1769_v63 = vld [vmem:[%s2566_s2 + $0x1] ss:$2 sm:$0x3] }
  0xd0   : > { %1041 = vmatprep.mubr.bf16.mxu1 %v1895_v0 }
  0xd7   : > { %1814 = vmatmul.mubr.msk.bf16.gmra.mxu1 %vm229_vm5, %v1861_v1 }
  0xd8   : > { %1051 = vmatprep.mubr.bf16.mxu1 %v1895_v0 }
  0xdf   : > { %1815 = vmatmul.mubr.msk.bf16.gmra.mxu1 %vm229_vm5, %v1862_v2 }
  0xe0   : > { %1061 = vmatprep.mubr.bf16.mxu1 %v1895_v0 }
  0xe1   : > { %v2060_v3 = vpop.f32.mrf.mxu0 }
  0xe3   : > { %v2062_v4 = vpop.f32.mrf.mxu0 }
  0xe5   : > { %v2067_v7 = vpop.f32.mrf.mxu0 }
  0xe7   : > { %v2069_v8 = vpop.f32.mrf.mxu0  ;;  %1816 = vmatmul.mubr.msk.bf16.gmra.mxu1 %vm229_vm5, %v1863_v5  ;;  %v558_v5 = vsub.s32 1, %v1940_v6 }
  0xe8   : > { %1071 = vmatprep.mubr.bf16.mxu1 %v1895_v0 }
  0xe9   : > { %v2073_v9 = vpop.f32.mrf.mxu0 }
  0xeb   : > { %v2075_v10 = vpop.f32.mrf.mxu0 }
  0xed   : > { %v2080_v12 = vpop.f32.mrf.mxu0 }
  0xef   : > { %v2082_v13 = vpop.f32.mrf.mxu0  ;;  %1817 = vmatmul.mubr.msk.bf16.gmra.mxu1 %vm229_vm5, %v1864_v11 }
  0xf1   : > { %v2085_v14 = vpop.f32.mrf.mxu0 }
  0xf3   : > { %v2087_v15 = vpop.f32.mrf.mxu0 }
  0xf5   : > { %v2089_v16 = vpop.f32.mrf.mxu0 }
  0xf7   : > { %v2091_v0 = vpop.f32.mrf.mxu0 }
  0xf9   : > { %v2093_v17 = vpop.f32.mrf.mxu0 }
  0xfb   : > { %v2095_v18 = vpop.f32.mrf.mxu0 }
  0xfd   : > { %v2097_v19 = vpop.f32.mrf.mxu0 }
  0xfe   : > { %2568 = vst [vmem:[#allocation4_spill] sm:$0xff] %v2097_v19 }
  0xff   : > { %v2099_v20 = vpop.f32.mrf.mxu0 }
 0x100   : > { %2569 = vst [vmem:[#allocation5_spill] sm:$0xff] %v2099_v20 }
 0x101   : > { %v2101_v21 = vpop.f32.mrf.mxu0 }
 0x102   : > { %2570 = vst [vmem:[#allocation6_spill] sm:$0xff] %v2101_v21 }
 0x103   : > { %v2103_v22 = vpop.f32.mrf.mxu0 }
 0x104   : > { %2571 = vst [vmem:[#allocation7_spill] sm:$0xff] %v2103_v22 }
 0x105   : > { %v2105_v23 = vpop.f32.mrf.mxu0 }
 0x106   : > { %2572 = vst [vmem:[#allocation8_spill] sm:$0xff] %v2105_v23 }
 0x107   : > { %v2107_v24 = vpop.f32.mrf.mxu0 }
 0x108   : > { %2573 = vst [vmem:[#allocation9_spill] sm:$0xff] %v2107_v24  ;;  %v2184_v24 = vrot.slane %v1769_v63, %v558_v5 }
 0x109   : > { %v338_v25 = vpop.f32.mrf.mxu0 }
 0x10a   : > { %365 = vst [vmem:[#allocation3 + $0x18] sm:$0xf] %v338_v25 }
 0x10b   : > { %v340_v26 = vpop.f32.mrf.mxu0 }
 0x10c   : > { %366 = vst [vmem:[#allocation3] sm:$0xf] %v340_v26  ;;  %v2180_v26 = vrot.slane %v1769_v63, %v554_v62 }
 0x10d   : > { %v342_v27 = vpop.f32.mrf.mxu0 }
 0x10f   : > { %v343_v28 = vpop.f32.mrf.mxu0 }
 0x111   : > { %v604_v22 = vld [vmem:[#allocation3 + $0x18] sm:$0xf] }
 0x157   : > { %v492_v29 = vpop.f32.mrf.mxu1 }
 0x159   : > { %v494_v30 = vpop.f32.mrf.mxu1 }
 0x15a   : > { %v563_v63 = vmul.f32 %v2184_v24, %v494_v30 }
 0x15b   : > { %v496_v31 = vpop.f32.mrf.mxu1 }
 0x15d   : > { %v498_v32 = vpop.f32.mrf.mxu1  ;;  %v2109_v33 = vpop.f32.mrf.mxu0 }
 0x15f   : > { %v2111_v34 = vpop.f32.mrf.mxu1  ;;  %v2113_v35 = vpop.f32.mrf.mxu0 }
 0x161   : > { %v2115_v36 = vpop.f32.mrf.mxu1  ;;  %v2117_v37 = vpop.f32.mrf.mxu0 }
 0x163   : > { %v2119_v38 = vpop.f32.mrf.mxu1  ;;  %v2121_v39 = vpop.f32.mrf.mxu0 }
 0x165   : > { %v2123_v40 = vpop.f32.mrf.mxu1  ;;  %v2125_v41 = vpop.f32.mrf.mxu0 }
 0x167   : > { %v2127_v42 = vpop.f32.mrf.mxu1  ;;  %v2129_v43 = vpop.f32.mrf.mxu0 }
 0x169   : > { %v2131_v44 = vpop.f32.mrf.mxu1  ;;  %v2133_v45 = vpop.f32.mrf.mxu0 }
 0x16b   : > { %v2135_v46 = vpop.f32.mrf.mxu1  ;;  %v2137_v47 = vpop.f32.mrf.mxu0 }
 0x16d   : > { %v2139_v48 = vpop.f32.mrf.mxu1  ;;  %v2141_v49 = vpop.f32.mrf.mxu0 }
 0x16f   : > { %v2143_v50 = vpop.f32.mrf.mxu1  ;;  %v2145_v51 = vpop.f32.mrf.mxu0 }
 0x171   : > { %v2147_v52 = vpop.f32.mrf.mxu1  ;;  %v2149_v53 = vpop.f32.mrf.mxu0 }
 0x173   : > { %v2151_v54 = vpop.f32.mrf.mxu1  ;;  %v2153_v55 = vpop.f32.mrf.mxu0 }
 0x175   : > { %v2155_v56 = vpop.f32.mrf.mxu1  ;;  %v2157_v57 = vpop.f32.mrf.mxu0 }
 0x177   : > { %v2159_v58 = vpop.f32.mrf.mxu1  ;;  %v2161_v59 = vpop.f32.mrf.mxu0 }
 0x178   : > { %2574 = vst [vmem:[#allocation10_spill] sm:$0xff] %v2159_v58  ;;  %2575 = vst [vmem:[#allocation11_spill] sm:$0xff] %v2161_v59 }
 0x179   : > { %v2163_v60 = vpop.f32.mrf.mxu1  ;;  %v2165_v61 = vpop.f32.mrf.mxu0 }
 0x17a   : > { %2576 = vst [vmem:[#allocation12_spill] sm:$0xff] %v2163_v60  ;;  %2577 = vst [vmem:[#allocation13_spill] sm:$0xff] %v2165_v61  ;;  %v605_v61 = vld [vmem:[#allocation3] sm:$0xf] }
 0x17b   : > { %v2171_v1 = vpop.f32.mrf.mxu1  ;;  %v2173_v2 = vpop.f32.mrf.mxu0 }
 0x17c   : > { %2578 = vst [vmem:[#allocation14_spill] sm:$0xff] %v2171_v1  ;;  %2579 = vst [vmem:[#allocation15_spill] sm:$0xff] %v2173_v2  ;;  %v1818_v2 = vld [vmem:[%s2566_s2 + $0x1] ss:$2 sm:$0x3] }
 0x17d   : > { %v2176_v11 = vpop.f32.mrf.mxu1  ;;  %v2178_v25 = vpop.f32.mrf.mxu0  ;;  %v2197_v60 = vrot.slane %v1818_v2, %v554_v62 }
 0x17e   : > { %2580 = vst [vmem:[#allocation16_spill] sm:$0xff] %v2176_v11  ;;  %2581 = vst [vmem:[#allocation17_spill] sm:$0xff] %v2178_v25  ;;  %v562_v11 = vmul.f32 %v2180_v26, %v492_v29  ;;  %v607_v29 = vadd.f32 %v563_v63, %v2062_v4  ;;  %v567_v4 = vmul.f32 %v2184_v24, %v2115_v36 }
 0x17f   : > { %v542_v27 = vpop.f32.mrf.mxu1  ;;  %v2182_v28 = vpop.f32.mrf.mxu0  ;;  %v568_v63 = vmul.f32 %v2180_v26, %v2119_v38 }
 0x180   : > { %2582 = vst [vmem:[#allocation18_spill] sm:$0xff] %v2182_v28  ;;  %v582_v23 = vmul.f32 %v2180_v26, %v542_v27  ;;  %v606_v19 = vadd.f32 %v562_v11, %v2060_v3 }
 0x181   : > { %v544_v21 = vpop.f32.mrf.mxu1  ;;  %v2190_v6 = vpop.f32.mrf.mxu0 }
 0x182   : > { %2583 = vst [vmem:[#allocation19_spill] sm:$0xff] %v2190_v6  ;;  %v626_v25 = vadd.f32 %v604_v22, %v582_v23  ;;  %v583_v1 = vmul.f32 %v2184_v24, %v544_v21  ;;  %v564_v6 = vmul.f32 %v2180_v26, %v496_v31  ;;  %v2201_v22 = vrot.slane %v1818_v2, %v558_v5 }
 0x183   : > { %v546_v20 = vpop.f32.mrf.mxu1  ;;  %v2194_v28 = vpop.f32.mrf.mxu0  ;;  %v565_v21 = vmul.f32 %v2184_v24, %v498_v32  ;;  %v854_v30 = vadd.f32 %v2109_v33, %v606_v19 }
 0x184   : > { %648 = vst [vmem:[#allocation3 + $0x18] sm:$0xf] %v626_v25  ;;  %v627_v27 = vadd.f32 %v605_v61, %v583_v1  ;;  %v608_v31 = vadd.f32 %v564_v6, %v2067_v7  ;;  %v855_v1 = vadd.f32 %v2113_v35, %v607_v29 }
 0x185   : > { %v547_v59 = vpop.f32.mrf.mxu1  ;;  %v825_v58 = vpop.f32.mrf.mxu0  ;;  %v609_v5 = vadd.f32 %v565_v21, %v2069_v8 }
 0x186   : > { %649 = vst [vmem:[#allocation3] sm:$0xf] %v627_v27  ;;  %v566_v59 = vmul.f32 %v2180_v26, %v2111_v34  ;;  %v856_v34 = vadd.f32 %v2117_v37, %v608_v31  ;;  %v571_v31 = vmul.f32 %v2184_v24, %v2131_v44 }
 0x187   : > { %v1023_v20 = vpop.f32.mrf.mxu1  ;;  %v827_v23 = vpop.f32.mrf.mxu0  ;;  %v857_v8 = vadd.f32 %v2121_v39, %v609_v5 }
 0x188   : > { %v1092_v61 = vmul.f32 %v2197_v60, %v1023_v20  ;;  %v610_v35 = vadd.f32 %v566_v59, %v2073_v9  ;;  %v569_v9 = vmul.f32 %v2184_v24, %v2123_v40  ;;  %v612_v59 = vadd.f32 %v568_v63, %v2080_v12 }
 0x189   : > { %v1025_v62 = vpop.f32.mrf.mxu1  ;;  %v829_v3 = vpop.f32.mrf.mxu0 }
 0x18a   : > { %v2211_v2 = vadd.f32 %v1092_v61, %v854_v30  ;;  %v1093_v32 = vmul.f32 %v2201_v22, %v1025_v62  ;;  %v858_v38 = vadd.f32 %v2125_v41, %v610_v35  ;;  %v860_v12 = vadd.f32 %v2133_v45, %v612_v59 }
 0x18b   : > { %v1027_v19 = vpop.f32.mrf.mxu1  ;;  %v852_v33 = vld [vmem:[#allocation3 + $0x18] sm:$0xf]  ;;  %v830_v11 = vpop.f32.mrf.mxu0  ;;  %v615_v45 = vadd.f32 %v571_v31, %v2087_v15  ;;  %v574_v35 = vmul.f32 %v2180_v26, %v2143_v50 }
 0x18c   : > { %v2218_v25 = vadd.f32 %v1093_v32, %v855_v1  ;;  %v1094_v7 = vmul.f32 %v2197_v60, %v1027_v19  ;;  %v874_v6 = vadd.f32 %v852_v33, %v825_v58  ;;  %v611_v58 = vadd.f32 %v567_v4, %v2075_v10 }
 0x18d   : > { %v1029_v27 = vpop.f32.mrf.mxu1  ;;  %v853_v21 = vld [vmem:[#allocation3] sm:$0xf]  ;;  %v613_v32 = vadd.f32 %v569_v9, %v2082_v13  ;;  %v572_v4 = vmul.f32 %v2180_v26, %v2135_v46 }
 0x18e   : > { %v2225_v36 = vadd.f32 %v1094_v7, %v856_v34  ;;  %v1095_v20 = vmul.f32 %v2201_v22, %v1029_v27  ;;  %896 = vst [vmem:[#allocation3 + $0x18] sm:$0xf] %v874_v6  ;;  %v875_v37 = vadd.f32 %v853_v21, %v827_v23  ;;  %v1202_v29 = vadd.f32 %v2218_v25, %v2211_v2 }
 0x18f   : > { %v1033_v30 = vpop.f32.mrf.mxu1  ;;  %v570_v23 = vmul.f32 %v2180_v26, %v2127_v42  ;;  %v859_v10 = vadd.f32 %v2129_v43, %v611_v58  ;;  %v861_v33 = vadd.f32 %v2137_v47, %v613_v32  ;;  %v573_v7 = vmul.f32 %v2184_v24, %v2139_v48 }
 0x190   : > { %v2234_v39 = vadd.f32 %v1095_v20, %v857_v8  ;;  %v1096_v61 = vmul.f32 %v2197_v60, %v1033_v30  ;;  %897 = vst [vmem:[#allocation3] sm:$0xf] %v875_v37  ;;  %1203 = vadd.xlane.f32.xlu0 %v1202_v29  ;;  %v616_v47 = vadd.f32 %v572_v4, %v2089_v16  ;;  %v2589_v4 = vld [vmem:[#allocation13_spill] sm:$0xff] }
 0x191   : > { %v1035_v62 = vpop.f32.mrf.mxu1  ;;  %v614_v43 = vadd.f32 %v570_v23, %v2085_v14  ;;  %v863_v8 = vadd.f32 %v2145_v51, %v615_v45  ;;  %v617_v20 = vadd.f32 %v573_v7, %v2091_v0  ;;  %v618_v51 = vadd.f32 %v574_v35, %v2093_v17 }
 0x192   : > { %v2241_v3 = vadd.f32 %v1096_v61, %v858_v38  ;;  %v1097_v40 = vmul.f32 %v2201_v22, %v1035_v62  ;;  %v1205_v41 = vadd.f32 %v2234_v39, %v2225_v36  ;;  %v864_v16 = vadd.f32 %v2149_v53, %v616_v47  ;;  %v2585_v62 = vld [vmem:[#allocation10_spill] sm:$0xff] }
 0x193   : > { %v1037_v1 = vpop.f32.mrf.mxu1  ;;  %v862_v14 = vadd.f32 %v2141_v49, %v614_v43  ;;  %v575_v49 = vmul.f32 %v2184_v24, %v2147_v52  ;;  %v576_v29 = vmul.f32 %v2180_v26, %v2151_v54  ;;  %v865_v30 = vadd.f32 %v2153_v55, %v617_v20  ;;  %v2584_v55 = vld [vmem:[#allocation4_spill] sm:$0xff] }
 0x194   : > { %v2250_v5 = vadd.f32 %v1097_v40, %v859_v10  ;;  %v1098_v42 = vmul.f32 %v2197_v60, %v1037_v1  ;;  %1206 = vadd.xlane.f32.xlu1 %v1205_v41  ;;  %v577_v61 = vmul.f32 %v2184_v24, %v2155_v56  ;;  %v866_v17 = vadd.f32 %v2157_v57, %v618_v51  ;;  %v2586_v41 = vld [vmem:[#allocation11_spill] sm:$0xff]  ;;  %v2587_v57 = vld [vmem:[#allocation12_spill] sm:$0xff] }
 0x195   : > { %v1039_v19 = vpop.f32.mrf.mxu1  ;;  %v619_v53 = vadd.f32 %v575_v49, %v2095_v18  ;;  %v620_v23 = vadd.f32 %v576_v29, %v2584_v55  ;;  %v578_v10 = vmul.f32 %v2180_v26, %v2585_v62  ;;  %v579_v32 = vmul.f32 %v2184_v24, %v2587_v57  ;;  %v2596_v29 = vld [vmem:[#allocation8_spill] sm:$0xff]  ;;  %v2599_v55 = vld [vmem:[#allocation19_spill] sm:$0xff] }
 0x196   : > { %v2257_v11 = vadd.f32 %v1098_v42, %v860_v12  ;;  %v1099_v44 = vmul.f32 %v2201_v22, %v1039_v19  ;;  %v1208_v13 = vadd.f32 %v2250_v5, %v2241_v3  ;;  %v2588_v42 = vld [vmem:[#allocation5_spill] sm:$0xff] }
 0x197   : > { %v1043_v34 = vpop.f32.mrf.mxu1  ;;  %v867_v31 = vadd.f32 %v2586_v41, %v619_v53  ;;  %v621_v43 = vadd.f32 %v577_v61, %v2588_v42  ;;  %v868_v19 = vadd.f32 %v2589_v4, %v620_v23  ;;  %v1134_v42 = vld [vmem:[#allocation3 + $0x18] sm:$0xf] }
 0x198   : > { %v2266_v6 = vadd.f32 %v1099_v44, %v861_v33  ;;  %v1100_v46 = vmul.f32 %v2197_v60, %v1043_v34  ;;  %1209 = vadd.xlane.f32.xlu1 %v1208_v13  ;;  %v2590_v13 = vld [vmem:[#allocation6_spill] sm:$0xff] }
 0x199   : > { %v1045_v63 = vpop.f32.mrf.mxu1  ;;  %v622_v45 = vadd.f32 %v578_v10, %v2590_v13  ;;  %v2591_v34 = vld [vmem:[#allocation14_spill] sm:$0xff] }
 0x19a   : > { %v2273_v15 = vadd.f32 %v1100_v46, %v862_v14  ;;  %v1101_v27 = vmul.f32 %v2201_v22, %v1045_v63  ;;  %v1211_v48 = vadd.f32 %v2266_v6, %v2257_v11  ;;  %v580_v7 = vmul.f32 %v2180_v26, %v2591_v34  ;;  %v2592_v46 = vld [vmem:[#allocation15_spill] sm:$0xff] }
 0x19b   : > { %v1047_v21 = vpop.f32.mrf.mxu1  ;;  %v869_v47 = vadd.f32 %v2592_v46, %v621_v43 }
 0x19c   : > { %v2282_v37 = vadd.f32 %v1101_v27, %v863_v8  ;;  %v1102_v50 = vmul.f32 %v2197_v60, %v1047_v21  ;;  %1212 = vadd.xlane.f32.xlu0 %v1211_v48  ;;  %v2593_v27 = vld [vmem:[#allocation7_spill] sm:$0xff]  ;;  %v2594_v21 = vld [vmem:[#allocation16_spill] sm:$0xff] }
 0x19d   : > { %v1049_v58 = vpop.f32.mrf.mxu1  ;;  %v623_v48 = vadd.f32 %v579_v32, %v2593_v27  ;;  %v581_v20 = vmul.f32 %v2184_v24, %v2594_v21 }
 0x19e   : > { %v2289_v9 = vadd.f32 %v1102_v50, %v864_v16  ;;  %v1103_v52 = vmul.f32 %v2201_v22, %v1049_v58  ;;  %v1214_v0 = vadd.f32 %v2282_v37, %v2273_v15  ;;  %v2595_v16 = vld [vmem:[#allocation17_spill] sm:$0xff]  ;;  %v624_v58 = vadd.f32 %v580_v7, %v2596_v29 }
 0x19f   : > { %v1053_v38 = vpop.f32.mrf.mxu1  ;;  %v870_v50 = vadd.f32 %v2595_v16, %v622_v45 }
 0x1a0   : > { %v2298_v59 = vadd.f32 %v1103_v52, %v865_v30  ;;  %v1104_v54 = vmul.f32 %v2197_v60, %v1053_v38  ;;  %1215 = vadd.xlane.f32.xlu0 %v1214_v0  ;;  %v2597_v52 = vld [vmem:[#allocation18_spill] sm:$0xff]  ;;  %v872_v23 = vadd.f32 %v2599_v55, %v624_v58 }
 0x1a1   : > { %v1055_v40 = vpop.f32.mrf.mxu1  ;;  %v871_v0 = vadd.f32 %v2597_v52, %v623_v48 }
 0x1a2   : > { %v2305_v18 = vadd.f32 %v1104_v54, %v866_v17  ;;  %v1105_v1 = vmul.f32 %v2201_v22, %v1055_v40  ;;  %v1217_v56 = vadd.f32 %v2298_v59, %v2289_v9  ;;  %v2598_v17 = vld [vmem:[#allocation9_spill] sm:$0xff] }
 0x1a3   : > { %v1057_v12 = vpop.f32.mrf.mxu1  ;;  %v625_v54 = vadd.f32 %v581_v20, %v2598_v17 }
 0x1a4   : > { %v2314_v33 = vadd.f32 %v1105_v1, %v867_v31  ;;  %v1106_v44 = vmul.f32 %v2197_v60, %v1057_v12  ;;  %1218 = vadd.xlane.f32.xlu1 %v1217_v56 }
 0x1a5   : > { %v1059_v14 = vpop.f32.mrf.mxu1  ;;  %v873_v41 = vadd.f32 %v2194_v28, %v625_v54 }
 0x1a6   : > { %v2321_v35 = vadd.f32 %v1106_v44, %v868_v19  ;;  %v1107_v63 = vmul.f32 %v2201_v22, %v1059_v14  ;;  %v1220_v8 = vadd.f32 %v2314_v33, %v2305_v18  ;;  %v1135_v44 = vld [vmem:[#allocation3] sm:$0xf] }
 0x1a7   : > { %v1063_v49 = vpop.f32.mrf.mxu1 }
 0x1a8   : > { %v2330_v51 = vadd.f32 %v1107_v63, %v869_v47  ;;  %v1108_v26 = vmul.f32 %v2197_v60, %v1063_v49  ;;  %1221 = vadd.xlane.f32.xlu0 %v1220_v8 }
 0x1a9   : > { %v1065_v30 = vpop.f32.mrf.mxu1 }
 0x1aa   : > { %v2335_v53 = vadd.f32 %v1108_v26, %v870_v50  ;;  %v1109_v38 = vmul.f32 %v2201_v22, %v1065_v30  ;;  %v1223_v61 = vadd.f32 %v2330_v51, %v2321_v35 }
 0x1ab   : > { %v1067_v24 = vpop.f32.mrf.mxu1 }
 0x1ac   : > { %v2342_v62 = vadd.f32 %v1109_v38, %v871_v0  ;;  %v1110_v10 = vmul.f32 %v2197_v60, %v1067_v24  ;;  %1224 = vadd.xlane.f32.xlu1 %v1223_v61 }
 0x1ad   : > { %v1069_v40 = vpop.f32.mrf.mxu1 }
 0x1ae   : > { %v2346_v31 = vadd.f32 %v1110_v10, %v872_v23  ;;  %v1111_v1 = vmul.f32 %v2201_v22, %v1069_v40  ;;  %v1226_v56 = vadd.f32 %v2342_v62, %v2335_v53 }
 0x1af   : > { %v1073_v57 = vpop.f32.mrf.mxu1 }
 0x1b0   : > { %v2351_v32 = vadd.f32 %v1111_v1, %v873_v41  ;;  %v1112_v12 = vmul.f32 %v2197_v60, %v1073_v57  ;;  %1227 = vadd.xlane.f32.xlu0 %v1226_v56 }
 0x1b1   : > { %v1075_v43 = vpop.f32.mrf.mxu1 }
 0x1b2   : > { %v1156_v4 = vadd.f32 %v1134_v42, %v1112_v12  ;;  %v1113_v19 = vmul.f32 %v2201_v22, %v1075_v43  ;;  %v1229_v28 = vadd.f32 %v2351_v32, %v2346_v31 }
 0x1b3   : > { %v1077_v13 = vpop.f32.mrf.mxu1 }
 0x1b4   : > { %1178 = vst [vmem:[#allocation3 + $0x18] sm:$0xf] %v1156_v4  ;;  %v1157_v45 = vadd.f32 %v1135_v44, %v1113_v19  ;;  %1230 = vadd.xlane.f32.xlu1 %v1229_v28 }
 0x1b5   : > { %v1078_v34 = vpop.f32.mrf.mxu1 }
 0x1b6   : > { %1179 = vst [vmem:[#allocation3] sm:$0xf] %v1157_v45 }
 0x1bb   : > { %v2357_v7 = vld [vmem:[#allocation3 + $0x18] sm:$0xf] }
 0x1bc   : > { %v1233_v14 = vsel %vm1232_vm9, %v2357_v7, 0.0 }
 0x1bd   : > { %v2359_v60 = vld [vmem:[#allocation3] sm:$0xf] }
 0x1be   : > { %v1234_v22 = vsel %vm1232_vm9, %v2359_v60, 0.0 }
 0x1bf   : > { %v1235_v46 = vadd.f32 %v1234_v22, %v1233_v14 }
 0x1c1   : > { %1236 = vadd.xlane.f32.xlu0 %v1235_v46 }
 0x219   : > { %v1204_v47 = vpop.xlane.xlu0 %1203 }
 0x21d   : > { %v1207_v63 = vpop.xlane.xlu1 %1206 }
 0x221   : > { %v1210_v27 = vpop.xlane.xlu1 %1209 }
 0x222   : > { %v1243_v16 = vrot.slane %v1210_v27, 5 }
 0x225   : > { %v1213_v8 = vpop.xlane.xlu0 %1212 }
 0x226   : > { %v1244_v20 = vrot.slane %v1213_v8, 5 }
 0x228   : > { %v1245_v29 = vsel %vm1242_vm10, %v1243_v16, %v1244_v20 }
 0x229   : > { %v1216_v48 = vpop.xlane.xlu0 %1215  ;;  %v1253_v38 = vadd.f32 %v1245_v29, %v1204_v47 }
 0x22a   : > { %v1246_v58 = vrot.slane %v1216_v48, 5 }
 0x22c   : > { %v1247_v24 = vsel %vm1242_vm10, %v1244_v20, %v1246_v58 }
 0x22d   : > { %v1219_v49 = vpop.xlane.xlu1 %1218  ;;  %v1254_v40 = vadd.f32 %v1247_v24, %v1207_v63 }
 0x22e   : > { %v1259_v30 = vrot.slane %v1219_v49, 2  ;;  %v1248_v4 = vrot.slane %v1219_v49, 5 }
 0x230   : > { %v1249_v13 = vsel %vm1242_vm10, %v1246_v58, %v1248_v4 }
 0x231   : > { %v1222_v21 = vpop.xlane.xlu0 %1221  ;;  %v1255_v14 = vadd.f32 %v1249_v13, %v1210_v27 }
 0x232   : > { %v1260_v50 = vrot.slane %v1222_v21, 2 }
 0x234   : > { %v1261_v52 = vsel %vm1258_vm11, %v1259_v30, %v1260_v50 }
 0x235   : > { %v1225_v26 = vpop.xlane.xlu1 %1224  ;;  %v1267_v55 = vadd.f32 %v1261_v52, %v1253_v38 }
 0x236   : > { %v1262_v0 = vrot.slane %v1225_v26, 2  ;;  %v1274_v17 = vrot.slane %v1225_v26, 7 }
 0x238   : > { %v1263_v23 = vsel %vm1258_vm11, %v1260_v50, %v1262_v0  ;;  %v1269_v63 = vadd.f32 %v1262_v0, %v1255_v14 }
 0x239   : > { %v1228_v61 = vpop.xlane.xlu0 %1227  ;;  %v1268_v57 = vadd.f32 %v1263_v23, %v1254_v40 }
 0x23a   : > { %v1275_v54 = vrot.slane %v1228_v61, 7 }
 0x23c   : > { %v1276_v10 = vsel %vm1273_vm12, %v1274_v17, %v1275_v54 }
 0x23d   : > { %v1284_v41 = vadd.f32 %v1276_v10, %v1267_v55  ;;  %v1231_v1 = vpop.xlane.xlu1 %1230 }
 0x23e   : > { %v1277_v56 = vrot.slane %v1231_v1, 7 }
 0x23f   : > { %v1287_v12 = vmul.f32 0.0009765625, %v1284_v41 }
 0x240   : > { %v1278_v42 = vsel %vm1273_vm12, %v1275_v54, %v1277_v56 }
 0x241   : > { %v1285_v43 = vadd.f32 %v1278_v42, %v1268_v57  ;;  %1319 = vperm.xlu1 %1836, %v1287_v12   ;;  %v1294_v28 = vrot.slane %v1287_v12, 3  ;;  %v1301_v46 = vrot.slane %v1287_v12, 6  ;;  %v1309_v0 = vrot.slane %v1287_v12, 1 }
 0x243   : > { %v1288_v19 = vmul.f32 0.0009765625, %v1285_v43 }
 0x245   : > { %1323 = vperm.xlu1 %1836, %v1288_v19   ;;  %v1295_v44 = vrot.slane %v1288_v19, 3  ;;  %v1302_v34 = vrot.slane %v1288_v19, 6  ;;  %v1310_v27 = vrot.slane %v1288_v19, 1 }
 0x247   : > { %v1296_v45 = vsel %vm1293_vm13, %v1294_v28, %v1295_v44  ;;  %v1303_v8 = vsel %vm172_vm0, %v1301_v46, %v1302_v34  ;;  %v1311_v61 = vsel %vm1308_vm14, %v1309_v0, %v1310_v27 }
 0x249   : > { %1332 = vperm.xlu1 %1836, %v1296_v45  }
 0x24a   : > { %v1237_v22 = vpop.xlane.xlu0 %1236 }
 0x24b   : > { %v1279_v47 = vrot.slane %v1237_v22, 7 }
 0x24d   : > { %v1280_v48 = vsel %vm1273_vm12, %v1277_v56, %v1279_v47  ;;  %1345 = vperm.xlu1 %1836, %v1303_v8  }
 0x24e   : > { %v1286_v49 = vadd.f32 %v1280_v48, %v1269_v63 }
 0x250   : > { %v1289_v21 = vmul.f32 0.0009765625, %v1286_v49 }
 0x252   : > { %v1297_v20 = vrot.slane %v1289_v21, 3  ;;  %v1315_v16 = vsel %vm1293_vm13, %v1289_v21, %v1294_v28  ;;  %v1312_v26 = vrot.slane %v1289_v21, 1  ;;  %v1304_v29 = vrot.slane %v1289_v21, 6 }
 0x253   : > { %1328 = vperm.xlu1 %1836, %v1315_v16  }
 0x254   : > { %v1298_v50 = vsel %vm1293_vm13, %v1295_v44, %v1297_v20  ;;  %v1313_v58 = vsel %vm1308_vm14, %v1310_v27, %v1312_v26  ;;  %v1316_v30 = vsel %vm172_vm0, %v1297_v20, %v1301_v46  ;;  %v1305_v52 = vsel %vm172_vm0, %v1302_v34, %v1304_v29 }
 0x255   : > { %1336 = vperm.xlu0 %1837, %v1298_v50   ;;  %v1317_v38 = vsel %vm1308_vm14, %v1305_v52, %v1309_v0 }
 0x257   : > { %1362 = vperm.xlu1 %1836, %v1312_v26  }
 0x259   : > { %1358 = vperm.xlu0 %1837, %v1313_v58  }
 0x25b   : > { %1341 = vperm.xlu1 %1836, %v1316_v30  }
 0x25f   : > { %1350 = vperm.xlu1 %1836, %v1317_v38  }
 0x263   : > { %1354 = vperm.xlu1 %1836, %v1311_v61  }
 0x2bc   : > { %v1320_v24 = vpop.permute.xlu1 %1319 }
 0x2bd   : > { %v2383_v17 = vsub.f32 %v2211_v2, %v1320_v24  ;;  %v2386_v54 = vsub.f32 %v2218_v25, %v1320_v24 }
 0x2bf   : > { %v1387_v55 = vmul.f32 %v2383_v17, %v2383_v17  ;;  %v1388_v23 = vmul.f32 %v2386_v54, %v2386_v54 }
 0x2c0   : > { %v1324_v10 = vpop.permute.xlu1 %1323 }
 0x2c1   : > { %v2393_v40 = vsub.f32 %v2225_v36, %v1324_v10  ;;  %v2396_v41 = vsub.f32 %v2234_v39, %v1324_v10  ;;  %v1409_v1 = vadd.f32 %v1388_v23, %v1387_v55 }
 0x2c3   : > { %1410 = vadd.xlane.f32.xlu1 %v1409_v1  ;;  %v1389_v2 = vmul.f32 %v2393_v40, %v2393_v40  ;;  %v1390_v25 = vmul.f32 %v2396_v41, %v2396_v41 }
 0x2c4   : > { %v1333_v56 = vpop.permute.xlu1 %1332 }
 0x2c5   : > { %v2403_v57 = vsub.f32 %v2257_v11, %v1333_v56  ;;  %v2406_v12 = vsub.f32 %v2266_v6, %v1333_v56  ;;  %v1412_v36 = vadd.f32 %v1390_v25, %v1389_v2 }
 0x2c7   : > { %1413 = vadd.xlane.f32.xlu0 %v1412_v36  ;;  %v1393_v39 = vmul.f32 %v2403_v57, %v2403_v57  ;;  %v1394_v42 = vmul.f32 %v2406_v12, %v2406_v12 }
 0x2c8   : > { %v1346_v43 = vpop.permute.xlu1 %1345 }
 0x2c9   : > { %v2413_v4 = vsub.f32 %v2305_v18, %v1346_v43  ;;  %v2416_v19 = vsub.f32 %v2314_v33, %v1346_v43  ;;  %v1418_v11 = vadd.f32 %v1394_v42, %v1393_v39 }
 0x2cb   : > { %1419 = vadd.xlane.f32.xlu1 %v1418_v11  ;;  %v1399_v6 = vmul.f32 %v2413_v4, %v2413_v4  ;;  %v1400_v28 = vmul.f32 %v2416_v19, %v2416_v19 }
 0x2cd   : > { %v1427_v44 = vadd.f32 %v1400_v28, %v1399_v6 }
 0x2ce   : > { %v1329_v13 = vpop.permute.xlu1 %1328 }
 0x2cf   : > { %v2423_v45 = vsub.f32 %v2241_v3, %v1329_v13  ;;  %v2426_v34 = vsub.f32 %v2250_v5, %v1329_v13  ;;  %1428 = vadd.xlane.f32.xlu0 %v1427_v44 }
 0x2d0   : > { %v1337_v18 = vpop.permute.xlu0 %1336 }
 0x2d1   : > { %v1391_v33 = vmul.f32 %v2423_v45, %v2423_v45  ;;  %v1392_v14 = vmul.f32 %v2426_v34, %v2426_v34  ;;  %v2449_v16 = vsub.f32 %v2273_v15, %v1337_v18 }
 0x2d2   : > { %v1363_v22 = vpop.permute.xlu1 %1362 }
 0x2d3   : > { %v1415_v46 = vadd.f32 %v1392_v14, %v1391_v33  ;;  %v1395_v29 = vmul.f32 %v2449_v16, %v2449_v16  ;;  %v2479_v0 = vsub.f32 %v2357_v7, %v1363_v22  ;;  %v2482_v38 = vsub.f32 %v2359_v60, %v1363_v22 }
 0x2d4   : > { %v1359_v63 = vpop.permute.xlu0 %1358 }
 0x2d5   : > { %1416 = vadd.xlane.f32.xlu1 %v1415_v46  ;;  %v2433_v8 = vsub.f32 %v2346_v31, %v1359_v63  ;;  %v2436_v5 = vsub.f32 %v2351_v32, %v1359_v63  ;;  %v2452_v31 = vsub.f32 %v2282_v37, %v1337_v18  ;;  %v1408_v55 = vmul.f32 %v2482_v38, %v2482_v38 }
 0x2d6   : > { %v1342_v47 = vpop.permute.xlu1 %1341 }
 0x2d7   : > { %v1406_v27 = vmul.f32 %v2436_v5, %v2436_v5  ;;  %v2476_v58 = vsub.f32 %v2298_v59, %v1342_v47  ;;  %v1407_v59 = vmul.f32 %v2479_v0, %v2479_v0  ;;  %v1440_v23 = vsel %vm1232_vm9, %v1408_v55, 0.0 }
 0x2d9   : > { %v1439_v60 = vsel %vm1232_vm9, %v1407_v59, 0.0 }
 0x2da   : > { %v1351_v3 = vpop.permute.xlu1 %1350  ;;  %v1441_v10 = vadd.f32 %v1440_v23, %v1439_v60 }
 0x2db   : > { %v2439_v48 = vsub.f32 %v2321_v35, %v1351_v3  ;;  %v2442_v49 = vsub.f32 %v2330_v51, %v1351_v3  ;;  %v1405_v35 = vmul.f32 %v2433_v8, %v2433_v8 }
 0x2dd   : > { %v1401_v21 = vmul.f32 %v2439_v48, %v2439_v48  ;;  %v1402_v20 = vmul.f32 %v2442_v49, %v2442_v49  ;;  %v1436_v52 = vadd.f32 %v1406_v27, %v1405_v35 }
 0x2de   : > { %v1355_v32 = vpop.permute.xlu1 %1354 }
 0x2df   : > { %v2457_v50 = vsub.f32 %v2335_v53, %v1355_v32  ;;  %v2460_v51 = vsub.f32 %v2342_v62, %v1355_v32  ;;  %v1430_v26 = vadd.f32 %v1402_v20, %v1401_v21  ;;  %v1396_v53 = vmul.f32 %v2452_v31, %v2452_v31 }
 0x2e0   : > { %v2473_v62 = vsub.f32 %v2289_v9, %v1342_v47  ;;  %v1398_v9 = vmul.f32 %v2476_v58, %v2476_v58 }
 0x2e1   : > { %1431 = vadd.xlane.f32.xlu1 %v1430_v26  ;;  %v1403_v15 = vmul.f32 %v2457_v50, %v2457_v50  ;;  %v1404_v37 = vmul.f32 %v2460_v51, %v2460_v51  ;;  %v1421_v61 = vadd.f32 %v1396_v53, %v1395_v29 }
 0x2e2   : > { %v1397_v24 = vmul.f32 %v2473_v62, %v2473_v62 }
 0x2e3   : > { %v1433_v30 = vadd.f32 %v1404_v37, %v1403_v15 }
 0x2e4   : > { %v1424_v7 = vadd.f32 %v1398_v9, %v1397_v24 }
 0x2e5   : > { %1434 = vadd.xlane.f32.xlu0 %v1433_v30  ;;  %1437 = vadd.xlane.f32.xlu1 %v1436_v52 }
 0x2e9   : > { %1422 = vadd.xlane.f32.xlu0 %v1421_v61 }
 0x2ed   : > { %1425 = vadd.xlane.f32.xlu0 %v1424_v7 }
 0x2f1   : > { %1442 = vadd.xlane.f32.xlu0 %v1441_v10 }
 0x34c   : > { %v1411_v1 = vpop.xlane.xlu1 %1410 }
 0x350   : > { %v1414_v25 = vpop.xlane.xlu0 %1413 }
 0x354   : > { %v1420_v2 = vpop.xlane.xlu1 %1419 }
 0x355   : > { %v1449_v28 = vrot.slane %v1420_v2, 5 }
 0x358   : > { %v1429_v36 = vpop.xlane.xlu0 %1428 }
 0x359   : > { %v1464_v18 = vrot.slane %v1429_v36, 2 }
 0x35e   : > { %v1417_v56 = vpop.xlane.xlu1 %1416 }
 0x35f   : > { %v1448_v43 = vrot.slane %v1417_v56, 5 }
 0x361   : > { %v1450_v33 = vsel %vm1242_vm10, %v1448_v43, %v1449_v28 }
 0x362   : > { %v1458_v32 = vadd.f32 %v1450_v33, %v1411_v1 }
 0x36a   : > { %v1432_v39 = vpop.xlane.xlu1 %1431 }
 0x36b   : > { %v1466_v44 = vrot.slane %v1432_v39, 2  ;;  %v1477_v26 = vrot.slane %v1432_v39, 7 }
 0x36d   : > { %v1467_v3 = vsel %vm1258_vm11, %v1464_v18, %v1466_v44 }
 0x36e   : > { %v1435_v42 = vpop.xlane.xlu0 %1434  ;;  %v1438_v11 = vpop.xlane.xlu1 %1437 }
 0x36f   : > { %v1480_v14 = vrot.slane %v1438_v11, 7  ;;  %v1478_v22 = vrot.slane %v1435_v42, 7 }
 0x371   : > { %v1481_v27 = vsel %vm1273_vm12, %v1478_v22, %v1480_v14  ;;  %v1479_v61 = vsel %vm1273_vm12, %v1477_v26, %v1478_v22 }
 0x372   : > { %v1423_v6 = vpop.xlane.xlu0 %1422 }
 0x373   : > { %v1451_v13 = vrot.slane %v1423_v6, 5 }
 0x375   : > { %v1452_v46 = vsel %vm1242_vm10, %v1449_v28, %v1451_v13 }
 0x376   : > { %v1459_v47 = vadd.f32 %v1452_v46, %v1414_v25  ;;  %v1426_v63 = vpop.xlane.xlu0 %1425 }
 0x377   : > { %v1453_v21 = vrot.slane %v1426_v63, 5  ;;  %v1463_v20 = vrot.slane %v1426_v63, 2 }
 0x378   : > { %v1472_v35 = vadd.f32 %v1467_v3, %v1459_v47 }
 0x379   : > { %v1454_v15 = vsel %vm1242_vm10, %v1451_v13, %v1453_v21  ;;  %v1465_v37 = vsel %vm1258_vm11, %v1463_v20, %v1464_v18 }
 0x37a   : > { %v1488_v29 = vadd.f32 %v1481_v27, %v1472_v35  ;;  %v1460_v53 = vadd.f32 %v1454_v15, %v1417_v56  ;;  %v1471_v30 = vadd.f32 %v1465_v37, %v1458_v32  ;;  %v1443_v52 = vpop.xlane.xlu0 %1442 }
 0x37b   : > { %v1482_v24 = vrot.slane %v1443_v52, 7 }
 0x37c   : > { %v1491_v9 = vmul.f32 0.0009765625, %v1488_v29  ;;  %v1487_v59 = vadd.f32 %v1479_v61, %v1471_v30  ;;  %v1473_v55 = vadd.f32 %v1466_v44, %v1460_v53 }
 0x37d   : > { %v1483_v7 = vsel %vm1273_vm12, %v1480_v14, %v1482_v24 }
 0x37e   : > { %v1526_v60 = vadd.f32 1e-05, %v1491_v9  ;;  %v1490_v23 = vmul.f32 0.0009765625, %v1487_v59  ;;  %v1489_v10 = vadd.f32 %v1483_v7, %v1473_v55  ;;  %v1497_v56 = vrot.slane %v1491_v9, 3 }
 0x37f   : > { %v1506_v42 = vrot.slane %v1491_v9, 6  ;;  %v1514_v14 = vrot.slane %v1491_v9, 1 }
 0x380   : > { %1865 = vrsqrt.f32 %v1526_v60  ;;  %v1496_v1 = vrot.slane %v1490_v23, 3  ;;  %v1525_v2 = vadd.f32 1e-05, %v1490_v23  ;;  %v1492_v25 = vmul.f32 0.0009765625, %v1489_v10 }
 0x381   : > { %v1505_v36 = vrot.slane %v1490_v23, 6  ;;  %v1513_v44 = vrot.slane %v1490_v23, 1 }
 0x382   : > { %1867 = vrsqrt.f32 %v1525_v2  ;;  %v1522_v39 = vsel %vm1293_vm13, %v1492_v25, %v1496_v1  ;;  %v1499_v43 = vrot.slane %v1492_v25, 3  ;;  %v1498_v6 = vsel %vm1293_vm13, %v1496_v1, %v1497_v56 }
 0x383   : > { %v1527_v11 = vadd.f32 1e-05, %v1522_v39  ;;  %v1507_v28 = vsel %vm172_vm0, %v1505_v36, %v1506_v42  ;;  %v1508_v18 = vrot.slane %v1492_v25, 6  ;;  %v1528_v22 = vadd.f32 1e-05, %v1498_v6 }
 0x384   : > { %v1500_v13 = vsel %vm1293_vm13, %v1497_v56, %v1499_v43  ;;  %v1531_v46 = vadd.f32 1e-05, %v1507_v28  ;;  %v1523_v47 = vsel %vm172_vm0, %v1499_v43, %v1505_v36  ;;  %v1515_v63 = vsel %vm1308_vm14, %v1513_v44, %v1514_v14 }
 0x385   : > { %v1529_v33 = vadd.f32 1e-05, %v1500_v13  ;;  %1869 = vrsqrt.f32 %v1527_v11  ;;  %v1509_v3 = vsel %vm172_vm0, %v1506_v42, %v1508_v18  ;;  %v1530_v20 = vadd.f32 1e-05, %v1523_v47 }
 0x386   : > { %v1533_v32 = vadd.f32 1e-05, %v1515_v63  ;;  %v1516_v35 = vrot.slane %v1492_v25, 1  ;;  %v1524_v26 = vsel %vm1308_vm14, %v1509_v3, %v1513_v44 }
 0x387   : > { %1871 = vrsqrt.f32 %v1529_v33  ;;  %v1532_v15 = vadd.f32 1e-05, %v1524_v26 }
 0x388   : > { %1873 = vrsqrt.f32 %v1528_v22  ;;  %v1517_v37 = vsel %vm1308_vm14, %v1514_v14, %v1516_v35  ;;  %v1535_v29 = vadd.f32 1e-05, %v1516_v35 }
 0x389   : > { %1875 = vrsqrt.f32 %v1531_v46  ;;  %v1534_v53 = vadd.f32 1e-05, %v1517_v37 }
 0x38a   : > { %1877 = vrsqrt.f32 %v1530_v20 }
 0x38b   : > { %1879 = vrsqrt.f32 %v1533_v32 }
 0x38c   : > { %1881 = vrsqrt.f32 %v1532_v15 }
 0x38d   : > { %v1866_v21 = vpop.eup %1865  ;;  %1883 = vrsqrt.f32 %v1535_v29 }
 0x38e   : > { %1554 = vperm.xlu0 %1837, %v1866_v21   ;;  %1885 = vrsqrt.f32 %v1534_v53 }
 0x38f   : > { %v1868_v27 = vpop.eup %1867 }
 0x390   : > { %1549 = vperm.xlu1 %1836, %v1868_v27  }
 0x392   : > { %v1870_v30 = vpop.eup %1869 }
 0x394   : > { %v1872_v52 = vpop.eup %1871  ;;  %1559 = vperm.xlu1 %1836, %v1870_v30  }
 0x395   : > { %1569 = vperm.xlu0 %1837, %v1872_v52   ;;  %v1874_v61 = vpop.eup %1873 }
 0x396   : > { %v1876_v24 = vpop.eup %1875 }
 0x397   : > { %v1878_v9 = vpop.eup %1877 }
 0x398   : > { %1564 = vperm.xlu1 %1836, %v1874_v61   ;;  %v1880_v59 = vpop.eup %1879 }
 0x399   : > { %1579 = vperm.xlu0 %1837, %v1876_v24   ;;  %v1882_v55 = vpop.eup %1881 }
 0x39a   : > { %v1884_v7 = vpop.eup %1883 }
 0x39b   : > { %v1886_v60 = vpop.eup %1885 }
 0x39c   : > { %1574 = vperm.xlu1 %1836, %v1878_v9  }
 0x39d   : > { %1589 = vperm.xlu0 %1837, %v1880_v59  }
 0x3a0   : > { %1584 = vperm.xlu1 %1836, %v1882_v55  }
 0x3a1   : > { %1599 = vperm.xlu0 %1837, %v1884_v7  }
 0x3a4   : > { %1594 = vperm.xlu1 %1836, %v1886_v60  }
 0x409   : > { %v1555_v23 = vpop.permute.xlu0 %1554 }
 0x40a   : > { %v1604_v10 = vmul.f32 %v1555_v23, %v2393_v40  ;;  %v1605_v1 = vmul.f32 %v1555_v23, %v2396_v41 }
 0x40b   : > { %v1550_v36 = vpop.permute.xlu1 %1549 }
 0x40c   : > { %v1626_v2 = vmax.f32 %v1604_v10, 0.0  ;;  %v1627_v25 = vmax.f32 %v1605_v1, 0.0  ;;  %v1602_v56 = vmul.f32 %v1550_v36, %v2383_v17  ;;  %v1603_v39 = vmul.f32 %v1550_v36, %v2386_v54 }
 0x40e   : > { %1648 = vst [vmem:[%s2517_s26 + $0x10] sm:$0xff] %v1626_v2  ;;  %1649 = vst [vmem:[%s2517_s26 + $0x18] sm:$0xff] %v1627_v25  ;;  %v1624_v40 = vmax.f32 %v1602_v56, 0.0  ;;  %v1625_v41 = vmax.f32 %v1603_v39, 0.0 }
 0x40f   : > { %v1560_v42 = vpop.permute.xlu1 %1559 }
 0x410   : > { %1646 = vst [vmem:[%s2517_s26] sm:$0xff] %v1624_v40  ;;  %1647 = vst [vmem:[%s2517_s26 + $0x8] sm:$0xff] %v1625_v41  ;;  %v1606_v43 = vmul.f32 %v1560_v42, %v2423_v45  ;;  %v1607_v11 = vmul.f32 %v1560_v42, %v2426_v34  ;;  %v1570_v6 = vpop.permute.xlu0 %1569 }
 0x411   : > { %v1610_v17 = vmul.f32 %v1570_v6, %v2449_v16  ;;  %v1611_v54 = vmul.f32 %v1570_v6, %v2452_v31 }
 0x412   : > { %v1628_v28 = vmax.f32 %v1606_v43, 0.0  ;;  %v1629_v44 = vmax.f32 %v1607_v11, 0.0 }
 0x413   : > { %v1632_v13 = vmax.f32 %v1610_v17, 0.0  ;;  %v1633_v18 = vmax.f32 %v1611_v54, 0.0  ;;  %v1565_v33 = vpop.permute.xlu1 %1564 }
 0x414   : > { %1650 = vst [vmem:[%s2517_s26 + $0x20] sm:$0xff] %v1628_v28  ;;  %1651 = vst [vmem:[%s2517_s26 + $0x28] sm:$0xff] %v1629_v44  ;;  %v1608_v14 = vmul.f32 %v1565_v33, %v2403_v57  ;;  %v1609_v45 = vmul.f32 %v1565_v33, %v2406_v12  ;;  %v1580_v34 = vpop.permute.xlu0 %1579 }
 0x415   : > { %1654 = vst [vmem:[%s2517_s26 + $0x40] sm:$0xff] %v1632_v13  ;;  %1655 = vst [vmem:[%s2517_s26 + $0x48] sm:$0xff] %v1633_v18  ;;  %v1614_v16 = vmul.f32 %v1580_v34, %v2413_v4  ;;  %v1615_v31 = vmul.f32 %v1580_v34, %v2416_v19 }
 0x416   : > { %v1630_v22 = vmax.f32 %v1608_v14, 0.0  ;;  %v1631_v46 = vmax.f32 %v1609_v45, 0.0 }
 0x417   : > { %v1636_v47 = vmax.f32 %v1614_v16, 0.0  ;;  %v1637_v63 = vmax.f32 %v1615_v31, 0.0  ;;  %v1575_v3 = vpop.permute.xlu1 %1574 }
 0x418   : > { %1652 = vst [vmem:[%s2517_s26 + $0x30] sm:$0xff] %v1630_v22  ;;  %1653 = vst [vmem:[%s2517_s26 + $0x38] sm:$0xff] %v1631_v46  ;;  %v1612_v57 = vmul.f32 %v1575_v3, %v2473_v62  ;;  %v1613_v12 = vmul.f32 %v1575_v3, %v2476_v58  ;;  %v1590_v21 = vpop.permute.xlu0 %1589 }
 0x419   : > { %1658 = vst [vmem:[%s2517_s26 + $0x60] sm:$0xff] %v1636_v47  ;;  %1659 = vst [vmem:[%s2517_s26 + $0x68] sm:$0xff] %v1637_v63  ;;  %v1618_v4 = vmul.f32 %v1590_v21, %v2457_v50  ;;  %v1619_v19 = vmul.f32 %v1590_v21, %v2460_v51 }
 0x41a   : > { %v1634_v20 = vmax.f32 %v1612_v57, 0.0  ;;  %v1635_v32 = vmax.f32 %v1613_v12, 0.0 }
 0x41b   : > { %v1640_v35 = vmax.f32 %v1618_v4, 0.0  ;;  %v1641_v26 = vmax.f32 %v1619_v19, 0.0  ;;  %v1585_v27 = vpop.permute.xlu1 %1584 }
 0x41c   : > { %1656 = vst [vmem:[%s2517_s26 + $0x50] sm:$0xff] %v1634_v20  ;;  %1657 = vst [vmem:[%s2517_s26 + $0x58] sm:$0xff] %v1635_v32  ;;  %v1616_v62 = vmul.f32 %v1585_v27, %v2439_v48  ;;  %v1617_v58 = vmul.f32 %v1585_v27, %v2442_v49  ;;  %v1600_v15 = vpop.permute.xlu0 %1599 }
 0x41d   : > { %1662 = vst [vmem:[%s2517_s26 + $0x80] sm:$0xff] %v1640_v35  ;;  %1663 = vst [vmem:[%s2517_s26 + $0x88] sm:$0xff] %v1641_v26  ;;  %v1622_v50 = vmul.f32 %v1600_v15, %v2479_v0  ;;  %v1623_v51 = vmul.f32 %v1600_v15, %v2482_v38 }
 0x41e   : > { %v1638_v37 = vmax.f32 %v1616_v62, 0.0  ;;  %v1639_v29 = vmax.f32 %v1617_v58, 0.0 }
 0x41f   : > { %v1644_v53 = vmax.f32 %v1622_v50, 0.0  ;;  %v1645_v30 = vmax.f32 %v1623_v51, 0.0  ;;  %v1595_v52 = vpop.permute.xlu1 %1594 }
 0x420   : > { %1660 = vst [vmem:[%s2517_s26 + $0x70] sm:$0xff] %v1638_v37  ;;  %1661 = vst [vmem:[%s2517_s26 + $0x78] sm:$0xff] %v1639_v29  ;;  %v1620_v48 = vmul.f32 %v1595_v52, %v2433_v8  ;;  %v1621_v49 = vmul.f32 %v1595_v52, %v2436_v5 }
 0x421   : > { %1666 = vst [vmem:[%s2517_s26 + $0xa0] sm:$0xf] %v1644_v53  ;;  %1667 = vst [vmem:[%s2517_s26 + $0xa8] sm:$0xf] %v1645_v30 }
 0x422   : > { %v1642_v61 = vmax.f32 %v1620_v48, 0.0  ;;  %v1643_v24 = vmax.f32 %v1621_v49, 0.0 }
 0x424   : > { %1664 = vst [vmem:[%s2517_s26 + $0x90] sm:$0xff] %v1642_v61  ;;  %1665 = vst [vmem:[%s2517_s26 + $0x98] sm:$0xff] %v1643_v24 }
 0x425 PF: > { %s13_s12 = sadd.s32 1, %s1893_s12  }
 0x426   : > { %p10_p4 = scmp.ge.s32.totalorder %s13_s12, 4  }
 0x428   :  { %12 = sbr.rel (!%p10_p4) target bundleno = 1 (0x1), region = 66 }

</bundles_post_ra>
